<compile_context>
chip_gen: v7x
topology: tpu7x:2x2x1
jax: 0.10.0
libtpu: 0.0.40
codegen_flags: <defaults>
</compile_context>

<pallas_src>
import functools

import jax
import jax.numpy as jnp
from jax.experimental import pallas as pl
from jax.experimental.pallas import tpu as pltpu

BN_EPS = 1e-5


# ----------------------------- conv stage kernel ---------------------------- #
def _conv_stage_kernel(body_ref, top_ref, bot_ref, w_ref, scale_ref, shift_ref,
                       y_ref, stats_ref, *, pre_bn_relu):
    """One 3x3-conv stage on an (image b, row-tile i) block.

    body_ref : (1, TH, W, Cin)   rows [i*TH, (i+1)*TH) of the stage input
    top_ref  : (1, 1,  W, Cin)   row i*TH-1   (index clamped; masked at i==0)
    bot_ref  : (1, 1,  W, Cin)   row (i+1)*TH (index clamped; masked at last i)
    w_ref    : (9*Cin, Cout)     bf16 im2col weights (tap-major, channel-minor)
    scale/shift : (1, Cin) f32   BN affine of the PREVIOUS stage (stage 2 only)
    y_ref    : (1, TH, W, Cout)  raw (pre-BN) conv output, bf16
    stats_ref: (1, 1, 2, Cout)   per-tile [sum, sum-of-squares] of the f32 acc
    """
    i = pl.program_id(1)
    n_i = pl.num_programs(1)
    _, TH, W, Cin = body_ref.shape
    Cout = w_ref.shape[-1]

    if pre_bn_relu:
        scale = scale_ref[...].reshape(1, 1, Cin)
        shift = shift_ref[...].reshape(1, 1, Cin)

    def prep(v):
        # Previous stage's BN+ReLU applied on the fly to the streamed raw
        # activation (halo rows included) -> no extra HBM pass.
        v = v.astype(jnp.float32)
        if pre_bn_relu:
            v = jnp.maximum(v * scale + shift, 0.0)
        return v

    body = prep(body_ref[0])                                     # (TH, W, Cin)
    # Halo rows: mask to exact zeros at the image edges (conv zero padding is
    # applied AFTER the previous stage's BN+ReLU, so it must stay exactly 0).
    top = prep(top_ref[0]) * (i > 0).astype(jnp.float32)         # (1, W, Cin)
    bot = prep(bot_ref[0]) * (i < n_i - 1).astype(jnp.float32)   # (1, W, Cin)

    # Zero-padded, haloed slab built as values (no scratch, no full zero pass).
    zcol = jnp.zeros((TH + 2, 1, Cin), jnp.float32)
    slab = jnp.concatenate([top, body, bot], axis=0)             # (TH+2, W,   Cin)
    slab = jnp.concatenate([zcol, slab, zcol], axis=1)           # (TH+2, W+2, Cin)

    # im2col: one MXU matmul with K = 9*Cin instead of 9 K=Cin matmuls.
    taps = [slab[dy:dy + TH, dx:dx + W, :]
            for dy in range(3) for dx in range(3)]
    lhs = jnp.concatenate(taps, axis=-1).reshape(TH * W, 9 * Cin)
    lhs = lhs.astype(jnp.bfloat16)                               # bf16 MXU path
    acc = jnp.dot(lhs, w_ref[...],
                  preferred_element_type=jnp.float32)            # (TH*W, Cout) f32

    # BN statistics fused into the conv epilogue while acc is hot.  Per-tile
    # partials go to this tile's own slot (safe under "parallel" semantics);
    # the cross-tile reduction happens in the wrapper.
    s = jnp.sum(acc, axis=0, keepdims=True)                      # (1, Cout)
    ss = jnp.sum(acc * acc, axis=0, keepdims=True)               # (1, Cout)
    stats_ref[0, 0] = jnp.concatenate([s, ss], axis=0)           # (2, Cout)

    y_ref[0] = acc.reshape(TH, W, Cout).astype(y_ref.dtype)


def _conv_stage(a, w, scale, shift, *, pre_bn_relu, tile_h):
    """Tiled conv3x3 stage: returns (raw conv output bf16, per-tile BN stats)."""
    B, H, W, Cin = a.shape
    KC, Cout = w.shape
    TH = tile_h
    nH = H // TH

    body_map = lambda b, i: (b, i, 0, 0)
    top_map = lambda b, i: (b, jnp.maximum(i * TH - 1, 0), 0, 0)
    bot_map = lambda b, i: (b, jnp.minimum((i + 1) * TH, H - 1), 0, 0)
    const_map = lambda b, i: (0, 0)

    kernel = functools.partial(_conv_stage_kernel, pre_bn_relu=pre_bn_relu)
    y, stats = pl.pallas_call(
        kernel,
        out_shape=(jax.ShapeDtypeStruct((B, H, W, Cout), jnp.bfloat16),
                   jax.ShapeDtypeStruct((B, nH, 2, Cout), jnp.float32)),
        grid=(B, nH),
        in_specs=[
            pl.BlockSpec((1, TH, W, Cin), body_map),   # row-tile body
            pl.BlockSpec((1, 1, W, Cin), top_map),     # top halo row
            pl.BlockSpec((1, 1, W, Cin), bot_map),     # bottom halo row
            pl.BlockSpec((KC, Cout), const_map),       # im2col weights (resident)
            pl.BlockSpec((1, Cin), const_map),         # BN scale of prev stage
            pl.BlockSpec((1, Cin), const_map),         # BN shift of prev stage
        ],
        out_specs=(
            pl.BlockSpec((1, TH, W, Cout), body_map),
            pl.BlockSpec((1, 1, 2, Cout), lambda b, i: (b, i, 0, 0)),
        ),
        compiler_params=pltpu.CompilerParams(
            dimension_semantics=("parallel", "parallel")),
    )(a, a, a, w, scale, shift)
    return y, stats


# ------------------------------ finalize kernel ------------------------------ #
def _finalize_kernel(z_ref, x_ref, scale_ref, shift_ref, out_ref):
    C = out_ref.shape[-1]
    scale = scale_ref[...].reshape(1, 1, 1, C)
    shift = shift_ref[...].reshape(1, 1, 1, C)
    z = z_ref[...].astype(jnp.float32)
    res = x_ref[...].astype(jnp.float32)
    out_ref[...] = jnp.maximum(z * scale + shift + res, 0.0).astype(out_ref.dtype)


def _finalize(z_raw, x, scale, shift, *, tile_h):
    B, H, W, C = x.shape
    TH = tile_h
    nH = H // TH
    tile_map = lambda b, i: (b, i, 0, 0)
    const_map = lambda b, i: (0, 0)
    return pl.pallas_call(
        _finalize_kernel,
        out_shape=jax.ShapeDtypeStruct((B, H, W, C), jnp.float32),
        grid=(B, nH),
        in_specs=[
            pl.BlockSpec((1, TH, W, C), tile_map),
            pl.BlockSpec((1, TH, W, C), tile_map),
            pl.BlockSpec((1, C), const_map),
            pl.BlockSpec((1, C), const_map),
        ],
        out_specs=pl.BlockSpec((1, TH, W, C), tile_map),
        compiler_params=pltpu.CompilerParams(
            dimension_semantics=("parallel", "parallel")),
    )(z_raw, x, scale, shift)


# --------------------------------- wrapper ----------------------------------- #
def _bn_affine(stats, gamma, beta, m):
    """Reduce per-tile [sum, sumsq] partials -> BN scale/shift (f32, (1, C))."""
    s = jnp.sum(stats, axis=(0, 1))                 # (2, C)
    mean = s[0] / m
    # TODO(synk): one-pass variance; prefer shifted/two-pass for huge means.
    var = jnp.maximum(s[1] / m - mean * mean, 0.0)
    inv = jax.lax.rsqrt(var + BN_EPS)
    scale = gamma.reshape(-1) * inv
    shift = beta.reshape(-1) - mean * scale
    return (scale.reshape(1, -1).astype(jnp.float32),
            shift.reshape(1, -1).astype(jnp.float32))


def basic_block_forward(x_nchw, params, *, tile_h=8):
    """BasicBlock forward (stride=1, downsample=None), training-mode BN."""
    w1, g1, b1, w2, g2, b2 = params
    x = jnp.transpose(x_nchw, (0, 2, 3, 1)).astype(jnp.float32)   # NHWC residual
    B, H, W, Cin = x.shape
    Cout = w1.shape[-1]
    assert Cin == Cout, "identity shortcut requires inplanes == planes"
    TH = min(tile_h, H)
    assert H % TH == 0, "TODO(synk): ragged H tiling not implemented"
    m = B * H * W

    # im2col weights, bf16 operands for the MXU (f32 accumulation in-kernel).
    w1b = w1.reshape(9 * Cin, Cout).astype(jnp.bfloat16)
    w2b = w2.reshape(9 * Cout, Cout).astype(jnp.bfloat16)
    dummy = jnp.zeros((1, Cin), jnp.float32)

    # Stage 1: conv1 (+ fused per-tile BN1 statistics).
    y_raw, stats1 = _conv_stage(x, w1b, dummy, dummy,
                                pre_bn_relu=False, tile_h=TH)
    scale1, shift1 = _bn_affine(stats1, g1, b1, m)

    # Stage 2: bn1+relu applied in conv2's input path; conv2 (+ BN2 stats).
    z_raw, stats2 = _conv_stage(y_raw, w2b, scale1, shift1,
                                pre_bn_relu=True, tile_h=TH)
    scale2, shift2 = _bn_affine(stats2, g2, b2, m)

    # Stage 3: bn2 + residual + relu.
    out = _finalize(z_raw, x, scale2, shift2, tile_h=TH)
    return jnp.transpose(out, (0, 3, 1, 2))                       # -> NCHW


# ---------------------------- params & reference ----------------------------- #
def init_params(key, inplanes, planes):
    k1, k2, k3, k4, k5, k6 = jax.random.split(key, 6)
    w1 = 0.2 * jax.random.normal(k1, (9, inplanes, planes), jnp.float32)
    w2 = 0.2 * jax.random.normal(k2, (9, planes, planes), jnp.float32)
    g1 = 1.0 + 0.1 * jax.random.normal(k3, (1, planes), jnp.float32)
    b1 = 0.1 * jax.random.normal(k4, (1, planes), jnp.float32)
    g2 = 1.0 + 0.1 * jax.random.normal(k5, (1, planes), jnp.float32)
    b2 = 0.1 * jax.random.normal(k6, (1, planes), jnp.float32)
    return (w1, g1, b1, w2, g2, b2)


def _conv3x3_ref(x, w):
    # Reference mirrors the kernel's deliberate operand precision: bf16
    # conv operands, f32 accumulation. BN / residual math stays f32.
    w4 = w.reshape(3, 3, w.shape[1], w.shape[2]).astype(jnp.bfloat16)  # HWIO
    return jax.lax.conv_general_dilated(
        x.astype(jnp.bfloat16), w4, window_strides=(1, 1), padding="SAME",
        dimension_numbers=("NHWC", "HWIO", "NHWC"),
        preferred_element_type=jnp.float32)


def _bn_ref(x, g, b):
    mean = jnp.mean(x, axis=(0, 1, 2), keepdims=True)
    var = jnp.mean((x - mean) ** 2, axis=(0, 1, 2), keepdims=True)
    return ((x - mean) * jax.lax.rsqrt(var + BN_EPS)
            * g.reshape(1, 1, 1, -1) + b.reshape(1, 1, 1, -1))


def reference_forward(x_nchw, params):
    w1, g1, b1, w2, g2, b2 = params
    x = jnp.transpose(x_nchw, (0, 2, 3, 1)).astype(jnp.float32)
    y = jnp.maximum(_bn_ref(_conv3x3_ref(x, w1), g1, b1), 0.0)
    z = jnp.maximum(_bn_ref(_conv3x3_ref(y, w2), g2, b2) + x, 0.0)
    return jnp.transpose(z, (0, 3, 1, 2))


# ----------------------------------- main ------------------------------------ #
if __name__ == "__main__":
    key = jax.random.PRNGKey(0)
    kx, kp = jax.random.split(key)
    B, C, H, W = 2, 4, 16, 16          # inplanes == planes (expansion = 1)
    x = jax.random.normal(kx, (B, C, H, W), jnp.float32)
    params = init_params(kp, C, C)

    fwd = jax.jit(basic_block_forward)
    out = jax.block_until_ready(fwd(x, params))
    ref = jax.block_until_ready(reference_forward(x, params))

    assert out.shape == (B, C, H, W), out.shape
    max_err = float(jnp.max(jnp.abs(out - ref)))
    # Tolerance accounts for bf16 intermediate storage / stats-path rounding
    # differences vs the bf16-operand reference.
    if max_err > 4e-2:
        raise AssertionError(f"Pallas result mismatch: max abs err = {max_err}")
    print("KERNEL_OK")
</pallas_src>

<mosaic_0001>
module attributes {stable_mosaic.version = 11 : i64} {
  func.func @_conv_stage_kernel(%arg0: i32, %arg1: i32, %arg2: memref<1x8x16x4xf32, #tpu.memory_space<vmem>>, %arg3: memref<1x1x16x4xf32, #tpu.memory_space<vmem>>, %arg4: memref<1x1x16x4xf32, #tpu.memory_space<vmem>>, %arg5: memref<36x4xbf16, #tpu.memory_space<vmem>>, %arg6: memref<1x4xf32, #tpu.memory_space<vmem>>, %arg7: memref<1x4xf32, #tpu.memory_space<vmem>>, %arg8: memref<1x8x16x4xbf16, #tpu.memory_space<vmem>>, %arg9: memref<1x1x2x4xf32, #tpu.memory_space<vmem>>) attributes {dimension_semantics = [#tpu.dimension_semantics<parallel>, #tpu.dimension_semantics<parallel>], iteration_bounds = array<i64: 2, 2>, scalar_prefetch = 0 : i64, scratch_operands = 0 : i64, tpu.core_type = #tpu.core_type<tc>, window_params = [{transform_indices = @transform_0, window_bounds = array<i64: 1, 8, 16, 4>}, {transform_indices = @transform_1, window_bounds = array<i64: 1, 1, 16, 4>}, {transform_indices = @transform_2, window_bounds = array<i64: 1, 1, 16, 4>}, {pipeline_mode = #tpu.pipeline_mode<synchronous>, transform_indices = @transform_3, window_bounds = array<i64: 36, 4>}, {pipeline_mode = #tpu.pipeline_mode<synchronous>, transform_indices = @transform_4, window_bounds = array<i64: 1, 4>}, {pipeline_mode = #tpu.pipeline_mode<synchronous>, transform_indices = @transform_5, window_bounds = array<i64: 1, 4>}, {transform_indices = @transform_6, window_bounds = array<i64: 1, 8, 16, 4>}, {transform_indices = @transform_7, window_bounds = array<i64: 1, 1, 2, 4>}]} {
    %c0 = arith.constant 0 : index
    %c0_0 = arith.constant 0 : index
    %c0_1 = arith.constant 0 : index
    %c0_2 = arith.constant 0 : index
    %0 = vector.load %arg2[%c0, %c0_0, %c0_1, %c0_2] : memref<1x8x16x4xf32, #tpu.memory_space<vmem>>, vector<1x8x16x4xf32>
    %1 = vector.shape_cast %0 : vector<1x8x16x4xf32> to vector<8x16x4xf32>
    %c0_3 = arith.constant 0 : index
    %c0_4 = arith.constant 0 : index
    %c0_5 = arith.constant 0 : index
    %c0_6 = arith.constant 0 : index
    %2 = vector.load %arg3[%c0_3, %c0_4, %c0_5, %c0_6] : memref<1x1x16x4xf32, #tpu.memory_space<vmem>>, vector<1x1x16x4xf32>
    %3 = vector.shape_cast %2 : vector<1x1x16x4xf32> to vector<1x16x4xf32>
    %c0_i32 = arith.constant 0 : i32
    %4 = arith.cmpi sgt, %arg1, %c0_i32 : i32
    %5 = arith.extui %4 : i1 to i32
    %6 = arith.sitofp %5 : i32 to f32
    %7 = vector.broadcast %6 : f32 to vector<1x16x4xf32>
    %8 = arith.mulf %3, %7 : vector<1x16x4xf32>
    %c0_7 = arith.constant 0 : index
    %c0_8 = arith.constant 0 : index
    %c0_9 = arith.constant 0 : index
    %c0_10 = arith.constant 0 : index
    %9 = vector.load %arg4[%c0_7, %c0_8, %c0_9, %c0_10] : memref<1x1x16x4xf32, #tpu.memory_space<vmem>>, vector<1x1x16x4xf32>
    %10 = vector.shape_cast %9 : vector<1x1x16x4xf32> to vector<1x16x4xf32>
    %c1_i32 = arith.constant 1 : i32
    %11 = arith.cmpi slt, %arg1, %c1_i32 : i32
    %12 = arith.extui %11 : i1 to i32
    %13 = arith.sitofp %12 : i32 to f32
    %14 = vector.broadcast %13 : f32 to vector<1x16x4xf32>
    %15 = arith.mulf %10, %14 : vector<1x16x4xf32>
    %cst = arith.constant 0.000000e+00 : f32
    %16 = vector.broadcast %cst : f32 to vector<10x1x4xf32>
    %17 = tpu.concatenate %8, %1, %15 in 0 : vector<1x16x4xf32>, vector<8x16x4xf32>, vector<1x16x4xf32> -> vector<10x16x4xf32>
    %18 = tpu.concatenate %16, %17, %16 in 1 : vector<10x1x4xf32>, vector<10x16x4xf32>, vector<10x1x4xf32> -> vector<10x18x4xf32>
    %19 = vector.extract_strided_slice %18 {offsets = [0, 0, 0], sizes = [8, 16, 4], strides = [1, 1, 1]} : vector<10x18x4xf32> to vector<8x16x4xf32>
    %20 = vector.extract_strided_slice %18 {offsets = [0, 1, 0], sizes = [8, 16, 4], strides = [1, 1, 1]} : vector<10x18x4xf32> to vector<8x16x4xf32>
    %21 = vector.extract_strided_slice %18 {offsets = [0, 2, 0], sizes = [8, 16, 4], strides = [1, 1, 1]} : vector<10x18x4xf32> to vector<8x16x4xf32>
    %22 = vector.extract_strided_slice %18 {offsets = [1, 0, 0], sizes = [8, 16, 4], strides = [1, 1, 1]} : vector<10x18x4xf32> to vector<8x16x4xf32>
    %23 = vector.extract_strided_slice %18 {offsets = [1, 1, 0], sizes = [8, 16, 4], strides = [1, 1, 1]} : vector<10x18x4xf32> to vector<8x16x4xf32>
    %24 = vector.extract_strided_slice %18 {offsets = [1, 2, 0], sizes = [8, 16, 4], strides = [1, 1, 1]} : vector<10x18x4xf32> to vector<8x16x4xf32>
    %25 = vector.extract_strided_slice %18 {offsets = [2, 0, 0], sizes = [8, 16, 4], strides = [1, 1, 1]} : vector<10x18x4xf32> to vector<8x16x4xf32>
    %26 = vector.extract_strided_slice %18 {offsets = [2, 1, 0], sizes = [8, 16, 4], strides = [1, 1, 1]} : vector<10x18x4xf32> to vector<8x16x4xf32>
    %27 = vector.extract_strided_slice %18 {offsets = [2, 2, 0], sizes = [8, 16, 4], strides = [1, 1, 1]} : vector<10x18x4xf32> to vector<8x16x4xf32>
    %28 = tpu.concatenate %19, %20, %21, %22, %23, %24, %25, %26, %27 in 2 : vector<8x16x4xf32>, vector<8x16x4xf32>, vector<8x16x4xf32>, vector<8x16x4xf32>, vector<8x16x4xf32>, vector<8x16x4xf32>, vector<8x16x4xf32>, vector<8x16x4xf32>, vector<8x16x4xf32> -> vector<8x16x36xf32>
    %29 = vector.shape_cast %28 : vector<8x16x36xf32> to vector<128x36xf32>
    %30 = arith.truncf %29 : vector<128x36xf32> to vector<128x36xbf16>
    %c0_11 = arith.constant 0 : index
    %c0_12 = arith.constant 0 : index
    %31 = vector.load %arg5[%c0_11, %c0_12] : memref<36x4xbf16, #tpu.memory_space<vmem>>, vector<36x4xbf16>
    %cst_13 = arith.constant dense<0.000000e+00> : vector<128x4xf32>
    %32 = tpu.matmul %30, %31, %cst_13 {dimension_numbers = #tpu.dot_dimension_numbers<[1], [0], [0], [1], [0, 0, 1, 1], [], []>} : vector<128x36xbf16>, vector<36x4xbf16>, vector<128x4xf32> -> vector<128x4xf32>
    %cst_14 = arith.constant dense<0.000000e+00> : vector<4xf32>
    %33 = vector.multi_reduction <add>, %32, %cst_14 [0] : vector<128x4xf32> to vector<4xf32>
    %34 = vector.shape_cast %33 : vector<4xf32> to vector<1x4xf32>
    %35 = arith.mulf %32, %32 : vector<128x4xf32>
    %cst_15 = arith.constant dense<0.000000e+00> : vector<4xf32>
    %36 = vector.multi_reduction <add>, %35, %cst_15 [0] : vector<128x4xf32> to vector<4xf32>
    %37 = vector.shape_cast %36 : vector<4xf32> to vector<1x4xf32>
    %38 = tpu.concatenate %34, %37 in 0 : vector<1x4xf32>, vector<1x4xf32> -> vector<2x4xf32>
    %c0_16 = arith.constant 0 : index
    %c0_17 = arith.constant 0 : index
    %c0_18 = arith.constant 0 : index
    %c0_19 = arith.constant 0 : index
    %39 = vector.load %arg9[%c0_16, %c0_17, %c0_18, %c0_19] : memref<1x1x2x4xf32, #tpu.memory_space<vmem>>, vector<1x1x2x4xf32>
    %40 = vector.shape_cast %39 : vector<1x1x2x4xf32> to vector<2x4xf32>
    %41 = vector.shape_cast %38 : vector<2x4xf32> to vector<1x1x2x4xf32>
    tpu.vector_store %arg9[%c0_16, %c0_17, %c0_18, %c0_19], %41 {strides = array<i32>} : memref<1x1x2x4xf32, #tpu.memory_space<vmem>>, vector<1x1x2x4xf32>,
    %42 = vector.shape_cast %32 : vector<128x4xf32> to vector<8x16x4xf32>
    %43 = arith.truncf %42 : vector<8x16x4xf32> to vector<8x16x4xbf16>
    %c0_20 = arith.constant 0 : index
    %c0_21 = arith.constant 0 : index
    %c0_22 = arith.constant 0 : index
    %c0_23 = arith.constant 0 : index
    %44 = vector.load %arg8[%c0_20, %c0_21, %c0_22, %c0_23] : memref<1x8x16x4xbf16, #tpu.memory_space<vmem>>, vector<1x8x16x4xbf16>
    %45 = vector.shape_cast %44 : vector<1x8x16x4xbf16> to vector<8x16x4xbf16>
    %46 = vector.shape_cast %43 : vector<8x16x4xbf16> to vector<1x8x16x4xbf16>
    tpu.vector_store %arg8[%c0_20, %c0_21, %c0_22, %c0_23], %46 {strides = array<i32>} : memref<1x8x16x4xbf16, #tpu.memory_space<vmem>>, vector<1x8x16x4xbf16>,
    return
  }
  func.func @transform_0(%arg0: i32, %arg1: i32) -> (i32, i32, i32, i32) {
    %c0_i32 = arith.constant 0 : i32
    %c0_i32_0 = arith.constant 0 : i32
    %c0_i32_1 = arith.constant 0 : i32
    return %arg0, %arg1, %c0_i32, %c0_i32_0 : i32, i32, i32, i32
  }
  func.func @transform_1(%arg0: i32, %arg1: i32) -> (i32, i32, i32, i32) {
    %c8_i32 = arith.constant 8 : i32
    %0 = arith.muli %arg1, %c8_i32 : i32
    %c1_i32 = arith.constant 1 : i32
    %1 = arith.subi %0, %c1_i32 : i32
    %c0_i32 = arith.constant 0 : i32
    %2 = arith.maxsi %1, %c0_i32 : i32
    %c0_i32_0 = arith.constant 0 : i32
    %c0_i32_1 = arith.constant 0 : i32
    %c0_i32_2 = arith.constant 0 : i32
    return %arg0, %2, %c0_i32_0, %c0_i32_1 : i32, i32, i32, i32
  }
  func.func @transform_2(%arg0: i32, %arg1: i32) -> (i32, i32, i32, i32) {
    %c1_i32 = arith.constant 1 : i32
    %0 = arith.addi %arg1, %c1_i32 : i32
    %c8_i32 = arith.constant 8 : i32
    %1 = arith.muli %0, %c8_i32 : i32
    %c15_i32 = arith.constant 15 : i32
    %2 = arith.minsi %1, %c15_i32 : i32
    %c0_i32 = arith.constant 0 : i32
    %c0_i32_0 = arith.constant 0 : i32
    %c0_i32_1 = arith.constant 0 : i32
    return %arg0, %2, %c0_i32, %c0_i32_0 : i32, i32, i32, i32
  }
  func.func @transform_3(%arg0: i32, %arg1: i32) -> (i32, i32) {
    %c0_i32 = arith.constant 0 : i32
    %c0_i32_0 = arith.constant 0 : i32
    %c0_i32_1 = arith.constant 0 : i32
    return %c0_i32, %c0_i32_0 : i32, i32
  }
  func.func @transform_4(%arg0: i32, %arg1: i32) -> (i32, i32) {
    %c0_i32 = arith.constant 0 : i32
    %c0_i32_0 = arith.constant 0 : i32
    %c0_i32_1 = arith.constant 0 : i32
    return %c0_i32, %c0_i32_0 : i32, i32
  }
  func.func @transform_5(%arg0: i32, %arg1: i32) -> (i32, i32) {
    %c0_i32 = arith.constant 0 : i32
    %c0_i32_0 = arith.constant 0 : i32
    %c0_i32_1 = arith.constant 0 : i32
    return %c0_i32, %c0_i32_0 : i32, i32
  }
  func.func @transform_6(%arg0: i32, %arg1: i32) -> (i32, i32, i32, i32) {
    %c0_i32 = arith.constant 0 : i32
    %c0_i32_0 = arith.constant 0 : i32
    %c0_i32_1 = arith.constant 0 : i32
    return %arg0, %arg1, %c0_i32, %c0_i32_0 : i32, i32, i32, i32
  }
  func.func @transform_7(%arg0: i32, %arg1: i32) -> (i32, i32, i32, i32) {
    %c0_i32 = arith.constant 0 : i32
    %c0_i32_0 = arith.constant 0 : i32
    %c0_i32_1 = arith.constant 0 : i32
    return %arg0, %arg1, %c0_i32, %c0_i32_0 : i32, i32, i32, i32
  }
}

module attributes {stable_mosaic.version = 11 : i64} {
  func.func @_finalize_kernel(%arg0: i32, %arg1: i32, %arg2: memref<1x8x16x4xbf16, #tpu.memory_space<vmem>>, %arg3: memref<1x8x16x4xf32, #tpu.memory_space<vmem>>, %arg4: memref<1x4xf32, #tpu.memory_space<vmem>>, %arg5: memref<1x4xf32, #tpu.memory_space<vmem>>, %arg6: memref<1x8x16x4xf32, #tpu.memory_space<vmem>>) attributes {dimension_semantics = [#tpu.dimension_semantics<parallel>, #tpu.dimension_semantics<parallel>], iteration_bounds = array<i64: 2, 2>, scalar_prefetch = 0 : i64, scratch_operands = 0 : i64, tpu.core_type = #tpu.core_type<tc>, window_params = [{transform_indices = @transform_0, window_bounds = array<i64: 1, 8, 16, 4>}, {transform_indices = @transform_1, window_bounds = array<i64: 1, 8, 16, 4>}, {pipeline_mode = #tpu.pipeline_mode<synchronous>, transform_indices = @transform_2, window_bounds = array<i64: 1, 4>}, {pipeline_mode = #tpu.pipeline_mode<synchronous>, transform_indices = @transform_3, window_bounds = array<i64: 1, 4>}, {transform_indices = @transform_4, window_bounds = array<i64: 1, 8, 16, 4>}]} {
    %c0 = arith.constant 0 : index
    %c0_0 = arith.constant 0 : index
    %0 = vector.load %arg4[%c0, %c0_0] : memref<1x4xf32, #tpu.memory_space<vmem>>, vector<1x4xf32>
    %1 = vector.shape_cast %0 : vector<1x4xf32> to vector<1x1x1x4xf32>
    %c0_1 = arith.constant 0 : index
    %c0_2 = arith.constant 0 : index
    %2 = vector.load %arg5[%c0_1, %c0_2] : memref<1x4xf32, #tpu.memory_space<vmem>>, vector<1x4xf32>
    %3 = vector.shape_cast %2 : vector<1x4xf32> to vector<1x1x1x4xf32>
    %c0_3 = arith.constant 0 : index
    %c0_4 = arith.constant 0 : index
    %c0_5 = arith.constant 0 : index
    %c0_6 = arith.constant 0 : index
    %4 = vector.load %arg2[%c0_3, %c0_4, %c0_5, %c0_6] : memref<1x8x16x4xbf16, #tpu.memory_space<vmem>>, vector<1x8x16x4xbf16>
    %5 = arith.extf %4 : vector<1x8x16x4xbf16> to vector<1x8x16x4xf32>
    %c0_7 = arith.constant 0 : index
    %c0_8 = arith.constant 0 : index
    %c0_9 = arith.constant 0 : index
    %c0_10 = arith.constant 0 : index
    %6 = vector.load %arg3[%c0_7, %c0_8, %c0_9, %c0_10] : memref<1x8x16x4xf32, #tpu.memory_space<vmem>>, vector<1x8x16x4xf32>
    %7 = vector.broadcast %1 : vector<1x1x1x4xf32> to vector<1x8x16x4xf32>
    %8 = arith.mulf %5, %7 : vector<1x8x16x4xf32>
    %9 = vector.broadcast %3 : vector<1x1x1x4xf32> to vector<1x8x16x4xf32>
    %10 = arith.addf %8, %9 : vector<1x8x16x4xf32>
    %11 = arith.addf %10, %6 : vector<1x8x16x4xf32>
    %cst = arith.constant 0.000000e+00 : f32
    %12 = vector.broadcast %cst : f32 to vector<1x8x16x4xf32>
    %13 = arith.maximumf %11, %12 : vector<1x8x16x4xf32>
    %c0_11 = arith.constant 0 : index
    %c0_12 = arith.constant 0 : index
    %c0_13 = arith.constant 0 : index
    %c0_14 = arith.constant 0 : index
    %14 = vector.load %arg6[%c0_11, %c0_12, %c0_13, %c0_14] : memref<1x8x16x4xf32, #tpu.memory_space<vmem>>, vector<1x8x16x4xf32>
    tpu.vector_store %arg6[%c0_11, %c0_12, %c0_13, %c0_14], %13 {strides = array<i32>} : memref<1x8x16x4xf32, #tpu.memory_space<vmem>>, vector<1x8x16x4xf32>,
    return
  }
  func.func @transform_0(%arg0: i32, %arg1: i32) -> (i32, i32, i32, i32) {
    %c0_i32 = arith.constant 0 : i32
    %c0_i32_0 = arith.constant 0 : i32
    %c0_i32_1 = arith.constant 0 : i32
    return %arg0, %arg1, %c0_i32, %c0_i32_0 : i32, i32, i32, i32
  }
  func.func @transform_1(%arg0: i32, %arg1: i32) -> (i32, i32, i32, i32) {
    %c0_i32 = arith.constant 0 : i32
    %c0_i32_0 = arith.constant 0 : i32
    %c0_i32_1 = arith.constant 0 : i32
    return %arg0, %arg1, %c0_i32, %c0_i32_0 : i32, i32, i32, i32
  }
  func.func @transform_2(%arg0: i32, %arg1: i32) -> (i32, i32) {
    %c0_i32 = arith.constant 0 : i32
    %c0_i32_0 = arith.constant 0 : i32
    %c0_i32_1 = arith.constant 0 : i32
    return %c0_i32, %c0_i32_0 : i32, i32
  }
  func.func @transform_3(%arg0: i32, %arg1: i32) -> (i32, i32) {
    %c0_i32 = arith.constant 0 : i32
    %c0_i32_0 = arith.constant 0 : i32
    %c0_i32_1 = arith.constant 0 : i32
    return %c0_i32, %c0_i32_0 : i32, i32
  }
  func.func @transform_4(%arg0: i32, %arg1: i32) -> (i32, i32, i32, i32) {
    %c0_i32 = arith.constant 0 : i32
    %c0_i32_0 = arith.constant 0 : i32
    %c0_i32_1 = arith.constant 0 : i32
    return %arg0, %arg1, %c0_i32, %c0_i32_0 : i32, i32, i32, i32
  }
}

module attributes {stable_mosaic.version = 11 : i64} {
  func.func @_conv_stage_kernel(%arg0: i32, %arg1: i32, %arg2: memref<1x8x16x4xbf16, #tpu.memory_space<vmem>>, %arg3: memref<1x1x16x4xbf16, #tpu.memory_space<vmem>>, %arg4: memref<1x1x16x4xbf16, #tpu.memory_space<vmem>>, %arg5: memref<36x4xbf16, #tpu.memory_space<vmem>>, %arg6: memref<1x4xf32, #tpu.memory_space<vmem>>, %arg7: memref<1x4xf32, #tpu.memory_space<vmem>>, %arg8: memref<1x8x16x4xbf16, #tpu.memory_space<vmem>>, %arg9: memref<1x1x2x4xf32, #tpu.memory_space<vmem>>) attributes {dimension_semantics = [#tpu.dimension_semantics<parallel>, #tpu.dimension_semantics<parallel>], iteration_bounds = array<i64: 2, 2>, scalar_prefetch = 0 : i64, scratch_operands = 0 : i64, tpu.core_type = #tpu.core_type<tc>, window_params = [{transform_indices = @transform_0, window_bounds = array<i64: 1, 8, 16, 4>}, {transform_indices = @transform_1, window_bounds = array<i64: 1, 1, 16, 4>}, {transform_indices = @transform_2, window_bounds = array<i64: 1, 1, 16, 4>}, {pipeline_mode = #tpu.pipeline_mode<synchronous>, transform_indices = @transform_3, window_bounds = array<i64: 36, 4>}, {pipeline_mode = #tpu.pipeline_mode<synchronous>, transform_indices = @transform_4, window_bounds = array<i64: 1, 4>}, {pipeline_mode = #tpu.pipeline_mode<synchronous>, transform_indices = @transform_5, window_bounds = array<i64: 1, 4>}, {transform_indices = @transform_6, window_bounds = array<i64: 1, 8, 16, 4>}, {transform_indices = @transform_7, window_bounds = array<i64: 1, 1, 2, 4>}]} {
    %c0 = arith.constant 0 : index
    %c0_0 = arith.constant 0 : index
    %0 = vector.load %arg6[%c0, %c0_0] : memref<1x4xf32, #tpu.memory_space<vmem>>, vector<1x4xf32>
    %1 = vector.shape_cast %0 : vector<1x4xf32> to vector<1x1x4xf32>
    %c0_1 = arith.constant 0 : index
    %c0_2 = arith.constant 0 : index
    %2 = vector.load %arg7[%c0_1, %c0_2] : memref<1x4xf32, #tpu.memory_space<vmem>>, vector<1x4xf32>
    %3 = vector.shape_cast %2 : vector<1x4xf32> to vector<1x1x4xf32>
    %c0_3 = arith.constant 0 : index
    %c0_4 = arith.constant 0 : index
    %c0_5 = arith.constant 0 : index
    %c0_6 = arith.constant 0 : index
    %4 = vector.load %arg2[%c0_3, %c0_4, %c0_5, %c0_6] : memref<1x8x16x4xbf16, #tpu.memory_space<vmem>>, vector<1x8x16x4xbf16>
    %5 = vector.shape_cast %4 : vector<1x8x16x4xbf16> to vector<8x16x4xbf16>
    %6 = arith.extf %5 : vector<8x16x4xbf16> to vector<8x16x4xf32>
    %7 = vector.broadcast %1 : vector<1x1x4xf32> to vector<8x16x4xf32>
    %8 = arith.mulf %6, %7 : vector<8x16x4xf32>
    %9 = vector.broadcast %3 : vector<1x1x4xf32> to vector<8x16x4xf32>
    %10 = arith.addf %8, %9 : vector<8x16x4xf32>
    %cst = arith.constant 0.000000e+00 : f32
    %11 = vector.broadcast %cst : f32 to vector<8x16x4xf32>
    %12 = arith.maximumf %10, %11 : vector<8x16x4xf32>
    %c0_7 = arith.constant 0 : index
    %c0_8 = arith.constant 0 : index
    %c0_9 = arith.constant 0 : index
    %c0_10 = arith.constant 0 : index
    %13 = vector.load %arg3[%c0_7, %c0_8, %c0_9, %c0_10] : memref<1x1x16x4xbf16, #tpu.memory_space<vmem>>, vector<1x1x16x4xbf16>
    %14 = vector.shape_cast %13 : vector<1x1x16x4xbf16> to vector<1x16x4xbf16>
    %15 = arith.extf %14 : vector<1x16x4xbf16> to vector<1x16x4xf32>
    %16 = vector.broadcast %1 : vector<1x1x4xf32> to vector<1x16x4xf32>
    %17 = arith.mulf %15, %16 : vector<1x16x4xf32>
    %18 = vector.broadcast %3 : vector<1x1x4xf32> to vector<1x16x4xf32>
    %19 = arith.addf %17, %18 : vector<1x16x4xf32>
    %cst_11 = arith.constant 0.000000e+00 : f32
    %20 = vector.broadcast %cst_11 : f32 to vector<1x16x4xf32>
    %21 = arith.maximumf %19, %20 : vector<1x16x4xf32>
    %c0_i32 = arith.constant 0 : i32
    %22 = arith.cmpi sgt, %arg1, %c0_i32 : i32
    %23 = arith.extui %22 : i1 to i32
    %24 = arith.sitofp %23 : i32 to f32
    %25 = vector.broadcast %24 : f32 to vector<1x16x4xf32>
    %26 = arith.mulf %21, %25 : vector<1x16x4xf32>
    %c0_12 = arith.constant 0 : index
    %c0_13 = arith.constant 0 : index
    %c0_14 = arith.constant 0 : index
    %c0_15 = arith.constant 0 : index
    %27 = vector.load %arg4[%c0_12, %c0_13, %c0_14, %c0_15] : memref<1x1x16x4xbf16, #tpu.memory_space<vmem>>, vector<1x1x16x4xbf16>
    %28 = vector.shape_cast %27 : vector<1x1x16x4xbf16> to vector<1x16x4xbf16>
    %29 = arith.extf %28 : vector<1x16x4xbf16> to vector<1x16x4xf32>
    %30 = vector.broadcast %1 : vector<1x1x4xf32> to vector<1x16x4xf32>
    %31 = arith.mulf %29, %30 : vector<1x16x4xf32>
    %32 = vector.broadcast %3 : vector<1x1x4xf32> to vector<1x16x4xf32>
    %33 = arith.addf %31, %32 : vector<1x16x4xf32>
    %cst_16 = arith.constant 0.000000e+00 : f32
    %34 = vector.broadcast %cst_16 : f32 to vector<1x16x4xf32>
    %35 = arith.maximumf %33, %34 : vector<1x16x4xf32>
    %c1_i32 = arith.constant 1 : i32
    %36 = arith.cmpi slt, %arg1, %c1_i32 : i32
    %37 = arith.extui %36 : i1 to i32
    %38 = arith.sitofp %37 : i32 to f32
    %39 = vector.broadcast %38 : f32 to vector<1x16x4xf32>
    %40 = arith.mulf %35, %39 : vector<1x16x4xf32>
    %cst_17 = arith.constant 0.000000e+00 : f32
    %41 = vector.broadcast %cst_17 : f32 to vector<10x1x4xf32>
    %42 = tpu.concatenate %26, %12, %40 in 0 : vector<1x16x4xf32>, vector<8x16x4xf32>, vector<1x16x4xf32> -> vector<10x16x4xf32>
    %43 = tpu.concatenate %41, %42, %41 in 1 : vector<10x1x4xf32>, vector<10x16x4xf32>, vector<10x1x4xf32> -> vector<10x18x4xf32>
    %44 = vector.extract_strided_slice %43 {offsets = [0, 0, 0], sizes = [8, 16, 4], strides = [1, 1, 1]} : vector<10x18x4xf32> to vector<8x16x4xf32>
    %45 = vector.extract_strided_slice %43 {offsets = [0, 1, 0], sizes = [8, 16, 4], strides = [1, 1, 1]} : vector<10x18x4xf32> to vector<8x16x4xf32>
    %46 = vector.extract_strided_slice %43 {offsets = [0, 2, 0], sizes = [8, 16, 4], strides = [1, 1, 1]} : vector<10x18x4xf32> to vector<8x16x4xf32>
    %47 = vector.extract_strided_slice %43 {offsets = [1, 0, 0], sizes = [8, 16, 4], strides = [1, 1, 1]} : vector<10x18x4xf32> to vector<8x16x4xf32>
    %48 = vector.extract_strided_slice %43 {offsets = [1, 1, 0], sizes = [8, 16, 4], strides = [1, 1, 1]} : vector<10x18x4xf32> to vector<8x16x4xf32>
    %49 = vector.extract_strided_slice %43 {offsets = [1, 2, 0], sizes = [8, 16, 4], strides = [1, 1, 1]} : vector<10x18x4xf32> to vector<8x16x4xf32>
    %50 = vector.extract_strided_slice %43 {offsets = [2, 0, 0], sizes = [8, 16, 4], strides = [1, 1, 1]} : vector<10x18x4xf32> to vector<8x16x4xf32>
    %51 = vector.extract_strided_slice %43 {offsets = [2, 1, 0], sizes = [8, 16, 4], strides = [1, 1, 1]} : vector<10x18x4xf32> to vector<8x16x4xf32>
    %52 = vector.extract_strided_slice %43 {offsets = [2, 2, 0], sizes = [8, 16, 4], strides = [1, 1, 1]} : vector<10x18x4xf32> to vector<8x16x4xf32>
    %53 = tpu.concatenate %44, %45, %46, %47, %48, %49, %50, %51, %52 in 2 : vector<8x16x4xf32>, vector<8x16x4xf32>, vector<8x16x4xf32>, vector<8x16x4xf32>, vector<8x16x4xf32>, vector<8x16x4xf32>, vector<8x16x4xf32>, vector<8x16x4xf32>, vector<8x16x4xf32> -> vector<8x16x36xf32>
    %54 = vector.shape_cast %53 : vector<8x16x36xf32> to vector<128x36xf32>
    %55 = arith.truncf %54 : vector<128x36xf32> to vector<128x36xbf16>
    %c0_18 = arith.constant 0 : index
    %c0_19 = arith.constant 0 : index
    %56 = vector.load %arg5[%c0_18, %c0_19] : memref<36x4xbf16, #tpu.memory_space<vmem>>, vector<36x4xbf16>
    %cst_20 = arith.constant dense<0.000000e+00> : vector<128x4xf32>
    %57 = tpu.matmul %55, %56, %cst_20 {dimension_numbers = #tpu.dot_dimension_numbers<[1], [0], [0], [1], [0, 0, 1, 1], [], []>} : vector<128x36xbf16>, vector<36x4xbf16>, vector<128x4xf32> -> vector<128x4xf32>
    %cst_21 = arith.constant dense<0.000000e+00> : vector<4xf32>
    %58 = vector.multi_reduction <add>, %57, %cst_21 [0] : vector<128x4xf32> to vector<4xf32>
    %59 = vector.shape_cast %58 : vector<4xf32> to vector<1x4xf32>
    %60 = arith.mulf %57, %57 : vector<128x4xf32>
    %cst_22 = arith.constant dense<0.000000e+00> : vector<4xf32>
    %61 = vector.multi_reduction <add>, %60, %cst_22 [0] : vector<128x4xf32> to vector<4xf32>
    %62 = vector.shape_cast %61 : vector<4xf32> to vector<1x4xf32>
    %63 = tpu.concatenate %59, %62 in 0 : vector<1x4xf32>, vector<1x4xf32> -> vector<2x4xf32>
    %c0_23 = arith.constant 0 : index
    %c0_24 = arith.constant 0 : index
    %c0_25 = arith.constant 0 : index
    %c0_26 = arith.constant 0 : index
    %64 = vector.load %arg9[%c0_23, %c0_24, %c0_25, %c0_26] : memref<1x1x2x4xf32, #tpu.memory_space<vmem>>, vector<1x1x2x4xf32>
    %65 = vector.shape_cast %64 : vector<1x1x2x4xf32> to vector<2x4xf32>
    %66 = vector.shape_cast %63 : vector<2x4xf32> to vector<1x1x2x4xf32>
    tpu.vector_store %arg9[%c0_23, %c0_24, %c0_25, %c0_26], %66 {strides = array<i32>} : memref<1x1x2x4xf32, #tpu.memory_space<vmem>>, vector<1x1x2x4xf32>,
    %67 = vector.shape_cast %57 : vector<128x4xf32> to vector<8x16x4xf32>
    %68 = arith.truncf %67 : vector<8x16x4xf32> to vector<8x16x4xbf16>
    %c0_27 = arith.constant 0 : index
    %c0_28 = arith.constant 0 : index
    %c0_29 = arith.constant 0 : index
    %c0_30 = arith.constant 0 : index
    %69 = vector.load %arg8[%c0_27, %c0_28, %c0_29, %c0_30] : memref<1x8x16x4xbf16, #tpu.memory_space<vmem>>, vector<1x8x16x4xbf16>
    %70 = vector.shape_cast %69 : vector<1x8x16x4xbf16> to vector<8x16x4xbf16>
    %71 = vector.shape_cast %68 : vector<8x16x4xbf16> to vector<1x8x16x4xbf16>
    tpu.vector_store %arg8[%c0_27, %c0_28, %c0_29, %c0_30], %71 {strides = array<i32>} : memref<1x8x16x4xbf16, #tpu.memory_space<vmem>>, vector<1x8x16x4xbf16>,
    return
  }
  func.func @transform_0(%arg0: i32, %arg1: i32) -> (i32, i32, i32, i32) {
    %c0_i32 = arith.constant 0 : i32
    %c0_i32_0 = arith.constant 0 : i32
    %c0_i32_1 = arith.constant 0 : i32
    return %arg0, %arg1, %c0_i32, %c0_i32_0 : i32, i32, i32, i32
  }
  func.func @transform_1(%arg0: i32, %arg1: i32) -> (i32, i32, i32, i32) {
    %c8_i32 = arith.constant 8 : i32
    %0 = arith.muli %arg1, %c8_i32 : i32
    %c1_i32 = arith.constant 1 : i32
    %1 = arith.subi %0, %c1_i32 : i32
    %c0_i32 = arith.constant 0 : i32
    %2 = arith.maxsi %1, %c0_i32 : i32
    %c0_i32_0 = arith.constant 0 : i32
    %c0_i32_1 = arith.constant 0 : i32
    %c0_i32_2 = arith.constant 0 : i32
    return %arg0, %2, %c0_i32_0, %c0_i32_1 : i32, i32, i32, i32
  }
  func.func @transform_2(%arg0: i32, %arg1: i32) -> (i32, i32, i32, i32) {
    %c1_i32 = arith.constant 1 : i32
    %0 = arith.addi %arg1, %c1_i32 : i32
    %c8_i32 = arith.constant 8 : i32
    %1 = arith.muli %0, %c8_i32 : i32
    %c15_i32 = arith.constant 15 : i32
    %2 = arith.minsi %1, %c15_i32 : i32
    %c0_i32 = arith.constant 0 : i32
    %c0_i32_0 = arith.constant 0 : i32
    %c0_i32_1 = arith.constant 0 : i32
    return %arg0, %2, %c0_i32, %c0_i32_0 : i32, i32, i32, i32
  }
  func.func @transform_3(%arg0: i32, %arg1: i32) -> (i32, i32) {
    %c0_i32 = arith.constant 0 : i32
    %c0_i32_0 = arith.constant 0 : i32
    %c0_i32_1 = arith.constant 0 : i32
    return %c0_i32, %c0_i32_0 : i32, i32
  }
  func.func @transform_4(%arg0: i32, %arg1: i32) -> (i32, i32) {
    %c0_i32 = arith.constant 0 : i32
    %c0_i32_0 = arith.constant 0 : i32
    %c0_i32_1 = arith.constant 0 : i32
    return %c0_i32, %c0_i32_0 : i32, i32
  }
  func.func @transform_5(%arg0: i32, %arg1: i32) -> (i32, i32) {
    %c0_i32 = arith.constant 0 : i32
    %c0_i32_0 = arith.constant 0 : i32
    %c0_i32_1 = arith.constant 0 : i32
    return %c0_i32, %c0_i32_0 : i32, i32
  }
  func.func @transform_6(%arg0: i32, %arg1: i32) -> (i32, i32, i32, i32) {
    %c0_i32 = arith.constant 0 : i32
    %c0_i32_0 = arith.constant 0 : i32
    %c0_i32_1 = arith.constant 0 : i32
    return %arg0, %arg1, %c0_i32, %c0_i32_0 : i32, i32, i32, i32
  }
  func.func @transform_7(%arg0: i32, %arg1: i32) -> (i32, i32, i32, i32) {
    %c0_i32 = arith.constant 0 : i32
    %c0_i32_0 = arith.constant 0 : i32
    %c0_i32_1 = arith.constant 0 : i32
    return %arg0, %arg1, %c0_i32, %c0_i32_0 : i32, i32, i32, i32
  }
}

</mosaic_0001>

<bundles_post_ra>
// kernel: basic_block_forward.5
= control target key start
LH: loop header
LB: loop body
LE: loop exit
PB: predicated region body
PF: predicated region fallthrough
CT: control target
= control target key end

     0   :  { %s709_s15 = smov 0   ;;  %s711_s16 = smov 0   ;;  %s875_s0 = inlined_call_operand.vmem [shape: bf16[2,16,16,4], index: 0, kind: input, shape index: {}]   ;;  %s876_s1 = inlined_call_operand.vmem [shape: f32[2,16,16,4], index: 1, kind: input, shape index: {}]   ;;  %s877_s2 = inlined_call_operand.vmem [shape: f32[1,4], index: 2, kind: input, shape index: {}]   ;;  %s878_s3 = inlined_call_operand.vmem [shape: f32[1,4], index: 3, kind: input, shape index: {}]   ;;  %s879_s4 = inlined_call_operand.vmem [shape: f32[2,16,16,4], index: 4, kind: output, shape index: {}]  }
   0x1   :  { %s713_s17 = smov 0   ;;  %s715_s18 = smov 0  }
   0x2   :  { %s717_s19 = smov 0  }
   0x3 LB: > { %s23_s20 = sadd.s32 1, %s674_s17  ;;  %s26_s21 = sadd.s32 1, %s678_s18  ;;  %s682_s19 = sphi %s717_s19, %s14_s19   ;;  %s678_s18 = sphi %s715_s18, %s883_s18   ;;  %s674_s17 = sphi %s713_s17, %s882_s17   ;;  %s670_s16 = sphi %s711_s16, %s881_s16   ;;  %s666_s15 = sphi %s709_s15, %s880_s15  }
   0x4   : > { %p24_p0 = scmp.ge.s32.totalorder %s23_s20, 2  ;;  %p548_p1 = scmp.ge.s32.totalorder %s682_s19, 1 }
   0x5   : > { %p202_p2 = scmp.lt.s32.totalorder %s682_s19, 5 }
   0x6   : > { %s885_s20 = smov (%p24_p0, %s23_s20), 0  ;;  %s887_s21 = smov (!%p24_p0, %s26_s21), %s678_s18 }
   0x7   : > { %p203_p3 = pnand %p548_p1, %p202_p2  ;;  %p28_p4 = scmp.ge.s32.totalorder %s887_s21, 2 }
   0x8   : > { %s549_s22 = sshll.u32 (!%p203_p3), %s666_s15, 3  ;;  %p249_p5 = scmp.lt.s32.totalorder (!%p203_p3), %s670_s16, 1  ;;  %v751_v0 = vld [vmem:[%s877_s2] ss:$0 sm:$0xff] (!%p203_p3)  ;;  %vm407_vm0 = vcmask (!%p203_p3), 31744  }
   0x9   : > { %s889_s21 = smov (%p28_p4, %s887_s21), 0  ;;  %206 = sbr.rel (%p203_p3) target bundleno = 46 (0x2e), region = 36 }
   0xa   : > { %p251_p6 = scmp.lt.s32.totalorder (!%p203_p3), %s549_s22, 15  ;;  %v765_v5 = vld [vmem:[%s878_s3] ss:$0 sm:$0xff] (!%p203_p3) }
  0x10   : > { %s891_s16 = smov (!%p249_p5, %s670_s16), 1  ;;  %s893_s22 = smov (!%p251_p6, %s549_s22), 15 }
  0x11   : > { %s551_s23 = sshll.u32 %s891_s16, 5  ;;  %s550_s24 = sshll.u32 %s893_s22, 1 }
  0x12   : > { %s739_s25 = sadd.s32 %s551_s23, %s550_s24 }
  0x13   : > { %s552_s26 = sshll.u32 %s739_s25, 2  ;;  %s556_s27 = sshll.u32 %s739_s25, 3 }
  0x14   : > { %s746_s30 = scalar_lea.vmem %s875_s0, %s552_s26  ;;  %s759_s9 = scalar_lea.vmem %s876_s1, %s556_s27 }
  0x15   : > { %v566_v1 = vld [vmem:[%s746_s30] sm:$0xff]   ;;  %v597_v4 = vld [vmem:[%s746_s30 + $0x8] sm:$0xff]   ;;  %v598_v8 = vld [vmem:[%s746_s30 + $0x10] sm:$0xff]   ;;  %s796_s14 = scalar_lea.vmem %s879_s4, %s556_s27 }
  0x16   : > { %v567_v2 = vunpack.c.l.bf16 %v566_v1  ;;  %v568_v3 = vunpack.c.h.bf16 %v566_v1  ;;  %v571_v6 = vunpack.c.l.bf16 %v597_v4  ;;  %v572_v7 = vunpack.c.h.bf16 %v597_v4  ;;  %v599_v13 = vld [vmem:[%s746_s30 + $0x18] sm:$0xff]   ;;  %v315_v14 = vld [vmem:[%s759_s9] sm:$0xff]  ;;  %v316_v15 = vld [vmem:[%s759_s9 + $0x8] sm:$0xff] }
  0x17   : > { %v575_v11 = vunpack.c.l.bf16 %v598_v8  ;;  %v576_v12 = vunpack.c.h.bf16 %v598_v8  ;;  %v579_v18 = vunpack.c.l.bf16 %v599_v13  ;;  %v580_v19 = vunpack.c.h.bf16 %v599_v13  ;;  %v317_v22 = vld [vmem:[%s759_s9 + $0x10] sm:$0xff]  ;;  %v318_v23 = vld [vmem:[%s759_s9 + $0x18] sm:$0xff]  ;;  %v319_v28 = vld [vmem:[%s759_s9 + $0x20] sm:$0xff] }
  0x18   : > { %v337_v9 = vmul.f32 %v567_v2, %v751_v0  ;;  %v338_v10 = vmul.f32 %v568_v3, %v751_v0  ;;  %v339_v16 = vmul.f32 %v571_v6, %v751_v0  ;;  %v340_v17 = vmul.f32 %v572_v7, %v751_v0  ;;  %v320_v29 = vld [vmem:[%s759_s9 + $0x28] sm:$0xff]  ;;  %v321_v36 = vld [vmem:[%s759_s9 + $0x30] sm:$0xff]  ;;  %v322_v37 = vld [vmem:[%s759_s9 + $0x38] sm:$0xff] }
  0x19   : > { %v341_v24 = vmul.f32 %v575_v11, %v751_v0  ;;  %v342_v25 = vmul.f32 %v576_v12, %v751_v0  ;;  %v343_v30 = vmul.f32 %v579_v18, %v751_v0  ;;  %v344_v31 = vmul.f32 %v580_v19, %v751_v0  ;;  %v600_v42 = vld [vmem:[%s746_s30 + $0x20] sm:$0xff]   ;;  %v601_v47 = vld [vmem:[%s746_s30 + $0x28] sm:$0xff]   ;;  %v602_v52 = vld [vmem:[%s746_s30 + $0x30] sm:$0xff]  }
  0x1a   : > { %v359_v20 = vadd.f32 %v765_v5, %v337_v9  ;;  %v360_v21 = vadd.f32 %v765_v5, %v338_v10  ;;  %v361_v26 = vadd.f32 %v765_v5, %v339_v16  ;;  %v362_v27 = vadd.f32 %v765_v5, %v340_v17  ;;  %v603_v57 = vld [vmem:[%s746_s30 + $0x38] sm:$0xff]   ;;  %v323_v3 = vld [vmem:[%s759_s9 + $0x40] sm:$0xff]  ;;  %v324_v4 = vld [vmem:[%s759_s9 + $0x48] sm:$0xff] }
  0x1b   : > { %v363_v34 = vadd.f32 %v765_v5, %v341_v24  ;;  %v364_v35 = vadd.f32 %v765_v5, %v342_v25  ;;  %v365_v40 = vadd.f32 %v765_v5, %v343_v30  ;;  %v366_v41 = vadd.f32 %v765_v5, %v344_v31  ;;  %v325_v12 = vld [vmem:[%s759_s9 + $0x50] sm:$0xff]  ;;  %v326_v13 = vld [vmem:[%s759_s9 + $0x58] sm:$0xff]  ;;  %v327_v18 = vld [vmem:[%s759_s9 + $0x60] sm:$0xff] }
  0x1c   : > { %v375_v32 = vadd.f32 %v359_v20, %v315_v14  ;;  %v376_v33 = vadd.f32 %v360_v21, %v316_v15  ;;  %v377_v38 = vadd.f32 %v361_v26, %v317_v22  ;;  %v378_v39 = vadd.f32 %v362_v27, %v318_v23  ;;  %v328_v19 = vld [vmem:[%s759_s9 + $0x68] sm:$0xff]  ;;  %v329_v26 = vld [vmem:[%s759_s9 + $0x70] sm:$0xff]  ;;  %v330_v27 = vld [vmem:[%s759_s9 + $0x78] sm:$0xff] }
  0x1d   : > { %v379_v45 = vadd.f32 %v363_v34, %v319_v28  ;;  %v380_v46 = vadd.f32 %v364_v35, %v320_v29  ;;  %v381_v50 = vadd.f32 %v365_v40, %v321_v36  ;;  %v382_v51 = vadd.f32 %v366_v41, %v322_v37 }
  0x1e   : > { %v391_v43 = vmax.f32 %v375_v32, 0.0  ;;  %v392_v44 = vmax.f32 %v376_v33, 0.0  ;;  %v393_v48 = vmax.f32 %v377_v38, 0.0  ;;  %v394_v49 = vmax.f32 %v378_v39, 0.0 }
  0x1f   : > { %v395_v53 = vmax.f32 %v379_v45, 0.0  ;;  %v396_v54 = vmax.f32 %v380_v46, 0.0  ;;  %v583_v55 = vunpack.c.l.bf16 %v600_v42  ;;  %v584_v56 = vunpack.c.h.bf16 %v600_v42 }
  0x20   : > { %408 = vst.msk [vmem:[%s796_s14] sm:$0xff] %vm407_vm0, %v391_v43  ;;  %409 = vst.msk [vmem:[%s796_s14 + $0x8] sm:$0xff] %vm407_vm0, %v392_v44  ;;  %v397_v58 = vmax.f32 %v381_v50, 0.0  ;;  %v398_v59 = vmax.f32 %v382_v51, 0.0  ;;  %v587_v60 = vunpack.c.l.bf16 %v601_v47  ;;  %v588_v61 = vunpack.c.h.bf16 %v601_v47 }
  0x21   : > { %410 = vst.msk [vmem:[%s796_s14 + $0x10] sm:$0xff] %vm407_vm0, %v393_v48  ;;  %411 = vst.msk [vmem:[%s796_s14 + $0x18] sm:$0xff] %vm407_vm0, %v394_v49  ;;  %v345_v62 = vmul.f32 %v583_v55, %v751_v0  ;;  %v346_v63 = vmul.f32 %v584_v56, %v751_v0  ;;  %v591_v1 = vunpack.c.l.bf16 %v602_v52  ;;  %v592_v2 = vunpack.c.h.bf16 %v602_v52 }
  0x22   : > { %412 = vst.msk [vmem:[%s796_s14 + $0x20] sm:$0xff] %vm407_vm0, %v395_v53  ;;  %413 = vst.msk [vmem:[%s796_s14 + $0x28] sm:$0xff] %vm407_vm0, %v396_v54  ;;  %v347_v6 = vmul.f32 %v587_v60, %v751_v0  ;;  %v348_v7 = vmul.f32 %v588_v61, %v751_v0  ;;  %v595_v8 = vunpack.c.l.bf16 %v603_v57  ;;  %v596_v9 = vunpack.c.h.bf16 %v603_v57 }
  0x23   : > { %414 = vst.msk [vmem:[%s796_s14 + $0x30] sm:$0xff] %vm407_vm0, %v397_v58  ;;  %415 = vst.msk [vmem:[%s796_s14 + $0x38] sm:$0xff] %vm407_vm0, %v398_v59  ;;  %v367_v10 = vadd.f32 %v765_v5, %v345_v62  ;;  %v368_v11 = vadd.f32 %v765_v5, %v346_v63  ;;  %v349_v14 = vmul.f32 %v591_v1, %v751_v0 }
  0x24   : > { %v350_v15 = vmul.f32 %v592_v2, %v751_v0  ;;  %v369_v16 = vadd.f32 %v765_v5, %v347_v6  ;;  %v370_v17 = vadd.f32 %v765_v5, %v348_v7  ;;  %v351_v20 = vmul.f32 %v595_v8, %v751_v0 }
  0x25   : > { %v352_v21 = vmul.f32 %v596_v9, %v751_v0  ;;  %v383_v22 = vadd.f32 %v367_v10, %v323_v3  ;;  %v384_v23 = vadd.f32 %v368_v11, %v324_v4  ;;  %v371_v24 = vadd.f32 %v765_v5, %v349_v14 }
  0x26   : > { %v372_v25 = vadd.f32 %v765_v5, %v350_v15  ;;  %v385_v28 = vadd.f32 %v369_v16, %v325_v12  ;;  %v386_v29 = vadd.f32 %v370_v17, %v326_v13  ;;  %v373_v30 = vadd.f32 %v765_v5, %v351_v20 }
  0x27   : > { %v374_v31 = vadd.f32 %v765_v5, %v352_v21  ;;  %v399_v32 = vmax.f32 %v383_v22, 0.0  ;;  %v400_v0 = vmax.f32 %v384_v23, 0.0  ;;  %v387_v33 = vadd.f32 %v371_v24, %v327_v18 }
  0x28   : > { %v388_v34 = vadd.f32 %v372_v25, %v328_v19  ;;  %v401_v35 = vmax.f32 %v385_v28, 0.0  ;;  %v402_v36 = vmax.f32 %v386_v29, 0.0  ;;  %v389_v37 = vadd.f32 %v373_v30, %v329_v26 }
  0x29   : > { %v390_v38 = vadd.f32 %v374_v31, %v330_v27  ;;  %416 = vst.msk [vmem:[%s796_s14 + $0x40] sm:$0xff] %vm407_vm0, %v399_v32  ;;  %417 = vst.msk [vmem:[%s796_s14 + $0x48] sm:$0xff] %vm407_vm0, %v400_v0  ;;  %v403_v39 = vmax.f32 %v387_v33, 0.0 }
  0x2a   : > { %v404_v40 = vmax.f32 %v388_v34, 0.0  ;;  %418 = vst.msk [vmem:[%s796_s14 + $0x50] sm:$0xff] %vm407_vm0, %v401_v35  ;;  %419 = vst.msk [vmem:[%s796_s14 + $0x58] sm:$0xff] %vm407_vm0, %v402_v36  ;;  %v405_v5 = vmax.f32 %v389_v37, 0.0 }
  0x2b   : > { %v406_v41 = vmax.f32 %v390_v38, 0.0  ;;  %420 = vst.msk [vmem:[%s796_s14 + $0x60] sm:$0xff] %vm407_vm0, %v403_v39 }
  0x2c   : > { %421 = vst.msk [vmem:[%s796_s14 + $0x68] sm:$0xff] %vm407_vm0, %v404_v40  ;;  %422 = vst.msk [vmem:[%s796_s14 + $0x70] sm:$0xff] %vm407_vm0, %v405_v5 }
  0x2d   : > { %423 = vst.msk [vmem:[%s796_s14 + $0x78] sm:$0xff] %vm407_vm0, %v406_v41 }
  0x2e PF: > { %s14_s19 = sadd.s32 1, %s682_s19   ;;  %s880_s15 = smov %s674_s17 }
  0x2f   : > { %p11_p7 = scmp.ge.s32.totalorder %s14_s19, 6   ;;  %s881_s16 = smov %s678_s18 }
  0x30   : > { %s882_s17 = smov %s885_s20  ;;  %s883_s18 = smov %s889_s21 }
  0x31   :  { %13 = sbr.rel (!%p11_p7) target bundleno = 3 (0x3), region = 69 }

// kernel: basic_block_forward.3
= control target key start
LH: loop header
LB: loop body
LE: loop exit
PB: predicated region body
PF: predicated region fallthrough
CT: control target
= control target key end

     0   :  { %s2349_s24 = smov 0   ;;  %s2351_s25 = smov 0   ;;  %s3061_s0 = inlined_call_operand.vmem [shape: f32[2,16,16,4], index: 0, kind: input, shape index: {}, may-alias: {0,1,2}]   ;;  %s3062_s1 = inlined_call_operand.vmem [shape: f32[2,16,16,4], index: 1, kind: input, shape index: {}, may-alias: {0,1,2}]   ;;  %s3063_s2 = inlined_call_operand.vmem [shape: f32[2,16,16,4], index: 2, kind: input, shape index: {}, may-alias: {0,1,2}]   ;;  %s3064_s3 = inlined_call_operand.vmem [shape: bf16[36,4], index: 3, kind: input, shape index: {}]   ;;  %s3065_s4 = inlined_call_operand.vmem [shape: f32[1,4], index: 4, kind: input, shape index: {}, may-alias: {4,5}]   ;;  %s3066_s5 = inlined_call_operand.vmem [shape: f32[1,4], index: 5, kind: input, shape index: {}, may-alias: {4,5}]   ;;  %s3067_s6 = inlined_call_operand.vmem [shape: bf16[2,16,16,4], index: 6, kind: output, shape index: {0}]   ;;  %s3068_s7 = inlined_call_operand.vmem [shape: f32[2,2,2,4], index: 7, kind: output, shape index: {1}]  }
   0x1   :  { %s2353_s26 = smov 0   ;;  %s2355_s27 = smov 0  }
   0x2   :  { %s2357_s28 = smov 0  }
   0x3 LB: > { %s27_s4 = sadd.s32 1, %s2291_s26  ;;  %s30_s5 = sadd.s32 1, %s2295_s27  ;;  %s2299_s28 = sphi %s2357_s28, %s18_s28   ;;  %s2295_s27 = sphi %s2355_s27, %s3073_s27   ;;  %s2291_s26 = sphi %s2353_s26, %s3072_s26   ;;  %s2287_s25 = sphi %s2351_s25, %s3071_s25   ;;  %s2283_s24 = sphi %s2349_s24, %s3070_s24  }
   0x4   : > { %p28_p0 = scmp.ge.s32.totalorder %s27_s4, 2  ;;  %p1768_p1 = scmp.ge.s32.totalorder %s2299_s28, 1 }
   0x5   : > { %p328_p2 = scmp.lt.s32.totalorder %s2299_s28, 5 }
   0x6   : > { %s3075_s4 = smov (%p28_p0, %s27_s4), 0  ;;  %s3077_s5 = smov (!%p28_p0, %s30_s5), %s2295_s27 }
   0x7   : > { %p329_p3 = pnand %p1768_p1, %p328_p2  ;;  %p32_p4 = scmp.ge.s32.totalorder %s3077_s5, 2 }
   0x8   : > { %s2382_s29 = sshll.u32 (!%p329_p3), %s2283_s24, 3  ;;  %p405_p5 = scmp.lt.s32.totalorder (!%p329_p3), %s2287_s25, 1  ;;  %vm521_vm0 = vcmask (!%p329_p3), 1040384   ;;  %vm705_vm1 = vcmask (!%p329_p3), 1045504   ;;  %vm616_vm2 = vcmask (!%p329_p3), 1046528   ;;  %v2258_v59 = vld [vmem:[%s3064_s3] sm:$0xff] (!%p329_p3)  }
   0x9   : > { %s3079_s5 = smov (%p32_p4, %s3077_s5), 0  ;;  %332 = sbr.rel (%p329_p3) target bundleno = 513 (0x201), region = 44 }
   0xa   : > { %p407_p6 = scmp.lt.s32.totalorder (!%p329_p3), %s2382_s29, 15  ;;  %s2404_s15 = sadd.s32 (!%p329_p3), 4294967295, %s2382_s29  ;;  %1860 = vmatprep.subr.bf16.mxu0 (!%p329_p3), %v2258_v59  ;;  %1882 = vmatprep.subr.bf16.mxu1 (!%p329_p3), %v2258_v59  ;;  %vm1295_vm3 = vcmask (!%p329_p3), 1041408   ;;  %vm1106_vm4 = vcmask (!%p329_p3), 31744   ;;  %vm1123_vm5 = vcmask (!%p329_p3), 64512   ;;  %vm1140_vm6 = vcmask (!%p329_p3), 97280  }
   0xb   : > { %p487_p7 = scmp.gt.s32.totalorder (!%p329_p3), %s2283_s24, 0  ;;  %p417_p8 = scmp.gt.s32.totalorder (!%p329_p3), %s2404_s15, 0  ;;  %1861 = vmatpush3.bf16.msra.mxu0 (!%p329_p3), %v2258_v59  ;;  %1885 = vmatpush3.bf16.msra.mxu1 (!%p329_p3), %v2258_v59  ;;  %vm1157_vm7 = vcmask (!%p329_p3), 130048   ;;  %vm1174_vm8 = vcmask (!%p329_p3), 162816   ;;  %vm1191_vm9 = vcmask (!%p329_p3), 195584   ;;  %vm1208_vm10 = vcmask (!%p329_p3), 228352  }
   0xc   : > { %p1775_p9 = scmp.lt.s32.totalorder (!%p329_p3), %s2404_s15, 15  ;;  %s2301_s18 = smov (!%p329_p3), 12   ;;  %vm1225_vm11 = vcmask (!%p329_p3), 261120   ;;  %vm1270_vm12 = vcmask (!%p329_p3), 293888   ;;  %vm1553_vm13 = vcmask (!%p329_p3), 27648   ;;  %vm1487_vm14 = vcmask (!%p329_p3), 25600  }
   0xd   : > { %s1832_s20 = sadd.s32 (!%p329_p3), 8, %s2382_s29  ;;  %p462_p11 = scmp.lt.s32.totalorder (!%p329_p3), %s2283_s24, 1 }
   0xe   : > { %p2459_p10 = scmp.lt.s32.totalorder (!%p329_p3), %s1832_s20, 15  ;;  %s2306_s12 = smov (!%p329_p3), 24  }
  0x10   : > { %s3081_s25 = smov (!%p405_p5, %s2287_s25), 1  ;;  %s3085_s20 = smov (!%p2459_p10, %s1832_s20), 15 }
  0x11   : > { %s408_s30 = scalar_select %p407_p6, %s2382_s29, 15 }
  0x12   : > { %s2389_s8 = sshll.u32 %s3081_s25, 5  ;;  %s2302_s29 = smov 8  }
  0x13   : > { %s1770_s9 = sshll.u32 %s408_s30, 1  ;;  %s3087_s20 = smov (!%p2459_p10, %s3085_s20), 15 }
  0x14   : > { %s2392_s10 = sadd.s32 %s2389_s8, %s1770_s9  ;;  %s2303_s9 = smov 4  }
  0x15   : > { %s1772_s11 = sshll.u32 %s2392_s10, 3 }
  0x16   : > { %s2398_s14 = scalar_lea.vmem %s3061_s0, %s1772_s11 }
  0x17   : > { %v471_v0 = vld [vmem:[%s2398_s14 + $0x10] sm:$0xff]  ;;  %v472_v1 = vld [vmem:[%s2398_s14 + $0x18] sm:$0xff]  ;;  %v469_v2 = vld [vmem:[%s2398_s14] sm:$0xff]  ;;  %s2426_s16 = scalar_select %p487_p7, 1, 0 }
  0x18   : > { %v528_v3 = vrot.slane %v471_v0, 7  ;;  %v529_v4 = vrot.slane %v472_v1, 7  ;;  %v470_v5 = vld [vmem:[%s2398_s14 + $0x8] sm:$0xff]  ;;  %v525_v6 = vrot.slane %v469_v2, 7  ;;  %v2409_v7 = vld [vmem:[%s2398_s14 + $0x20] sm:$0xff]  ;;  %s418_s17 = scalar_select %p417_p8, %s2404_s15, 0 }
  0x19   : > { %v526_v8 = vrot.slane %v470_v5, 7  ;;  %v531_v9 = vrot.slane %v2409_v7, 7  ;;  %v474_v26 = vld [vmem:[%s2398_s14 + $0x28] sm:$0xff]  ;;  %s489_s19 = scvt.s32.f32 %s2426_s16  ;;  %s1794_s15 = sshll.u32 %s3081_s25, 1  ;;  %v476_v7 = vld [vmem:[%s2398_s14 + $0x38] sm:$0xff] }
  0x1a   : > { %v2415_v10 = vsel %vm521_vm0, %v528_v3, %v529_v4  ;;  %v2418_v11 = vsel %vm521_vm0, 0.0, %v528_v3  ;;  %v2421_v12 = vsel %vm521_vm0, 0.0, %v525_v6  ;;  %v592_v13 = vsel %vm521_vm0, %v529_v4, 0.0  ;;  %s3083_s17 = smov (!%p1775_p9, %s418_s17), 15  ;;  %v475_v4 = vld [vmem:[%s2398_s14 + $0x30] sm:$0xff]  ;;  %v482_v59 = vld [vmem:[%s2398_s14 + $0x68] sm:$0xff] }
  0x1b   : > { %v2430_v14 = vpack.i.bf16 %v2415_v10, %v2418_v11  ;;  %v2433_v15 = vsel %vm521_vm0, %v525_v6, %v526_v8  ;;  %v591_v16 = vsel %vm521_vm0, %v526_v8, 0.0  ;;  %v711_v17 = vrot.slane %v2421_v12, 2  ;;  %s1780_s21 = sshll.u32 %s3083_s17, 1  ;;  %s2304_s17 = smov 16  }
  0x1c   : > { %v1938_v18 = vpack.i.bf16 %v2433_v15, %v2421_v12  ;;  %v712_v19 = vrot.slane %v2433_v15, 2  ;;  %v714_v20 = vrot.slane %v591_v16, 2  ;;  %v622_v21 = vrot.slane %v2421_v12, 1  ;;  %s425_s23 = sadd.s32 %s1780_s21, %s2389_s8 }
  0x1d   : > { %1944 = vrot.lane.b32.xlu1 %v2430_v14, %s2301_s18  ;;  %v623_v22 = vrot.slane %v2433_v15, 1  ;;  %v625_v23 = vrot.slane %v591_v16, 1  ;;  %v627_v24 = vrot.slane %v2418_v11, 1  ;;  %v628_v25 = vrot.slane %v2415_v10, 1  ;;  %s1782_s30 = sshll.u32 %s425_s23, 3 }
  0x1e   : > { %1939 = vrot.lane.b32.xlu0 %v1938_v18, %s2301_s18  ;;  %v713_v27 = vsel %vm705_vm1, %v711_v17, %v712_v19  ;;  %v715_v28 = vsel %vm705_vm1, %v712_v19, %v714_v20  ;;  %v630_v29 = vrot.slane %v592_v13, 1  ;;  %v716_v30 = vrot.slane %v2418_v11, 2  ;;  %s427_s13 = scalar_lea.vmem %s3062_s1, %s1782_s30 }
  0x1f   : > { %v1953_v31 = vpack.i.bf16 %v715_v28, %v713_v27  ;;  %v624_v32 = vsel %vm616_vm2, %v622_v21, %v623_v22  ;;  %v626_v33 = vsel %vm616_vm2, %v623_v22, %v625_v23  ;;  %v629_v34 = vsel %vm616_vm2, %v627_v24, %v628_v25  ;;  %v485_v44 = vld [vmem:[%s427_s13] sm:$0xff]  ;;  %v486_v45 = vld [vmem:[%s427_s13 + $0x8] sm:$0xff]  ;;  %s463_s16 = scalar_select %p462_p11, %s2283_s24, 1 }
  0x20   : > { %v1948_v35 = vpack.i.bf16 %v626_v33, %v624_v32  ;;  %v631_v36 = vsel %vm616_vm2, %v628_v25, %v630_v29  ;;  %v717_v37 = vrot.slane %v2415_v10, 2  ;;  %v532_v38 = vrot.slane %v474_v26, 7  ;;  %v477_v26 = vld [vmem:[%s2398_s14 + $0x40] sm:$0xff]  ;;  %v479_v33 = vld [vmem:[%s2398_s14 + $0x50] sm:$0xff]  ;;  %s2307_s13 = smov 28  }
  0x21   : > { %1954 = vrot.lane.b32.xlu1 %v1953_v31, %s2302_s29  ;;  %v2467_v39 = vpack.i.bf16 %v631_v36, %v629_v34  ;;  %v719_v40 = vrot.slane %v592_v13, 2  ;;  %v490_v42 = vstv %s489_s19  ;;  %v2483_v47 = vsel %vm521_vm0, 0.0, %v531_v9  ;;  %s2495_s25 = sadd.s32 %s1794_s15, %s463_s16  ;;  %s2502_s19 = sshll.u32 %s3087_s20, 1  ;;  %v2259_v13 = vld [vmem:[%s3064_s3 + $0x8] sm:$0xff]  }
  0x22   : > { %1949 = vrot.lane.b32.xlu0 %v1948_v35, %s2303_s9  ;;  %v718_v41 = vsel %vm705_vm1, %v716_v30, %v717_v37  ;;  %v2480_v46 = vsel %vm521_vm0, %v531_v9, %v532_v38  ;;  %v491_v48 = vmul.f32 %v490_v42, %v485_v44  ;;  %v492_v49 = vmul.f32 %v490_v42, %v486_v45  ;;  %s442_s21 = sadd.s32 %s2502_s19, %s2389_s8  ;;  %s2305_s20 = smov 20  }
  0x23   : > { %v720_v43 = vsel %vm705_vm1, %v717_v37, %v719_v40  ;;  %v2499_v53 = vpack.i.bf16 %v2480_v46, %v2483_v47  ;;  %v593_v54 = vsel %vm521_vm0, %v532_v38, 0.0  ;;  %v632_v58 = vrot.slane %v2483_v47, 1  ;;  %1862 = vmatprep.subr.bf16.mxu0 %v2259_v13  ;;  %1883 = vmatprep.subr.bf16.mxu1 %v2259_v13  ;;  %v2564_v38 = vld [vmem:[%s2398_s14 + $0x48] sm:$0xff]  ;;  %v480_v40 = vld [vmem:[%s2398_s14 + $0x58] sm:$0xff]  ;;  %s2308_s15 = smov 32   ;;  %s1789_s22 = sshll.u32 %s442_s21, 3 }
  0x24   : > { %v2490_v50 = vpack.i.bf16 %v720_v43, %v718_v41  ;;  %v522_v51 = vrot.slane %v491_v48, 7  ;;  %v523_v52 = vrot.slane %v492_v49, 7  ;;  %v633_v2 = vrot.slane %v2480_v46, 1  ;;  %1863 = vmatpush3.bf16.msra.mxu0 %v2259_v13  ;;  %1886 = vmatpush3.bf16.msra.mxu1 %v2259_v13  ;;  %s2623_s16 = scalar_select %p462_p11, 1, 0 }
  0x25   : > { %1964 = vrot.lane.b32.xlu1 %v2467_v39, %s2304_s17  ;;  %v635_v3 = vrot.slane %v593_v54, 1  ;;  %v534_v17 = vrot.slane %v475_v4, 7  ;;  %v535_v21 = vrot.slane %v476_v7, 7  ;;  %v721_v22 = vrot.slane %v2483_v47, 2  ;;  %s444_s19 = scalar_lea.vmem %s3063_s2, %s1789_s22 }
  0x26   : > { %1959 = vrot.lane.b32.xlu0 %v1948_v35, %s2304_s17  ;;  %v2505_v55 = vsel %vm521_vm0, %v522_v51, %v523_v52  ;;  %v2508_v56 = vsel %vm521_vm0, 0.0, %v522_v51  ;;  %v590_v57 = vsel %vm521_vm0, %v523_v52, 0.0  ;;  %v634_v19 = vsel %vm616_vm2, %v632_v58, %v633_v2  ;;  %v481_v58 = vld [vmem:[%s2398_s14 + $0x60] sm:$0xff]  ;;  %s497_s21 = scvt.s32.f32 %s2623_s16 }
  0x27   : > { %v706_v60 = vrot.slane %v2508_v56, 2  ;;  %v707_v61 = vrot.slane %v2505_v55, 2  ;;  %v709_v62 = vrot.slane %v590_v57, 2  ;;  %v617_v63 = vrot.slane %v2508_v56, 1 }
  0x28   : > { %v618_v0 = vrot.slane %v2505_v55, 1  ;;  %v620_v1 = vrot.slane %v590_v57, 1  ;;  %v636_v20 = vsel %vm616_vm2, %v633_v2, %v635_v3  ;;  %v722_v23 = vrot.slane %v2480_v46, 2 }
  0x29   : > { %1979 = vrot.lane.b32.xlu1 %v2490_v50, %s2305_s20  ;;  %v708_v5 = vsel %vm705_vm1, %v706_v60, %v707_v61  ;;  %v710_v6 = vsel %vm705_vm1, %v707_v61, %v709_v62  ;;  %v724_v24 = vrot.slane %v593_v54, 2  ;;  %v2543_v25 = vpack.i.bf16 %v636_v20, %v634_v19 }
  0x2a   : > { %1969 = vrot.lane.b32.xlu0 %v1953_v31, %s2305_s20  ;;  %v619_v8 = vsel %vm616_vm2, %v617_v63, %v618_v0  ;;  %v621_v9 = vsel %vm616_vm2, %v618_v0, %v620_v1  ;;  %v1998_v16 = vpack.i.bf16 %v710_v6, %v708_v5  ;;  %v2551_v27 = vsel %vm521_vm0, %v534_v17, %v535_v21 }
  0x2b   : > { %v1988_v18 = vpack.i.bf16 %v621_v9, %v619_v8  ;;  %v594_v28 = vsel %vm521_vm0, %v535_v21, 0.0  ;;  %v723_v29 = vsel %vm705_vm1, %v721_v22, %v722_v23  ;;  %v725_v30 = vsel %vm705_vm1, %v722_v23, %v724_v24  ;;  %v483_v24 = vld [vmem:[%s2398_s14 + $0x70] sm:$0xff] }
  0x2c   : > { %v537_v32 = vrot.slane %v477_v26, 7  ;;  %v638_v34 = vrot.slane %v2551_v27, 1  ;;  %v640_v35 = vrot.slane %v594_v28, 1  ;;  %v727_v37 = vrot.slane %v2551_v27, 2 }
  0x2d   : > { %1984 = vrot.lane.b32.xlu1 %v2499_v53, %s2306_s12  ;;  %v2569_v41 = vpack.i.bf16 %v725_v30, %v723_v29  ;;  %v540_v43 = vrot.slane %v479_v33, 7  ;;  %v729_v44 = vrot.slane %v594_v28, 2  ;;  %v538_v45 = vrot.slane %v2564_v38, 7 }
  0x2e   : > { %1974 = vrot.lane.b32.xlu0 %v2430_v14, %s2306_s12  ;;  %v2546_v14 = vsel %vm521_vm0, 0.0, %v534_v17  ;;  %v2577_v48 = vsel %vm521_vm0, 0.0, %v537_v32  ;;  %v541_v49 = vrot.slane %v480_v40, 7  ;;  %v641_v52 = vsel %vm616_vm2, %v638_v34, %v640_v35 }
  0x2f   : > { %v637_v31 = vrot.slane %v2546_v14, 1  ;;  %v726_v36 = vrot.slane %v2546_v14, 2  ;;  %v2573_v42 = vpack.i.bf16 %v2551_v27, %v2546_v14  ;;  %v2587_v57 = vsel %vm521_vm0, 0.0, %v540_v43 }
  0x30   : > { %v2594_v60 = vsel %vm521_vm0, %v540_v43, %v541_v49  ;;  %v647_v61 = vrot.slane %v2587_v57, 1  ;;  %v736_v62 = vrot.slane %v2587_v57, 2  ;;  %v642_v63 = vrot.slane %v2577_v48, 1 }
  0x31   : > { %1999 = vrot.lane.b32.xlu1 %v1998_v16, %s2302_s29  ;;  %v639_v51 = vsel %vm616_vm2, %v637_v31, %v638_v34  ;;  %v2584_v54 = vsel %vm705_vm1, %v726_v36, %v727_v37  ;;  %v648_v0 = vrot.slane %v2594_v60, 1  ;;  %v737_v2 = vrot.slane %v2594_v60, 2 }
  0x32   : > { %1989 = vrot.lane.b32.xlu0 %v1988_v18, %s2303_s9  ;;  %v2602_v3 = vpack.i.bf16 %v641_v52, %v639_v51  ;;  %v543_v5 = vrot.slane %v481_v58, 7  ;;  %v544_v6 = vrot.slane %v482_v59, 7  ;;  %v730_v7 = vsel %vm705_vm1, %v727_v37, %v729_v44  ;;  %v493_v52 = vld [vmem:[%s444_s19] sm:$0xff]  ;;  %v494_v58 = vld [vmem:[%s444_s19 + $0x8] sm:$0xff] }
  0x33   : > { %v649_v8 = vsel %vm616_vm2, %v647_v61, %v648_v0  ;;  %v738_v13 = vsel %vm705_vm1, %v736_v62, %v737_v2  ;;  %v2626_v20 = vsel %vm521_vm0, %v537_v32, %v538_v45  ;;  %v484_v32 = vld [vmem:[%s2398_s14 + $0x78] sm:$0xff]  ;;  %v546_v35 = vrot.slane %v483_v24, 7 }
  0x34   : > { %v2616_v18 = vsel %vm521_vm0, %v543_v5, %v544_v6  ;;  %v2619_v19 = vsel %vm521_vm0, 0.0, %v543_v5  ;;  %v597_v22 = vsel %vm521_vm0, %v544_v6, 0.0  ;;  %v547_v43 = vrot.slane %v484_v32, 7 }
  0x35   : > { %2004 = vrot.lane.b32.xlu1 %v2543_v25, %s2307_s13  ;;  %v652_v23 = vrot.slane %v2619_v19, 1  ;;  %v653_v26 = vrot.slane %v2616_v18, 1  ;;  %v655_v28 = vrot.slane %v597_v22, 1  ;;  %v741_v29 = vrot.slane %v2619_v19, 2 }
  0x36   : > { %1994 = vrot.lane.b32.xlu0 %v2467_v39, %s2307_s13  ;;  %v742_v30 = vrot.slane %v2616_v18, 2  ;;  %v744_v31 = vrot.slane %v597_v22, 2  ;;  %v2662_v44 = vsel %vm521_vm0, %v538_v45, 0.0  ;;  %v2669_v59 = vsel %vm521_vm0, %v546_v35, %v547_v43 }
  0x37   : > { %v654_v33 = vsel %vm616_vm2, %v652_v23, %v653_v26  ;;  %v656_v34 = vsel %vm616_vm2, %v653_v26, %v655_v28  ;;  %v498_v61 = vstv %s497_s21  ;;  %v2673_v62 = vpack.i.bf16 %v730_v7, %v2584_v54 }
  0x38   : > { %v2650_v36 = vpack.i.bf16 %v656_v34, %v654_v33  ;;  %v743_v37 = vsel %vm705_vm1, %v741_v29, %v742_v30  ;;  %v745_v38 = vsel %vm705_vm1, %v742_v30, %v744_v31  ;;  %v845_v45 = vrot.slane %v2669_v59, 1 }
  0x39   : > { %2014 = vrot.lane.b32.xlu1 %v2467_v39, %s2303_s9  ;;  %v596_v39 = vsel %vm521_vm0, %v541_v49, 0.0  ;;  %v2654_v40 = vpack.i.bf16 %v745_v38, %v743_v37  ;;  %v499_v5 = vmul.f32 %v498_v61, %v493_v52  ;;  %v500_v6 = vmul.f32 %v498_v61, %v494_v58 }
  0x3a   : > { %2009 = vrot.lane.b32.xlu0 %v2490_v50, %s2308_s15  ;;  %v650_v1 = vrot.slane %v596_v39, 1  ;;  %v739_v4 = vrot.slane %v596_v39, 2  ;;  %v598_v39 = vsel %vm521_vm0, %v547_v43, 0.0  ;;  %v2073_v24 = vpack.i.bf16 %v2626_v20, %v2577_v48 }
  0x3b   : > { %v550_v22 = vrot.slane %v500_v6, 7  ;;  %v731_v61 = vrot.slane %v2577_v48, 2 }
  0x3c   : > { %v651_v9 = vsel %vm616_vm2, %v648_v0, %v650_v1  ;;  %v740_v17 = vsel %vm705_vm1, %v737_v2, %v739_v4  ;;  %v847_v0 = vrot.slane %v598_v39, 1  ;;  %v898_v1 = vrot.slane %v2669_v59, 2 }
  0x3d   : > { %2024 = vrot.lane.b32.xlu1 %v2543_v25, %s2303_s9  ;;  %v2612_v16 = vpack.i.bf16 %v651_v9, %v649_v8  ;;  %v2628_v21 = vpack.i.bf16 %v740_v17, %v738_v13  ;;  %v643_v2 = vrot.slane %v2626_v20, 1  ;;  %v900_v4 = vrot.slane %v598_v39, 2 }
  0x3e   : > { %2019 = vrot.lane.b32.xlu0 %v2569_v41, %s2308_s15  ;;  %v848_v54 = vsel %vm616_vm2, %v845_v45, %v847_v0  ;;  %v549_v17 = vrot.slane %v499_v5, 7  ;;  %v599_v29 = vsel %vm521_vm0, %v550_v22, 0.0  ;;  %v734_v0 = vrot.slane %v2662_v44, 2 }
  0x3f   : > { %v901_v13 = vsel %vm705_vm1, %v898_v1, %v900_v4  ;;  %v644_v30 = vsel %vm616_vm2, %v642_v63, %v643_v2  ;;  %v1003_v37 = vrot.slane %v599_v29, 1  ;;  %v1056_v38 = vrot.slane %v599_v29, 2 }
  0x40   : > { %v2694_v26 = vsel %vm521_vm0, %v549_v17, %v550_v22  ;;  %v2697_v28 = vsel %vm521_vm0, 0.0, %v549_v17 }
  0x41   : > { %2034 = vrot.lane.b32.xlu1 %v2569_v41, %s2302_s29  ;;  %v1000_v31 = vrot.slane %v2697_v28, 1  ;;  %v1053_v32 = vrot.slane %v2697_v28, 2  ;;  %v1001_v33 = vrot.slane %v2694_v26, 1 }
  0x42   : > { %2029 = vrot.lane.b32.xlu0 %v2490_v50, %s2302_s29  ;;  %v2657_v50 = vsel %vm521_vm0, 0.0, %v546_v35  ;;  %v1054_v35 = vrot.slane %v2694_v26, 2 }
  0x43   : > { %v844_v49 = vrot.slane %v2657_v50, 1  ;;  %v897_v51 = vrot.slane %v2657_v50, 2  ;;  %v1002_v43 = vsel %vm616_vm2, %v1000_v31, %v1001_v33  ;;  %v1004_v63 = vsel %vm616_vm2, %v1001_v33, %v1003_v37 }
  0x44   : > { %v2243_v52 = vpack.i.bf16 %v1004_v63, %v1002_v43 }
  0x45   : > { %2044 = vrot.lane.b32.xlu1 %v2573_v42, %s2301_s18  ;;  %v846_v8 = vsel %vm616_vm2, %v844_v49, %v845_v45  ;;  %v899_v7 = vsel %vm705_vm1, %v897_v51, %v898_v1  ;;  %v1055_v49 = vsel %vm705_vm1, %v1053_v32, %v1054_v35  ;;  %v1057_v51 = vsel %vm705_vm1, %v1054_v35, %v1056_v38 }
  0x46   : > { %2039 = vrot.lane.b32.xlu0 %v2499_v53, %s2301_s18  ;;  %v645_v53 = vrot.slane %v2662_v44, 1  ;;  %v2686_v9 = vpack.i.bf16 %v848_v54, %v846_v8  ;;  %v2689_v23 = vpack.i.bf16 %v901_v13, %v899_v7  ;;  %v2253_v58 = vpack.i.bf16 %v1057_v51, %v1055_v49 }
  0x47   : > { %v732_v45 = vrot.slane %v2626_v20, 2  ;;  %v2123_v44 = vpack.i.bf16 %v2594_v60, %v2587_v57 }
  0x48   : > { %v646_v34 = vsel %vm616_vm2, %v643_v2, %v645_v53 }
  0x49   : > { %2054 = vrot.lane.b32.xlu1 %v2602_v3, %s2304_s17  ;;  %v733_v1 = vsel %vm705_vm1, %v731_v61, %v732_v45  ;;  %v735_v2 = vsel %vm705_vm1, %v732_v45, %v734_v0 }
  0x4a   : > { %2049 = vrot.lane.b32.xlu0 %v2543_v25, %s2304_s17  ;;  %v2260_v25 = vld [vmem:[%s3064_s3 + $0x10] ss:$0 sps:$4 sm:$0x33]  }
  0x4b   : > { %1888 = vmatprep.subr.msk.bf16.mxu0 %vm1295_vm3, %v2260_v25  ;;  %1889 = vmatprep.subr.msk.bf16.mxu1 %vm1295_vm3, %v2260_v25  ;;  %v1297_v39 = vsel %vm1295_vm3, %v2260_v25, 0 }
  0x4c   : > { %1865 = vmatpush3.bf16.msra.mxu0 %v1297_v39  ;;  %1887 = vmatpush3.bf16.msra.mxu1 %v1297_v39 }
  0x4d   : > { %2064 = vrot.lane.b32.xlu1 %v2673_v62, %s2305_s20 }
  0x4e   : > { %2059 = vrot.lane.b32.xlu0 %v2569_v41, %s2305_s20  ;;  %v2083_v41 = vpack.i.bf16 %v646_v34, %v644_v30 }
  0x51   : > { %2074 = vrot.lane.b32.xlu1 %v2073_v24, %s2306_s12 }
  0x52   : > { %2069 = vrot.lane.b32.xlu0 %v2573_v42, %s2306_s12  ;;  %v2098_v42 = vpack.i.bf16 %v735_v2, %v733_v1 }
  0x55   : > { %2084 = vrot.lane.b32.xlu1 %v2083_v41, %s2307_s13 }
  0x56   : > { %2079 = vrot.lane.b32.xlu0 %v2602_v3, %s2307_s13 }
  0x59   : > { %2094 = vrot.lane.b32.xlu1 %v2602_v3, %s2303_s9  ;;  %v2153_v3 = vpack.i.bf16 %v2616_v18, %v2619_v19 }
  0x5a   : > { %2089 = vrot.lane.b32.xlu0 %v2673_v62, %s2308_s15 }
  0x5d   : > { %2104 = vrot.lane.b32.xlu1 %v2083_v41, %s2303_s9 }
  0x5e   : > { %2099 = vrot.lane.b32.xlu0 %v2098_v42, %s2308_s15 }
  0x61   : > { %2114 = vrot.lane.b32.xlu1 %v2098_v42, %s2302_s29 }
  0x62   : > { %2109 = vrot.lane.b32.xlu0 %v2673_v62, %s2302_s29  ;;  %v2203_v62 = vpack.i.bf16 %v2669_v59, %v2657_v50 }
  0x65   : > { %2124 = vrot.lane.b32.xlu1 %v2123_v44, %s2301_s18 }
  0x66   : > { %2119 = vrot.lane.b32.xlu0 %v2073_v24, %s2301_s18 }
  0x69   : > { %2134 = vrot.lane.b32.xlu1 %v2612_v16, %s2304_s17 }
  0x6a   : > { %2129 = vrot.lane.b32.xlu0 %v2083_v41, %s2304_s17 }
  0x6d   : > { %2144 = vrot.lane.b32.xlu1 %v2628_v21, %s2305_s20 }
  0x6e   : > { %2139 = vrot.lane.b32.xlu0 %v2098_v42, %s2305_s20 }
  0x71   : > { %2154 = vrot.lane.b32.xlu1 %v2153_v3, %s2306_s12 }
  0x72   : > { %2149 = vrot.lane.b32.xlu0 %v2123_v44, %s2306_s12 }
  0x75   : > { %2164 = vrot.lane.b32.xlu1 %v2650_v36, %s2307_s13 }
  0x76   : > { %2159 = vrot.lane.b32.xlu0 %v2612_v16, %s2307_s13 }
  0x79   : > { %2174 = vrot.lane.b32.xlu1 %v2612_v16, %s2303_s9  ;;  %v2233_v16 = vpack.i.bf16 %v2694_v26, %v2697_v28 }
  0x7a   : > { %2169 = vrot.lane.b32.xlu0 %v2628_v21, %s2308_s15 }
  0x7d   : > { %2184 = vrot.lane.b32.xlu1 %v2650_v36, %s2303_s9 }
  0x7e   : > { %2179 = vrot.lane.b32.xlu0 %v2654_v40, %s2308_s15 }
  0x81   : > { %2194 = vrot.lane.b32.xlu1 %v2654_v40, %s2302_s29 }
  0x82   : > { %2189 = vrot.lane.b32.xlu0 %v2628_v21, %s2302_s29 }
  0x85   : > { %2204 = vrot.lane.b32.xlu1 %v2203_v62, %s2301_s18 }
  0x86   : > { %2199 = vrot.lane.b32.xlu0 %v2153_v3, %s2301_s18  ;;  %s1793_s18 = sshll.u32 %s2392_s10, 2  ;;  %s1795_s10 = sshll.u32 %s2495_s25, 1 }
  0x87   : > { %s467_s11 = scalar_lea.vmem %s3068_s7, %s1795_s10 }
  0x89   : > { %2214 = vrot.lane.b32.xlu1 %v2686_v9, %s2304_s17 }
  0x8a   : > { %2209 = vrot.lane.b32.xlu0 %v2650_v36, %s2304_s17  ;;  %s2975_s17 = scalar_lea.vmem %s3067_s6, %s1793_s18 }
  0x8d   : > { %2224 = vrot.lane.b32.xlu1 %v2689_v23, %s2305_s20 }
  0x8e   : > { %2219 = vrot.lane.b32.xlu0 %v2654_v40, %s2305_s20 }
  0x8f   : > { %v1945_v21 = vpop.permute.xlu1 %1944 }
  0x90   : > { %v1940_v50 = vpop.permute.xlu0 %1939  ;;  %v1947_v28 = vunpack.i.h.bf16 %v1945_v21  ;;  %v1946_v29 = vunpack.i.l.bf16 %v1945_v21 }
  0x91   : > { %2234 = vrot.lane.b32.xlu1 %v2233_v16, %s2306_s12  ;;  %v1941_v32 = vunpack.i.l.bf16 %v1940_v50 }
  0x92   : > { %2229 = vrot.lane.b32.xlu0 %v2203_v62, %s2306_s12 }
  0x93   : > { %v1955_v59 = vpop.permute.xlu1 %1954 }
  0x94   : > { %v1950_v4 = vpop.permute.xlu0 %1949  ;;  %v1957_v54 = vunpack.i.h.bf16 %v1955_v59  ;;  %v1956_v7 = vunpack.i.l.bf16 %v1955_v59 }
  0x95   : > { %2244 = vrot.lane.b32.xlu1 %v2243_v52, %s2307_s13  ;;  %v1952_v6 = vunpack.i.h.bf16 %v1950_v4  ;;  %v1951_v53 = vunpack.i.l.bf16 %v1950_v4 }
  0x96   : > { %2239 = vrot.lane.b32.xlu0 %v2686_v9, %s2307_s13 }
  0x97   : > { %v2788_v36 = vpop.permute.xlu1 %1964  ;;  %v1110_v9 = vsel %vm1106_vm4, %v2433_v15, %v1952_v6  ;;  %v1109_v17 = vsel %vm1106_vm4, %v2421_v12, %v1951_v53  ;;  %v1942_v15 = vunpack.i.h.bf16 %v1940_v50 }
  0x98   : > { %v1960_v5 = vpop.permute.xlu0 %1959  ;;  %v1126_v24 = vsel %vm1123_vm5, %v1109_v17, %v1956_v7  ;;  %v1967_v34 = vunpack.i.h.bf16 %v2788_v36  ;;  %v1966_v35 = vunpack.i.l.bf16 %v2788_v36 }
  0x99   : > { %2254 = vrot.lane.b32.xlu1 %v2253_v58, %s2308_s15  ;;  %v1143_v37 = vsel %vm1140_vm6, %v1126_v24, %v1946_v29  ;;  %v1962_v43 = vunpack.i.h.bf16 %v1960_v5  ;;  %v1961_v63 = vunpack.i.l.bf16 %v1960_v5 }
  0x9a   : > { %2249 = vrot.lane.b32.xlu0 %v2689_v23, %s2308_s15  ;;  %v1127_v23 = vsel %vm1123_vm5, %v1110_v9, %v1957_v54 }
  0x9b   : > { %v2793_v40 = vpop.permute.xlu1 %1979  ;;  %v1144_v38 = vsel %vm1140_vm6, %v1127_v23, %v1947_v28 }
  0x9c   : > { %v1970_v8 = vpop.permute.xlu0 %1969  ;;  %v1982_v52 = vunpack.i.h.bf16 %v2793_v40  ;;  %v1981_v58 = vunpack.i.l.bf16 %v2793_v40  ;;  %v1161_v23 = vsel %vm1157_vm7, %v1144_v38, %v1967_v34 }
  0x9d   : > { %v1972_v0 = vunpack.i.h.bf16 %v1970_v8  ;;  %v1971_v1 = vunpack.i.l.bf16 %v1970_v8 }
  0x9e   : > { %v1178_v29 = vsel %vm1174_vm8, %v1161_v23, %v1982_v52 }
  0x9f   : > { %v2795_v13 = vpop.permute.xlu1 %1984 }
  0xa0   : > { %v1975_v22 = vpop.permute.xlu0 %1974  ;;  %v1987_v4 = vunpack.i.h.bf16 %v2795_v13  ;;  %v1986_v36 = vunpack.i.l.bf16 %v2795_v13 }
  0xa1   : > { %v1976_v44 = vunpack.i.l.bf16 %v1975_v22 }
  0xa3   : > { %v2000_v26 = vpop.permute.xlu1 %1999 }
  0xa4   : > { %v2002_v25 = vunpack.i.h.bf16 %v2000_v26  ;;  %v2001_v30 = vunpack.i.l.bf16 %v2000_v26  ;;  %v1990_v31 = vpop.permute.xlu0 %1989 }
  0xa5   : > { %v1992_v12 = vunpack.i.h.bf16 %v1990_v31  ;;  %v1991_v33 = vunpack.i.l.bf16 %v1990_v31 }
  0xa7   : > { %v1108_v49 = vsel %vm1106_vm4, %v2505_v55, %v1992_v12  ;;  %v1107_v51 = vsel %vm1106_vm4, %v2508_v56, %v1991_v33  ;;  %v2005_v41 = vpop.permute.xlu1 %2004  ;;  %v1977_v55 = vunpack.i.h.bf16 %v1975_v22  ;;  %v1160_v22 = vsel %vm1157_vm7, %v1143_v37, %v1966_v35 }
  0xa8   : > { %v1125_v39 = vsel %vm1123_vm5, %v1108_v49, %v2002_v25  ;;  %v1124_v61 = vsel %vm1123_vm5, %v1107_v51, %v2001_v30  ;;  %v1995_v45 = vpop.permute.xlu0 %1994  ;;  %v2007_v9 = vunpack.i.h.bf16 %v2005_v41  ;;  %v2006_v17 = vunpack.i.l.bf16 %v2005_v41 }
  0xa9   : > { %v1142_v2 = vsel %vm1140_vm6, %v1125_v39, %v1942_v15  ;;  %v1141_v42 = vsel %vm1140_vm6, %v1124_v61, %v1941_v32  ;;  %v1997_v62 = vunpack.i.h.bf16 %v1995_v45  ;;  %v1996_v16 = vunpack.i.l.bf16 %v1995_v45 }
  0xaa   : > { %v1158_v56 = vsel %vm1157_vm7, %v1141_v42, %v1961_v63  ;;  %v1159_v3 = vsel %vm1157_vm7, %v1142_v2, %v1962_v43  ;;  %v1177_v28 = vsel %vm1174_vm8, %v1160_v22, %v1981_v58  ;;  %v1195_v15 = vsel %vm1191_vm9, %v1178_v29, %v1987_v4 }
  0xab   : > { %v2015_v21 = vpop.permute.xlu1 %2014  ;;  %v1175_v50 = vsel %vm1174_vm8, %v1158_v56, %v1971_v1  ;;  %v1176_v59 = vsel %vm1174_vm8, %v1159_v3, %v1972_v0  ;;  %v1194_v31 = vsel %vm1191_vm9, %v1177_v28, %v1986_v36  ;;  %v1212_v34 = vsel %vm1208_vm10, %v1195_v15, %v2007_v9 }
  0xac   : > { %v2010_v5 = vpop.permute.xlu0 %2009  ;;  %v1192_v40 = vsel %vm1191_vm9, %v1175_v50, %v1976_v44  ;;  %v1193_v6 = vsel %vm1191_vm9, %v1176_v59, %v1977_v55  ;;  %v1211_v33 = vsel %vm1208_vm10, %v1194_v31, %v2006_v17  ;;  %v2017_v0 = vunpack.i.h.bf16 %v2015_v21 }
  0xad   : > { %v2012_v53 = vunpack.i.h.bf16 %v2010_v5  ;;  %v2011_v8 = vunpack.i.l.bf16 %v2010_v5  ;;  %v1209_v54 = vsel %vm1208_vm10, %v1192_v40, %v1996_v16  ;;  %v1210_v7 = vsel %vm1208_vm10, %v1193_v6, %v1997_v62 }
  0xae   : > { %v2016_v1 = vunpack.i.l.bf16 %v2015_v21  ;;  %v1112_v5 = vsel %vm1106_vm4, %v2415_v10, %v2017_v0 }
  0xaf   : > { %v2025_v24 = vpop.permute.xlu1 %2024  ;;  %v1226_v13 = vsel %vm1225_vm11, %v1209_v54, %v2011_v8  ;;  %v1227_v26 = vsel %vm1225_vm11, %v1210_v7, %v2012_v53 }
  0xb0   : > { %v2020_v25 = vpop.permute.xlu0 %2019  ;;  %v1242_v30 = vpack.c.bf16 %v1227_v26, %v1226_v13  ;;  %v2027_v61 = vunpack.i.h.bf16 %v2025_v24  ;;  %v2026_v45 = vunpack.i.l.bf16 %v2025_v24  ;;  %v1111_v21 = vsel %vm1106_vm4, %v2418_v11, %v2016_v1 }
  0xb1   : > { %v2022_v32 = vunpack.i.h.bf16 %v2020_v25  ;;  %v2021_v12 = vunpack.i.l.bf16 %v2020_v25 }
  0xb2   : > { %1866 = vmatprep.mubr.msk.bf16.mxu0 %vm1270_vm12, %v1242_v30  ;;  %v1114_v50 = vsel %vm1106_vm4, %v2480_v46, %v2027_v61  ;;  %v1113_v59 = vsel %vm1106_vm4, %v2483_v47, %v2026_v45 }
  0xb3   : > { %v1228_v35 = vsel %vm1225_vm11, %v1211_v33, %v2021_v12  ;;  %v1229_v37 = vsel %vm1225_vm11, %v1212_v34, %v2022_v32  ;;  %v2035_v38 = vpop.permute.xlu1 %2034 }
  0xb4   : > { %v1243_v43 = vpack.c.bf16 %v1229_v37, %v1228_v35  ;;  %v2030_v63 = vpop.permute.xlu0 %2029  ;;  %v2037_v2 = vunpack.i.h.bf16 %v2035_v38  ;;  %v2036_v42 = vunpack.i.l.bf16 %v2035_v38 }
  0xb5   : > { %v2032_v55 = vunpack.i.h.bf16 %v2030_v63  ;;  %v2031_v44 = vunpack.i.l.bf16 %v2030_v63 }
  0xb6   : > { %1867 = vmatmul.mubr.msk.bf16.vlgmr.msra.gmra.mrb[0].mxu0 %vm1270_vm12, %v1243_v43  ;;  %v1130_v40 = vsel %vm1123_vm5, %v1113_v59, %v2036_v42  ;;  %v1131_v6 = vsel %vm1123_vm5, %v1114_v50, %v2037_v2 }
  0xb7   : > { %v2045_v49 = vpop.permute.xlu1 %2044  ;;  %v1129_v53 = vsel %vm1123_vm5, %v1112_v5, %v2032_v55  ;;  %v1128_v8 = vsel %vm1123_vm5, %v1111_v21, %v2031_v44 }
  0xb8   : > { %v2040_v51 = vpop.permute.xlu0 %2039  ;;  %v2047_v3 = vunpack.i.h.bf16 %v2045_v49  ;;  %v2046_v62 = vunpack.i.l.bf16 %v2045_v49 }
  0xb9   : > { %v2042_v4 = vunpack.i.h.bf16 %v2040_v51  ;;  %v2041_v36 = vunpack.i.l.bf16 %v2040_v51 }
  0xba   : > { %v1147_v47 = vsel %vm1140_vm6, %v1130_v40, %v2046_v62  ;;  %v1148_v9 = vsel %vm1140_vm6, %v1131_v6, %v2047_v3 }
  0xbb   : > { %v2841_v41 = vpop.permute.xlu1 %2054  ;;  %v1145_v11 = vsel %vm1140_vm6, %v1128_v8, %v2041_v36  ;;  %v1146_v23 = vsel %vm1140_vm6, %v1129_v53, %v2042_v4 }
  0xbc   : > { %v2050_v52 = vpop.permute.xlu0 %2049  ;;  %v2057_v26 = vunpack.i.h.bf16 %v2841_v41  ;;  %v2056_v28 = vunpack.i.l.bf16 %v2841_v41 }
  0xbd   : > { %v2052_v46 = vunpack.i.h.bf16 %v2050_v52  ;;  %v2051_v54 = vunpack.i.l.bf16 %v2050_v52 }
  0xbe   : > { %v1164_v61 = vsel %vm1157_vm7, %v1147_v47, %v2056_v28  ;;  %v1165_v45 = vsel %vm1157_vm7, %v1148_v9, %v2057_v26 }
  0xbf   : > { %v2843_v58 = vpop.permute.xlu1 %2064  ;;  %v1162_v30 = vsel %vm1157_vm7, %v1145_v11, %v2051_v54  ;;  %v1163_v31 = vsel %vm1157_vm7, %v1146_v23, %v2052_v46 }
  0xc0   : > { %v2060_v39 = vpop.permute.xlu0 %2059  ;;  %v2067_v15 = vunpack.i.h.bf16 %v2843_v58  ;;  %v2066_v32 = vunpack.i.l.bf16 %v2843_v58 }
  0xc1   : > { %v2062_v17 = vunpack.i.h.bf16 %v2060_v39  ;;  %v2061_v10 = vunpack.i.l.bf16 %v2060_v39 }
  0xc2   : > { %v1181_v42 = vsel %vm1174_vm8, %v1164_v61, %v2066_v32  ;;  %v1182_v55 = vsel %vm1174_vm8, %v1165_v45, %v2067_v15 }
  0xc3   : > { %v2075_v56 = vpop.permute.xlu1 %2074  ;;  %v1179_v33 = vsel %vm1174_vm8, %v1162_v30, %v2061_v10  ;;  %v1180_v34 = vsel %vm1174_vm8, %v1163_v31, %v2062_v17 }
  0xc4   : > { %v2070_v16 = vpop.permute.xlu0 %2069  ;;  %v2077_v35 = vunpack.i.h.bf16 %v2075_v56  ;;  %v2076_v37 = vunpack.i.l.bf16 %v2075_v56 }
  0xc5   : > { %v2072_v24 = vunpack.i.h.bf16 %v2070_v16  ;;  %v2071_v13 = vunpack.i.l.bf16 %v2070_v16 }
  0xc6   : > { %v1198_v3 = vsel %vm1191_vm9, %v1181_v42, %v2076_v37  ;;  %v1199_v62 = vsel %vm1191_vm9, %v1182_v55, %v2077_v35 }
  0xc7   : > { %v2085_v7 = vpop.permute.xlu1 %2084  ;;  %v1196_v43 = vsel %vm1191_vm9, %v1179_v33, %v2071_v13  ;;  %v1197_v63 = vsel %vm1191_vm9, %v1180_v34, %v2072_v24 }
  0xc8   : > { %v2080_v22 = vpop.permute.xlu0 %2079  ;;  %v2087_v41 = vunpack.i.h.bf16 %v2085_v7  ;;  %v2086_v52 = vunpack.i.l.bf16 %v2085_v7 }
  0xc9   : > { %v2082_v29 = vunpack.i.h.bf16 %v2080_v22  ;;  %v2081_v25 = vunpack.i.l.bf16 %v2080_v22 }
  0xca   : > { %v1215_v59 = vsel %vm1208_vm10, %v1198_v3, %v2086_v52  ;;  %v1216_v4 = vsel %vm1208_vm10, %v1199_v62, %v2087_v41 }
  0xcb   : > { %v2095_v12 = vpop.permute.xlu1 %2094  ;;  %v1213_v39 = vsel %vm1208_vm10, %v1196_v43, %v2081_v25  ;;  %v1214_v58 = vsel %vm1208_vm10, %v1197_v63, %v2082_v29 }
  0xcc   : > { %v2090_v38 = vpop.permute.xlu0 %2089  ;;  %v2097_v10 = vunpack.i.h.bf16 %v2095_v12  ;;  %v2096_v22 = vunpack.i.l.bf16 %v2095_v12 }
  0xcd   : > { %v2092_v49 = vunpack.i.h.bf16 %v2090_v38  ;;  %v2091_v51 = vunpack.i.l.bf16 %v2090_v38 }
  0xce   : > { %v1116_v33 = vsel %vm1106_vm4, %v2551_v27, %v2097_v10  ;;  %v1115_v12 = vsel %vm1106_vm4, %v2546_v14, %v2096_v22 }
  0xcf   : > { %v1230_v0 = vsel %vm1225_vm11, %v1213_v39, %v2091_v51  ;;  %v1231_v1 = vsel %vm1225_vm11, %v1214_v58, %v2092_v49  ;;  %v2105_v2 = vpop.permute.xlu1 %2104 }
  0xd0   : > { %v1244_v44 = vpack.c.bf16 %v1231_v1, %v1230_v0  ;;  %v2100_v56 = vpop.permute.xlu0 %2099  ;;  %v2107_v9 = vunpack.i.h.bf16 %v2105_v2  ;;  %v2106_v17 = vunpack.i.l.bf16 %v2105_v2 }
  0xd1   : > { %v2102_v16 = vunpack.i.h.bf16 %v2100_v56  ;;  %v2101_v50 = vunpack.i.l.bf16 %v2100_v56 }
  0xd2   : > { %1870 = vmatprep.mubr.msk.bf16.mxu0 %vm1270_vm12, %v1244_v44  ;;  %v1118_v30 = vsel %vm1106_vm4, %v2626_v20, %v2107_v9  ;;  %v1117_v31 = vsel %vm1106_vm4, %v2577_v48, %v2106_v17 }
  0xd3   : > { %v1233_v36 = vsel %vm1225_vm11, %v1216_v4, %v2102_v16  ;;  %v1232_v5 = vsel %vm1225_vm11, %v1215_v59, %v2101_v50  ;;  %v2115_v21 = vpop.permute.xlu1 %2114 }
  0xd4   : > { %v1245_v40 = vpack.c.bf16 %v1233_v36, %v1232_v5  ;;  %v2110_v6 = vpop.permute.xlu0 %2109  ;;  %v2117_v11 = vunpack.i.h.bf16 %v2115_v21  ;;  %v2116_v23 = vunpack.i.l.bf16 %v2115_v21 }
  0xd5   : > { %v2112_v24 = vunpack.i.h.bf16 %v2110_v6  ;;  %v2111_v13 = vunpack.i.l.bf16 %v2110_v6 }
  0xd6   : > { %1871 = vmatmul.mubr.msk.bf16.gmra.mrb[4].mxu0 %vm1270_vm12, %v1245_v40  ;;  %v1134_v34 = vsel %vm1123_vm5, %v1117_v31, %v2116_v23  ;;  %v1135_v35 = vsel %vm1123_vm5, %v1118_v30, %v2117_v11 }
  0xd7   : > { %v2125_v53 = vpop.permute.xlu1 %2124  ;;  %v1133_v37 = vsel %vm1123_vm5, %v1116_v33, %v2112_v24  ;;  %v1132_v38 = vsel %vm1123_vm5, %v1115_v12, %v2111_v13 }
  0xd8   : > { %v2120_v8 = vpop.permute.xlu0 %2119  ;;  %v2127_v28 = vunpack.i.h.bf16 %v2125_v53  ;;  %v2126_v29 = vunpack.i.l.bf16 %v2125_v53 }
  0xd9   : > { %v2122_v15 = vunpack.i.h.bf16 %v2120_v8  ;;  %v2121_v32 = vunpack.i.l.bf16 %v2120_v8 }
  0xda   : > { %v1151_v48 = vsel %vm1140_vm6, %v1134_v34, %v2126_v29  ;;  %v1152_v49 = vsel %vm1140_vm6, %v1135_v35, %v2127_v28 }
  0xdb   : > { %v2887_v46 = vpop.permute.xlu1 %2134  ;;  %v1149_v14 = vsel %vm1140_vm6, %v1132_v38, %v2121_v32  ;;  %v1150_v52 = vsel %vm1140_vm6, %v1133_v37, %v2122_v15 }
  0xdc   : > { %v2130_v54 = vpop.permute.xlu0 %2129  ;;  %v2137_v61 = vunpack.i.h.bf16 %v2887_v46  ;;  %v2136_v45 = vunpack.i.l.bf16 %v2887_v46 }
  0xdd   : > { %v2132_v20 = vunpack.i.h.bf16 %v2130_v54  ;;  %v2131_v43 = vunpack.i.l.bf16 %v2130_v54 }
  0xde   : > { %v1168_v46 = vsel %vm1157_vm7, %v1151_v48, %v2136_v45  ;;  %v1169_v54 = vsel %vm1157_vm7, %v1152_v49, %v2137_v61 }
  0xdf   : > { %v2889_v7 = vpop.permute.xlu1 %2144  ;;  %v1166_v2 = vsel %vm1157_vm7, %v1149_v14, %v2131_v43  ;;  %v1167_v42 = vsel %vm1157_vm7, %v1150_v52, %v2132_v20 }
  0xe0   : > { %v2140_v47 = vpop.permute.xlu0 %2139  ;;  %v2147_v55 = vunpack.i.h.bf16 %v2889_v7  ;;  %v2146_v44 = vunpack.i.l.bf16 %v2889_v7 }
  0xe1   : > { %v2142_v51 = vunpack.i.h.bf16 %v2140_v47  ;;  %v2141_v27 = vunpack.i.l.bf16 %v2140_v47 }
  0xe2   : > { %v1185_v17 = vsel %vm1174_vm8, %v1168_v46, %v2146_v44  ;;  %v1186_v10 = vsel %vm1174_vm8, %v1169_v54, %v2147_v55 }
  0xe3   : > { %v2155_v26 = vpop.permute.xlu1 %2154  ;;  %v1183_v3 = vsel %vm1174_vm8, %v1166_v2, %v2141_v27  ;;  %v1184_v62 = vsel %vm1174_vm8, %v1167_v42, %v2142_v51 }
  0xe4   : > { %v2150_v25 = vpop.permute.xlu0 %2149  ;;  %v2157_v16 = vunpack.i.h.bf16 %v2155_v26  ;;  %v2156_v50 = vunpack.i.l.bf16 %v2155_v26 }
  0xe5   : > { %v2152_v39 = vunpack.i.h.bf16 %v2150_v25  ;;  %v2151_v58 = vunpack.i.l.bf16 %v2150_v25 }
  0xe6   : > { %v1202_v23 = vsel %vm1191_vm9, %v1185_v17, %v2156_v50  ;;  %v1203_v24 = vsel %vm1191_vm9, %v1186_v10, %v2157_v16 }
  0xe7   : > { %v2165_v63 = vpop.permute.xlu1 %2164  ;;  %v1200_v4 = vsel %vm1191_vm9, %v1183_v3, %v2151_v58  ;;  %v1201_v36 = vsel %vm1191_vm9, %v1184_v62, %v2152_v39 }
  0xe8   : > { %v2160_v41 = vpop.permute.xlu0 %2159  ;;  %v2167_v40 = vunpack.i.h.bf16 %v2165_v63  ;;  %v2166_v6 = vunpack.i.l.bf16 %v2165_v63 }
  0xe9   : > { %v2162_v0 = vunpack.i.h.bf16 %v2160_v41  ;;  %v2161_v1 = vunpack.i.l.bf16 %v2160_v41 }
  0xea   : > { %v1219_v28 = vsel %vm1208_vm10, %v1202_v23, %v2166_v6  ;;  %v1220_v29 = vsel %vm1208_vm10, %v1203_v24, %v2167_v40 }
  0xeb   : > { %v2175_v56 = vpop.permute.xlu1 %2174  ;;  %v1217_v53 = vsel %vm1208_vm10, %v1200_v4, %v2161_v1  ;;  %v1218_v8 = vsel %vm1208_vm10, %v1201_v36, %v2162_v0 }
  0xec   : > { %v2170_v59 = vpop.permute.xlu0 %2169  ;;  %v2177_v20 = vunpack.i.h.bf16 %v2175_v56  ;;  %v2176_v43 = vunpack.i.l.bf16 %v2175_v56 }
  0xed   : > { %v2172_v5 = vunpack.i.h.bf16 %v2170_v59  ;;  %v2171_v21 = vunpack.i.l.bf16 %v2170_v59 }
  0xee   : > { %v1120_v0 = vsel %vm1106_vm4, %v2594_v60, %v2177_v20  ;;  %v1119_v1 = vsel %vm1106_vm4, %v2587_v57, %v2176_v43 }
  0xef   : > { %v2185_v7 = vpop.permute.xlu1 %2184  ;;  %v1234_v47 = vsel %vm1225_vm11, %v1217_v53, %v2171_v21  ;;  %v1235_v9 = vsel %vm1225_vm11, %v1218_v8, %v2172_v5 }
  0xf0   : > { %v2180_v22 = vpop.permute.xlu0 %2179  ;;  %v1246_v11 = vpack.c.bf16 %v1235_v9, %v1234_v47  ;;  %v2187_v37 = vunpack.i.h.bf16 %v2185_v7  ;;  %v2186_v38 = vunpack.i.l.bf16 %v2185_v7 }
  0xf1   : > { %v2182_v13 = vunpack.i.h.bf16 %v2180_v22  ;;  %v2181_v26 = vunpack.i.l.bf16 %v2180_v22 }
  0xf2   : > { %1874 = vmatprep.mubr.msk.bf16.mxu1 %vm1270_vm12, %v1246_v11  ;;  %v1122_v39 = vsel %vm1106_vm4, %v2616_v18, %v2187_v37  ;;  %v1121_v58 = vsel %vm1106_vm4, %v2619_v19, %v2186_v38 }
  0xf3   : > { %v1237_v25 = vsel %vm1225_vm11, %v1220_v29, %v2182_v13  ;;  %v1236_v30 = vsel %vm1225_vm11, %v1219_v28, %v2181_v26  ;;  %v2195_v31 = vpop.permute.xlu1 %2194 }
  0xf4   : > { %v1247_v15 = vpack.c.bf16 %v1237_v25, %v1236_v30  ;;  %v2190_v32 = vpop.permute.xlu0 %2189  ;;  %v2197_v63 = vunpack.i.h.bf16 %v2195_v31  ;;  %v2196_v48 = vunpack.i.l.bf16 %v2195_v31 }
  0xf5   : > { %v2192_v51 = vunpack.i.h.bf16 %v2190_v32  ;;  %v2191_v27 = vunpack.i.l.bf16 %v2190_v32 }
  0xf6   : > { %1875 = vmatmul.mubr.msk.bf16.vlgmr.msra.gmra.mrb[0].mxu1 %vm1270_vm12, %v1247_v15  ;;  %v1138_v2 = vsel %vm1123_vm5, %v1121_v58, %v2196_v48  ;;  %v1139_v42 = vsel %vm1123_vm5, %v1122_v39, %v2197_v63 }
  0xf7   : > { %v2205_v33 = vpop.permute.xlu1 %2204  ;;  %v1137_v44 = vsel %vm1123_vm5, %v1120_v0, %v2192_v51  ;;  %v1136_v18 = vsel %vm1123_vm5, %v1119_v1, %v2191_v27 }
  0xf8   : > { %v2200_v12 = vpop.permute.xlu0 %2199  ;;  %v2207_v14 = vunpack.i.h.bf16 %v2205_v33  ;;  %v2206_v52 = vunpack.i.l.bf16 %v2205_v33 }
  0xf9   : > { %v2202_v61 = vunpack.i.h.bf16 %v2200_v12  ;;  %v2201_v45 = vunpack.i.l.bf16 %v2200_v12 }
  0xfa   : > { %v1155_v62 = vsel %vm1140_vm6, %v1138_v2, %v2206_v52  ;;  %v1156_v16 = vsel %vm1140_vm6, %v1139_v42, %v2207_v14 }
  0xfb   : > { %v2215_v34 = vpop.permute.xlu1 %2214  ;;  %v1153_v57 = vsel %vm1140_vm6, %v1136_v18, %v2201_v45  ;;  %v1154_v59 = vsel %vm1140_vm6, %v1137_v44, %v2202_v61 }
  0xfc   : > { %v2210_v35 = vpop.permute.xlu0 %2209  ;;  %v2217_v56 = vunpack.i.h.bf16 %v2215_v34  ;;  %v2216_v3 = vunpack.i.l.bf16 %v2215_v34 }
  0xfd   : > { %v2212_v60 = vunpack.i.h.bf16 %v2210_v35  ;;  %v2211_v50 = vunpack.i.l.bf16 %v2210_v35 }
  0xfe   : > { %v1172_v8 = vsel %vm1157_vm7, %v1155_v62, %v2216_v3  ;;  %v1173_v46 = vsel %vm1157_vm7, %v1156_v16, %v2217_v56 }
  0xff   : > { %v2225_v49 = vpop.permute.xlu1 %2224  ;;  %v1170_v9 = vsel %vm1157_vm7, %v1153_v57, %v2211_v50  ;;  %v1171_v17 = vsel %vm1157_vm7, %v1154_v59, %v2212_v60 }
 0x100   : > { %v2220_v41 = vpop.permute.xlu0 %2219  ;;  %v2227_v4 = vunpack.i.h.bf16 %v2225_v49  ;;  %v2226_v36 = vunpack.i.l.bf16 %v2225_v49 }
 0x101   : > { %v2222_v5 = vunpack.i.h.bf16 %v2220_v41  ;;  %v2221_v21 = vunpack.i.l.bf16 %v2220_v41 }
 0x102   : > { %v1189_v11 = vsel %vm1174_vm8, %v1172_v8, %v2226_v36  ;;  %v1190_v23 = vsel %vm1174_vm8, %v1173_v46, %v2227_v4 }
 0x103   : > { %v2235_v55 = vpop.permute.xlu1 %2234  ;;  %v1187_v26 = vsel %vm1174_vm8, %v1170_v9, %v2221_v21  ;;  %v1188_v28 = vsel %vm1174_vm8, %v1171_v17, %v2222_v5 }
 0x104   : > { %v2230_v19 = vpop.permute.xlu0 %2229  ;;  %v2237_v40 = vunpack.i.h.bf16 %v2235_v55  ;;  %v2236_v6 = vunpack.i.l.bf16 %v2235_v55 }
 0x105   : > { %v2232_v54 = vunpack.i.h.bf16 %v2230_v19  ;;  %v2231_v7 = vunpack.i.l.bf16 %v2230_v19 }
 0x106   : > { %v1206_v29 = vsel %vm1191_vm9, %v1189_v11, %v2236_v6  ;;  %v1207_v25 = vsel %vm1191_vm9, %v1190_v23, %v2237_v40 }
 0x107   : > { %v2245_v53 = vpop.permute.xlu1 %2244  ;;  %v1204_v31 = vsel %vm1191_vm9, %v1187_v26, %v2231_v7  ;;  %v1205_v15 = vsel %vm1191_vm9, %v1188_v28, %v2232_v54 }
 0x108   : > { %v2240_v47 = vpop.permute.xlu0 %2239  ;;  %v2247_v10 = vunpack.i.h.bf16 %v2245_v53  ;;  %v2246_v22 = vunpack.i.l.bf16 %v2245_v53 }
 0x109   : > { %v2242_v24 = vunpack.i.h.bf16 %v2240_v47  ;;  %v2241_v13 = vunpack.i.l.bf16 %v2240_v47 }
 0x10a   : > { %v1223_v34 = vsel %vm1208_vm10, %v1206_v29, %v2246_v22  ;;  %v1224_v35 = vsel %vm1208_vm10, %v1207_v25, %v2247_v10 }
 0x10b   : > { %v2255_v30 = vpop.permute.xlu1 %2254  ;;  %v1221_v20 = vsel %vm1208_vm10, %v1204_v31, %v2241_v13  ;;  %v1222_v43 = vsel %vm1208_vm10, %v1205_v15, %v2242_v24 }
 0x10c   : > { %v2257_v32 = vunpack.i.h.bf16 %v2255_v30  ;;  %v2256_v33 = vunpack.i.l.bf16 %v2255_v30  ;;  %v2250_v12 = vpop.permute.xlu0 %2249 }
 0x10d   : > { %v2252_v37 = vunpack.i.h.bf16 %v2250_v12  ;;  %v2251_v38 = vunpack.i.l.bf16 %v2250_v12 }
 0x10e   : > { %v1240_v63 = vsel %vm1225_vm11, %v1223_v34, %v2256_v33  ;;  %v1241_v48 = vsel %vm1225_vm11, %v1224_v35, %v2257_v32 }
 0x10f   : > { %v1249_v49 = vpack.c.bf16 %v1241_v48, %v1240_v63  ;;  %v1238_v51 = vsel %vm1225_vm11, %v1221_v20, %v2251_v38  ;;  %v1239_v27 = vsel %vm1225_vm11, %v1222_v43, %v2252_v37 }
 0x110   : > { %v1248_v41 = vpack.c.bf16 %v1239_v27, %v1238_v51 }
 0x112   : > { %1878 = vmatprep.mubr.msk.bf16.mxu1 %vm1270_vm12, %v1248_v41 }
 0x113   : > { %1879 = vmatmul.mubr.msk.bf16.gmra.mrb[4].mxu1 %vm1270_vm12, %v1249_v49 }
 0x189   : > { %v1868_v14 = vpop.f32.mrb[0].mxu0 }
 0x18a   : > { %v1835_v52 = vpack.c.bf16 %v1868_v14, %v1868_v14  ;;  %v1333_v39 = vpop.f32.mrb[1].mxu0  ;;  %v1435_v0 = vmul.f32 %v1868_v14, %v1868_v14  ;;  %v1399_v3 = vsel %vm1106_vm4, %v1868_v14, 0.0 }
 0x18b   : > { %v1433_v58 = vmul.f32 %v1333_v39, %v1333_v39  ;;  %v1833_v61 = vpack.c.bf16 %v1333_v39, %v1333_v39  ;;  %v1869_v45 = vpop.f32.mrb[2].mxu0  ;;  %v1396_v42 = vsel %vm1106_vm4, %v1333_v39, 0.0 }
 0x18c   : > { %1556 = vst.msk [vmem:[%s2975_s17 + $0x8] sm:$0xf] %vm1553_vm13, %v1835_v52  ;;  %v1836_v1 = vpack.c.bf16 %v1869_v45, %v1869_v45  ;;  %v1336_v2 = vpop.f32.mrb[3].mxu0  ;;  %v1436_v62 = vmul.f32 %v1869_v45, %v1869_v45  ;;  %v1452_v57 = vsel %vm1106_vm4, %v1435_v0, 0.0  ;;  %v1401_v59 = vsel %vm1106_vm4, %v1869_v45, 0.0 }
 0x18d   : > { %1554 = vst.msk [vmem:[%s2975_s17] sm:$0xf] %vm1553_vm13, %v1833_v61  ;;  %v1397_v55 = vsel %vm1106_vm4, %v1336_v2, 0.0  ;;  %v1434_v44 = vmul.f32 %v1336_v2, %v1336_v2  ;;  %v1834_v18 = vpack.c.bf16 %v1336_v2, %v1336_v2  ;;  %v1449_v19 = vsel %vm1106_vm4, %v1433_v58, 0.0 }
 0x18e   : > { %1557 = vst.msk [vmem:[%s2975_s17 + $0xc] sm:$0xf] %vm1553_vm13, %v1836_v1  ;;  %v1398_v56 = vadd.f32 %v1397_v55, %v1396_v42  ;;  %v1454_v5 = vsel %vm1106_vm4, %v1436_v62, 0.0 }
 0x18f   : > { %v1450_v16 = vsel %vm1106_vm4, %v1434_v44, 0.0  ;;  %1555 = vst.msk [vmem:[%s2975_s17 + $0x4] sm:$0xf] %vm1553_vm13, %v1834_v18 }
 0x190   : > { %v1400_v60 = vadd.f32 %v1399_v3, %v1398_v56  ;;  %v1451_v50 = vadd.f32 %v1450_v16, %v1449_v19 }
 0x192   : > { %v1453_v4 = vadd.f32 %v1452_v57, %v1451_v50  ;;  %v1402_v36 = vadd.f32 %v1401_v59, %v1400_v60 }
 0x194   : > { %v1455_v21 = vadd.f32 %v1454_v5, %v1453_v4 }
 0x1a9   : > { %v1872_v40 = vpop.f32.mrb[4].mxu0 }
 0x1aa   : > { %v1839_v6 = vpack.c.bf16 %v1872_v40, %v1872_v40  ;;  %v1349_v53 = vpop.f32.mrb[5].mxu0  ;;  %v1439_v47 = vmul.f32 %v1872_v40, %v1872_v40  ;;  %v1407_v28 = vsel %vm1106_vm4, %v1872_v40, 0.0 }
 0x1ab   : > { %v1403_v8 = vsel %vm1106_vm4, %v1349_v53, 0.0  ;;  %v1437_v46 = vmul.f32 %v1349_v53, %v1349_v53  ;;  %v1837_v54 = vpack.c.bf16 %v1349_v53, %v1349_v53  ;;  %v1873_v7 = vpop.f32.mrb[6].mxu0 }
 0x1ac   : > { %1560 = vst.msk [vmem:[%s2975_s17 + $0x18] sm:$0xf] %vm1553_vm13, %v1839_v6  ;;  %v1404_v9 = vadd.f32 %v1403_v8, %v1402_v36  ;;  %v1352_v17 = vpop.f32.mrb[7].mxu0  ;;  %v1840_v22 = vpack.c.bf16 %v1873_v7, %v1873_v7  ;;  %v1440_v29 = vmul.f32 %v1873_v7, %v1873_v7  ;;  %v1460_v15 = vsel %vm1106_vm4, %v1439_v47, 0.0 }
 0x1ad   : > { %v1456_v10 = vsel %vm1106_vm4, %v1437_v46, 0.0  ;;  %1558 = vst.msk [vmem:[%s2975_s17 + $0x10] sm:$0xf] %vm1553_vm13, %v1837_v54  ;;  %v1405_v11 = vsel %vm1106_vm4, %v1352_v17, 0.0  ;;  %v1438_v23 = vmul.f32 %v1352_v17, %v1352_v17  ;;  %v1838_v26 = vpack.c.bf16 %v1352_v17, %v1352_v17 }
 0x1ae   : > { %v1457_v24 = vadd.f32 %v1456_v10, %v1455_v21  ;;  %v1406_v13 = vadd.f32 %v1405_v11, %v1404_v9  ;;  %1561 = vst.msk [vmem:[%s2975_s17 + $0x1c] sm:$0xf] %vm1553_vm13, %v1840_v22  ;;  %v1409_v32 = vsel %vm1106_vm4, %v1873_v7, 0.0  ;;  %v1462_v34 = vsel %vm1106_vm4, %v1440_v29, 0.0 }
 0x1af   : > { %v1458_v25 = vsel %vm1106_vm4, %v1438_v23, 0.0  ;;  %1559 = vst.msk [vmem:[%s2975_s17 + $0x14] sm:$0xf] %vm1553_vm13, %v1838_v26 }
 0x1b0   : > { %v1408_v30 = vadd.f32 %v1407_v28, %v1406_v13  ;;  %v1459_v31 = vadd.f32 %v1458_v25, %v1457_v24 }
 0x1b2   : > { %v1461_v33 = vadd.f32 %v1460_v15, %v1459_v31  ;;  %v1410_v12 = vadd.f32 %v1409_v32, %v1408_v30 }
 0x1b4   : > { %v1463_v35 = vadd.f32 %v1462_v34, %v1461_v33 }
 0x1c9   : > { %v1876_v37 = vpop.f32.mrb[0].mxu1 }
 0x1ca   : > { %v1843_v38 = vpack.c.bf16 %v1876_v37, %v1876_v37  ;;  %v1365_v20 = vpop.f32.mrb[1].mxu1  ;;  %v1443_v51 = vmul.f32 %v1876_v37, %v1876_v37  ;;  %v1415_v1 = vsel %vm1106_vm4, %v1876_v37, 0.0 }
 0x1cb   : > { %v1411_v43 = vsel %vm1106_vm4, %v1365_v20, 0.0  ;;  %v1441_v63 = vmul.f32 %v1365_v20, %v1365_v20  ;;  %v1841_v48 = vpack.c.bf16 %v1365_v20, %v1365_v20  ;;  %v1877_v49 = vpop.f32.mrb[2].mxu1 }
 0x1cc   : > { %1564 = vst.msk [vmem:[%s2975_s17 + $0x28] sm:$0xf] %vm1553_vm13, %v1843_v38  ;;  %v1412_v27 = vadd.f32 %v1411_v43, %v1410_v12  ;;  %v1368_v41 = vpop.f32.mrb[3].mxu1  ;;  %v1844_v52 = vpack.c.bf16 %v1877_v49, %v1877_v49  ;;  %v1444_v2 = vmul.f32 %v1877_v49, %v1877_v49  ;;  %v1468_v18 = vsel %vm1106_vm4, %v1443_v51, 0.0 }
 0x1cd   : > { %v1464_v14 = vsel %vm1106_vm4, %v1441_v63, 0.0  ;;  %1562 = vst.msk [vmem:[%s2975_s17 + $0x20] sm:$0xf] %vm1553_vm13, %v1841_v48  ;;  %v1413_v39 = vsel %vm1106_vm4, %v1368_v41, 0.0  ;;  %v1442_v58 = vmul.f32 %v1368_v41, %v1368_v41  ;;  %v1842_v0 = vpack.c.bf16 %v1368_v41, %v1368_v41 }
 0x1ce   : > { %v1465_v61 = vadd.f32 %v1464_v14, %v1463_v35  ;;  %v1414_v45 = vadd.f32 %v1413_v39, %v1412_v27  ;;  %1565 = vst.msk [vmem:[%s2975_s17 + $0x2c] sm:$0xf] %vm1553_vm13, %v1844_v52  ;;  %v1417_v56 = vsel %vm1106_vm4, %v1877_v49, 0.0  ;;  %v1470_v62 = vsel %vm1106_vm4, %v1444_v2, 0.0 }
 0x1cf   : > { %v1466_v42 = vsel %vm1106_vm4, %v1442_v58, 0.0  ;;  %1563 = vst.msk [vmem:[%s2975_s17 + $0x24] sm:$0xf] %vm1553_vm13, %v1842_v0 }
 0x1d0   : > { %v1416_v55 = vadd.f32 %v1415_v1, %v1414_v45  ;;  %v1467_v44 = vadd.f32 %v1466_v42, %v1465_v61 }
 0x1d2   : > { %v1469_v3 = vadd.f32 %v1468_v18, %v1467_v44  ;;  %v1418_v19 = vadd.f32 %v1417_v56, %v1416_v55 }
 0x1d4   : > { %v1471_v16 = vadd.f32 %v1470_v62, %v1469_v3 }
 0x1e6   : > { %v1880_v60 = vpop.f32.mrb[4].mxu1 }
 0x1e7   : > { %v1847_v50 = vpack.c.bf16 %v1880_v60, %v1880_v60  ;;  %v1381_v57 = vpop.f32.mrb[5].mxu1  ;;  %v1447_v21 = vmul.f32 %v1880_v60, %v1880_v60  ;;  %v1423_v17 = vsel %vm1106_vm4, %v1880_v60, 0.0 }
 0x1e8   : > { %v1419_v59 = vsel %vm1106_vm4, %v1381_v57, 0.0  ;;  %v1445_v4 = vmul.f32 %v1381_v57, %v1381_v57  ;;  %v1845_v36 = vpack.c.bf16 %v1381_v57, %v1381_v57  ;;  %v1881_v5 = vpop.f32.mrb[6].mxu1 }
 0x1e9   : > { %1568 = vst.msk [vmem:[%s2975_s17 + $0x38] sm:$0xf] %vm1553_vm13, %v1847_v50  ;;  %v1420_v40 = vadd.f32 %v1419_v59, %v1418_v19  ;;  %v1384_v6 = vpop.f32.mrb[7].mxu1  ;;  %v1848_v8 = vpack.c.bf16 %v1881_v5, %v1881_v5  ;;  %v1448_v10 = vmul.f32 %v1881_v5, %v1881_v5  ;;  %v1476_v24 = vsel %vm1106_vm4, %v1447_v21, 0.0 }
 0x1ea   : > { %v1472_v53 = vsel %vm1106_vm4, %v1445_v4, 0.0  ;;  %1566 = vst.msk [vmem:[%s2975_s17 + $0x30] sm:$0xf] %vm1553_vm13, %v1845_v36  ;;  %v1421_v46 = vsel %vm1106_vm4, %v1384_v6, 0.0  ;;  %v1446_v54 = vmul.f32 %v1384_v6, %v1384_v6  ;;  %v1846_v9 = vpack.c.bf16 %v1384_v6, %v1384_v6 }
 0x1eb   : > { %v1473_v7 = vadd.f32 %v1472_v53, %v1471_v16  ;;  %v1422_v47 = vadd.f32 %v1421_v46, %v1420_v40  ;;  %1569 = vst.msk [vmem:[%s2975_s17 + $0x3c] sm:$0xf] %vm1553_vm13, %v1848_v8  ;;  %v1425_v13 = vsel %vm1106_vm4, %v1881_v5, 0.0  ;;  %v1478_v29 = vsel %vm1106_vm4, %v1448_v10, 0.0 }
 0x1ec   : > { %v1474_v22 = vsel %vm1106_vm4, %v1446_v54, 0.0  ;;  %1567 = vst.msk [vmem:[%s2975_s17 + $0x34] sm:$0xf] %vm1553_vm13, %v1846_v9 }
 0x1ed   : > { %v1424_v11 = vadd.f32 %v1423_v17, %v1422_v47  ;;  %v1475_v23 = vadd.f32 %v1474_v22, %v1473_v7 }
 0x1ef   : > { %v1426_v26 = vadd.f32 %v1425_v13, %v1424_v11  ;;  %v1477_v28 = vadd.f32 %v1476_v24, %v1475_v23 }
 0x1f1   : > { %v1427_v25 = vrot.slane %v1426_v26, 4  ;;  %v1479_v30 = vadd.f32 %v1478_v29, %v1477_v28 }
 0x1f3   : > { %v1428_v31 = vadd.f32 %v1427_v25, %v1426_v26  ;;  %v1480_v15 = vrot.slane %v1479_v30, 4 }
 0x1f5   : > { %v1429_v32 = vrot.slane %v1428_v31, 2  ;;  %v1481_v33 = vadd.f32 %v1480_v15, %v1479_v30 }
 0x1f7   : > { %v1430_v12 = vadd.f32 %v1429_v32, %v1428_v31  ;;  %v1482_v34 = vrot.slane %v1481_v33, 2 }
 0x1f9   : > { %v1431_v35 = vrot.slane %v1430_v12, 1  ;;  %v1483_v37 = vadd.f32 %v1482_v34, %v1481_v33 }
 0x1fb   : > { %v1484_v38 = vrot.slane %v1483_v37, 1  ;;  %v1432_v20 = vadd.f32 %v1431_v35, %v1430_v12 }
 0x1fd   : > { %v1485_v43 = vadd.f32 %v1484_v38, %v1483_v37 }
 0x1ff   : > { %v1486_v63 = vsel %vm521_vm0, %v1432_v20, %v1485_v43 }
 0x200   : > { %1488 = vst.msk [vmem:[%s467_s11] sm:$0x3] %vm1487_vm14, %v1486_v63 }
 0x201 PF: > { %s18_s28 = sadd.s32 1, %s2299_s28   ;;  %s3070_s24 = smov %s2291_s26 }
 0x202   : > { %p15_p12 = scmp.ge.s32.totalorder %s18_s28, 6   ;;  %s3071_s25 = smov %s2295_s27 }
 0x203   : > { %s3072_s26 = smov %s3075_s4  ;;  %s3073_s27 = smov %s3079_s5 }
 0x204   :  { %17 = sbr.rel (!%p15_p12) target bundleno = 3 (0x3), region = 92 }

// kernel: basic_block_forward.4
= control target key start
LH: loop header
LB: loop body
LE: loop exit
PB: predicated region body
PF: predicated region fallthrough
CT: control target
= control target key end

     0   :  { %s2492_s24 = smov 0   ;;  %s2494_s25 = smov 0   ;;  %s3271_s0 = inlined_call_operand.vmem [shape: bf16[2,16,16,4], index: 0, kind: input, shape index: {}, may-alias: {0,1,2}]   ;;  %s3272_s1 = inlined_call_operand.vmem [shape: bf16[2,16,16,4], index: 1, kind: input, shape index: {}, may-alias: {0,1,2}]   ;;  %s3273_s2 = inlined_call_operand.vmem [shape: bf16[2,16,16,4], index: 2, kind: input, shape index: {}, may-alias: {0,1,2}]   ;;  %s3274_s3 = inlined_call_operand.vmem [shape: bf16[36,4], index: 3, kind: input, shape index: {}]   ;;  %s3275_s4 = inlined_call_operand.vmem [shape: f32[1,4], index: 4, kind: input, shape index: {}]   ;;  %s3276_s5 = inlined_call_operand.vmem [shape: f32[1,4], index: 5, kind: input, shape index: {}]   ;;  %s3277_s6 = inlined_call_operand.vmem [shape: bf16[2,16,16,4], index: 6, kind: output, shape index: {0}]   ;;  %s3278_s7 = inlined_call_operand.vmem [shape: f32[2,2,2,4], index: 7, kind: output, shape index: {1}]  }
   0x1   :  { %s2496_s26 = smov 0   ;;  %s2498_s27 = smov 0  }
   0x2   :  { %s2500_s28 = smov 0  }
   0x3 LB: > { %s27_s29 = sadd.s32 1, %s2434_s26  ;;  %s30_s30 = sadd.s32 1, %s2438_s27  ;;  %s2442_s28 = sphi %s2500_s28, %s18_s28   ;;  %s2438_s27 = sphi %s2498_s27, %s3283_s27   ;;  %s2434_s26 = sphi %s2496_s26, %s3282_s26   ;;  %s2430_s25 = sphi %s2494_s25, %s3281_s25   ;;  %s2426_s24 = sphi %s2492_s24, %s3280_s24  }
   0x4   : > { %p28_p0 = scmp.ge.s32.totalorder %s27_s29, 2  ;;  %p1862_p1 = scmp.ge.s32.totalorder %s2442_s28, 1 }
   0x5   : > { %p328_p2 = scmp.lt.s32.totalorder %s2442_s28, 5 }
   0x6   : > { %s3285_s29 = smov (%p28_p0, %s27_s29), 0  ;;  %s3287_s30 = smov (!%p28_p0, %s30_s30), %s2438_s27 }
   0x7   : > { %p329_p3 = pnand %p1862_p1, %p328_p2  ;;  %p32_p4 = scmp.ge.s32.totalorder %s3287_s30, 2 }
   0x8   : > { %s2525_s8 = sshll.u32 (!%p329_p3), %s2426_s24, 3  ;;  %p405_p5 = scmp.lt.s32.totalorder (!%p329_p3), %s2430_s25, 1  ;;  %v2548_v0 = vld [vmem:[%s3275_s4] ss:$0 sm:$0xff] (!%p329_p3)  ;;  %vm615_vm0 = vcmask (!%p329_p3), 1040384   ;;  %vm799_vm1 = vcmask (!%p329_p3), 1045504  }
   0x9   : > { %s3289_s30 = smov (%p32_p4, %s3287_s30), 0  ;;  %332 = sbr.rel (%p329_p3) target bundleno = 520 (0x208), region = 44 }
   0xa   : > { %p407_p6 = scmp.lt.s32.totalorder (!%p329_p3), %s2525_s8, 15  ;;  %s1868_s19 = sadd.s32 (!%p329_p3), 4294967295, %s2525_s8  ;;  %v2558_v9 = vld [vmem:[%s3276_s5] ss:$0 sm:$0xff] (!%p329_p3)  ;;  %vm710_vm2 = vcmask (!%p329_p3), 1046528   ;;  %vm1389_vm3 = vcmask (!%p329_p3), 1041408  }
   0xb   : > { %p417_p7 = scmp.gt.s32.totalorder (!%p329_p3), %s1868_s19, 0  ;;  %p1869_p8 = scmp.lt.s32.totalorder (!%p329_p3), %s1868_s19, 15  ;;  %vm1200_vm4 = vcmask (!%p329_p3), 31744   ;;  %vm1217_vm5 = vcmask (!%p329_p3), 64512   ;;  %vm1234_vm6 = vcmask (!%p329_p3), 97280   ;;  %vm1251_vm7 = vcmask (!%p329_p3), 130048  }
   0xc   : > { %p573_p9 = scmp.gt.s32.totalorder (!%p329_p3), %s2426_s24, 0  ;;  %s1928_s23 = sadd.s32 (!%p329_p3), 8, %s2525_s8  ;;  %vm1268_vm8 = vcmask (!%p329_p3), 162816   ;;  %vm1285_vm9 = vcmask (!%p329_p3), 195584   ;;  %vm1302_vm10 = vcmask (!%p329_p3), 228352   ;;  %vm1319_vm11 = vcmask (!%p329_p3), 261120  }
   0xd   : > { %p2583_p10 = scmp.lt.s32.totalorder (!%p329_p3), %s1928_s23, 15  ;;  %p462_p11 = scmp.lt.s32.totalorder (!%p329_p3), %s2426_s24, 1  ;;  %vm1364_vm12 = vcmask (!%p329_p3), 293888   ;;  %vm1647_vm13 = vcmask (!%p329_p3), 27648   ;;  %vm1581_vm14 = vcmask (!%p329_p3), 25600  }
   0xe   : > { %s2449_s20 = smov (!%p329_p3), 20  }
  0x10   : > { %s3291_s25 = smov (!%p405_p5, %s2430_s25), 1  ;;  %s3295_s23 = smov (!%p2583_p10, %s1928_s23), 15 }
  0x11   : > { %s408_s9 = scalar_select %p407_p6, %s2525_s8, 15 }
  0x12   : > { %s2532_s10 = sshll.u32 %s3291_s25, 5  ;;  %s1888_s18 = sshll.u32 %s3291_s25, 1 }
  0x13   : > { %s1864_s11 = sshll.u32 %s408_s9, 1  ;;  %s3297_s23 = smov (!%p2583_p10, %s3295_s23), 15 }
  0x14   : > { %s2535_s12 = sadd.s32 %s2532_s10, %s1864_s11  ;;  %s2451_s8 = smov 32  }
  0x15   : > { %s1866_s13 = sshll.u32 %s2535_s12, 2 }
  0x16   : > { %s2543_s16 = scalar_lea.vmem %s3271_s0, %s1866_s13 }
  0x17   : > { %v1985_v1 = vld [vmem:[%s2543_s16 + $0x8] sm:$0xff]   ;;  %v1946_v2 = vld [vmem:[%s2543_s16] sm:$0xff]   ;;  %v1986_v3 = vld [vmem:[%s2543_s16 + $0x10] sm:$0xff]   ;;  %s418_s22 = scalar_select %p417_p7, %s1868_s19, 0 }
  0x18   : > { %v1951_v4 = vunpack.c.l.bf16 %v1985_v1  ;;  %v1952_v5 = vunpack.c.h.bf16 %v1985_v1  ;;  %v1947_v6 = vunpack.c.l.bf16 %v1946_v2  ;;  %v1948_v7 = vunpack.c.h.bf16 %v1946_v2  ;;  %v1987_v8 = vld [vmem:[%s2543_s16 + $0x18] sm:$0xff]   ;;  %s2579_s9 = scalar_select %p573_p9, 1, 0 }
  0x19   : > { %v1955_v10 = vunpack.c.l.bf16 %v1986_v3  ;;  %v1956_v11 = vunpack.c.h.bf16 %v1986_v3  ;;  %v1959_v12 = vunpack.c.l.bf16 %v1987_v8  ;;  %v1960_v13 = vunpack.c.h.bf16 %v1987_v8  ;;  %s3293_s22 = smov (!%p1869_p8, %s418_s22), 15  ;;  %s2444_s19 = smov 12  }
  0x1a   : > { %v511_v14 = vmul.f32 %v1951_v4, %v2548_v0  ;;  %v512_v15 = vmul.f32 %v1952_v5, %v2548_v0  ;;  %v509_v16 = vmul.f32 %v1947_v6, %v2548_v0  ;;  %v510_v17 = vmul.f32 %v1948_v7, %v2548_v0  ;;  %s1874_s11 = sshll.u32 %s3293_s22, 1 }
  0x1b   : > { %v513_v18 = vmul.f32 %v1955_v10, %v2548_v0  ;;  %v514_v19 = vmul.f32 %v1956_v11, %v2548_v0  ;;  %v515_v26 = vmul.f32 %v1959_v12, %v2548_v0  ;;  %v516_v27 = vmul.f32 %v1960_v13, %v2548_v0  ;;  %s2588_s15 = sadd.s32 %s1874_s11, %s2532_s10  ;;  %s2652_s11 = sshll.u32 %s3297_s23, 1 }
  0x1c   : > { %v533_v20 = vadd.f32 %v2558_v9, %v511_v14  ;;  %v534_v21 = vadd.f32 %v2558_v9, %v512_v15  ;;  %v531_v22 = vadd.f32 %v2558_v9, %v509_v16  ;;  %v532_v23 = vadd.f32 %v2558_v9, %v510_v17  ;;  %s1876_s17 = sshll.u32 %s2588_s15, 2  ;;  %s442_s14 = sadd.s32 %s2652_s11, %s2532_s10 }
  0x1d   : > { %v535_v24 = vadd.f32 %v2558_v9, %v513_v18  ;;  %v536_v25 = vadd.f32 %v2558_v9, %v514_v19  ;;  %v2591_v40 = vadd.f32 %v2558_v9, %v515_v26  ;;  %v2594_v41 = vadd.f32 %v2558_v9, %v516_v27  ;;  %s463_s25 = scalar_select %p462_p11, %s2426_s24, 1 }
  0x1e   : > { %v549_v28 = vmax.f32 %v533_v20, 0.0  ;;  %v550_v29 = vmax.f32 %v534_v21, 0.0  ;;  %v547_v30 = vmax.f32 %v531_v22, 0.0  ;;  %v548_v31 = vmax.f32 %v532_v23, 0.0  ;;  %s427_s21 = scalar_lea.vmem %s3272_s1, %s1876_s17  ;;  %s2445_s15 = smov 24  }
  0x1f   : > { %v551_v32 = vmax.f32 %v535_v24, 0.0  ;;  %v552_v33 = vmax.f32 %v536_v25, 0.0  ;;  %s2647_s22 = sadd.s32 %s1888_s18, %s463_s25  ;;  %v1978_v10 = vld [vmem:[%s427_s21] sm:$0xff]   ;;  %s575_s23 = scvt.s32.f32 %s2579_s9  ;;  %v553_v13 = vmax.f32 %v2591_v40, 0.0  ;;  %v554_v14 = vmax.f32 %v2594_v41, 0.0 }
  0x20   : > { %v622_v34 = vrot.slane %v549_v28, 7  ;;  %v623_v35 = vrot.slane %v550_v29, 7  ;;  %v619_v36 = vrot.slane %v547_v30, 7  ;;  %v620_v37 = vrot.slane %v548_v31, 7  ;;  %s2446_s17 = smov 8   ;;  %s2447_s18 = smov 4  }
  0x21   : > { %v625_v38 = vrot.slane %v551_v32, 7  ;;  %v626_v39 = vrot.slane %v552_v33, 7  ;;  %v1979_v18 = vunpack.c.l.bf16 %v1978_v10  ;;  %v1980_v22 = vunpack.c.h.bf16 %v1978_v10  ;;  %s2448_s9 = smov 16   ;;  %s2450_s25 = smov 28   ;;  %v1989_v10 = vld [vmem:[%s2543_s16 + $0x28] sm:$0xff]  }
  0x22   : > { %v2598_v42 = vsel %vm615_vm0, %v622_v34, %v623_v35  ;;  %v2601_v43 = vsel %vm615_vm0, 0.0, %v622_v34  ;;  %v2604_v44 = vsel %vm615_vm0, %v619_v36, %v620_v37  ;;  %v2607_v45 = vsel %vm615_vm0, 0.0, %v619_v36  ;;  %s2848_s21 = scalar_select %p462_p11, 1, 0 }
  0x23   : > { %v2086_v46 = vpack.i.bf16 %v2598_v42, %v2601_v43  ;;  %v2081_v47 = vpack.i.bf16 %v2604_v44, %v2607_v45  ;;  %v2616_v48 = vsel %vm615_vm0, %v625_v38, %v626_v39  ;;  %v2619_v49 = vsel %vm615_vm0, 0.0, %v625_v38  ;;  %s1889_s12 = sshll.u32 %s2647_s22, 1 }
  0x24   : > { %v2627_v50 = vpack.i.bf16 %v2616_v48, %v2619_v49  ;;  %v685_v51 = vsel %vm615_vm0, %v620_v37, 0.0  ;;  %v805_v52 = vrot.slane %v2607_v45, 2  ;;  %v806_v53 = vrot.slane %v2604_v44, 2  ;;  %s591_s24 = scvt.s32.f32 %s2848_s21 }
  0x25   : > { %2087 = vrot.lane.b32.xlu1 %v2086_v46, %s2444_s19  ;;  %2082 = vrot.lane.b32.xlu0 %v2081_v47, %s2444_s19  ;;  %v808_v54 = vrot.slane %v685_v51, 2  ;;  %v716_v55 = vrot.slane %v2607_v45, 1  ;;  %v717_v56 = vrot.slane %v2604_v44, 1  ;;  %v719_v57 = vrot.slane %v685_v51, 1  ;;  %v2401_v47 = vld [vmem:[%s3274_s3] sm:$0xff]  }
  0x26   : > { %v686_v58 = vsel %vm615_vm0, %v623_v35, 0.0  ;;  %v721_v59 = vrot.slane %v2601_v43, 1  ;;  %v722_v60 = vrot.slane %v2598_v42, 1  ;;  %v807_v61 = vsel %vm799_vm1, %v805_v52, %v806_v53  ;;  %2003 = vmatprep.subr.bf16.mxu0 %v2401_v47  ;;  %2025 = vmatprep.subr.bf16.mxu1 %v2401_v47 }
  0x27   : > { %v809_v62 = vsel %vm799_vm1, %v806_v53, %v808_v54  ;;  %v718_v63 = vsel %vm710_vm2, %v716_v55, %v717_v56  ;;  %v724_v1 = vrot.slane %v686_v58, 1  ;;  %v720_v3 = vsel %vm710_vm2, %v717_v56, %v719_v57  ;;  %v1988_v53 = vld [vmem:[%s2543_s16 + $0x20] sm:$0xff]   ;;  %2004 = vmatpush3.bf16.msra.mxu0 %v2401_v47  ;;  %2028 = vmatpush3.bf16.msra.mxu1 %v2401_v47 }
  0x28   : > { %v2106_v2 = vpack.i.bf16 %v809_v62, %v807_v61  ;;  %v810_v4 = vrot.slane %v2601_v43, 2  ;;  %v2101_v5 = vpack.i.bf16 %v720_v3, %v718_v63  ;;  %v723_v6 = vsel %vm710_vm2, %v721_v59, %v722_v60  ;;  %v2402_v63 = vld [vmem:[%s3274_s3 + $0x8] sm:$0xff]  }
  0x29   : > { %2097 = vrot.lane.b32.xlu1 %v2627_v50, %s2445_s15  ;;  %2092 = vrot.lane.b32.xlu0 %v2086_v46, %s2445_s15  ;;  %v725_v7 = vsel %vm710_vm2, %v722_v60, %v724_v1  ;;  %v811_v8 = vrot.slane %v2598_v42, 2  ;;  %v813_v11 = vrot.slane %v686_v58, 2  ;;  %v687_v12 = vsel %vm615_vm0, %v626_v39, 0.0 }
  0x2a   : > { %v2668_v15 = vpack.i.bf16 %v725_v7, %v723_v6  ;;  %v726_v19 = vrot.slane %v2619_v49, 1  ;;  %v727_v20 = vrot.slane %v2616_v48, 1  ;;  %v729_v21 = vrot.slane %v687_v12, 1  ;;  %2005 = vmatprep.subr.bf16.mxu0 %v2402_v63  ;;  %2026 = vmatprep.subr.bf16.mxu1 %v2402_v63 }
  0x2b   : > { %v812_v16 = vsel %vm799_vm1, %v810_v4, %v811_v8  ;;  %v814_v17 = vsel %vm799_vm1, %v811_v8, %v813_v11  ;;  %v567_v23 = vmul.f32 %v1979_v18, %v2548_v0  ;;  %v576_v24 = vstv %s575_s23  ;;  %2006 = vmatpush3.bf16.msra.mxu0 %v2402_v63  ;;  %2029 = vmatpush3.bf16.msra.mxu1 %v2402_v63 }
  0x2c   : > { %v2677_v25 = vpack.i.bf16 %v814_v17, %v812_v16  ;;  %v568_v26 = vmul.f32 %v1980_v22, %v2548_v0  ;;  %v628_v27 = vrot.slane %v553_v13, 7  ;;  %v815_v29 = vrot.slane %v2619_v49, 2 }
  0x2d   : > { %2107 = vrot.lane.b32.xlu1 %v2106_v2, %s2446_s17  ;;  %2102 = vrot.lane.b32.xlu0 %v2101_v5, %s2447_s18  ;;  %v569_v28 = vadd.f32 %v2558_v9, %v567_v23  ;;  %v816_v30 = vrot.slane %v2616_v48, 2  ;;  %v818_v31 = vrot.slane %v687_v12, 2  ;;  %v728_v32 = vsel %vm710_vm2, %v726_v19, %v727_v20 }
  0x2e   : > { %v730_v33 = vsel %vm710_vm2, %v727_v20, %v729_v21  ;;  %v570_v34 = vadd.f32 %v2558_v9, %v568_v26  ;;  %v629_v35 = vrot.slane %v554_v14, 7  ;;  %v2690_v38 = vsel %vm615_vm0, 0.0, %v628_v27  ;;  %v1990_v20 = vld [vmem:[%s2543_s16 + $0x30] sm:$0xff]   ;;  %v1991_v26 = vld [vmem:[%s2543_s16 + $0x38] sm:$0xff]   ;;  %s2796_s16 = sshll.u32 %s442_s14, 2 }
  0x2f   : > { %v571_v36 = vmax.f32 %v569_v28, 0.0  ;;  %v2692_v39 = vpack.i.bf16 %v730_v33, %v728_v32  ;;  %v817_v41 = vsel %vm799_vm1, %v815_v29, %v816_v30  ;;  %v819_v46 = vsel %vm799_vm1, %v816_v30, %v818_v31  ;;  %s444_s14 = scalar_lea.vmem %s3273_s2, %s2796_s16 }
  0x30   : > { %v572_v37 = vmax.f32 %v570_v34, 0.0  ;;  %v2703_v52 = vsel %vm615_vm0, %v628_v27, %v629_v35  ;;  %v731_v55 = vrot.slane %v2690_v38, 1  ;;  %v2707_v57 = vpack.i.bf16 %v819_v46, %v817_v41 }
  0x31   : > { %2117 = vrot.lane.b32.xlu1 %v2668_v15, %s2448_s9  ;;  %2112 = vrot.lane.b32.xlu0 %v2101_v5, %s2448_s9  ;;  %v577_v40 = vmul.f32 %v576_v24, %v571_v36  ;;  %v2710_v58 = vsel %vm615_vm0, %v629_v35, 0.0  ;;  %v732_v60 = vrot.slane %v2703_v52, 1  ;;  %v1963_v61 = vunpack.c.l.bf16 %v1988_v53 }
  0x32   : > { %v578_v51 = vmul.f32 %v576_v24, %v572_v37  ;;  %v1964_v62 = vunpack.c.h.bf16 %v1988_v53  ;;  %v734_v11 = vrot.slane %v2710_v58, 1  ;;  %v820_v12 = vrot.slane %v2690_v38, 2 }
  0x33   : > { %v616_v54 = vrot.slane %v577_v40, 7  ;;  %v517_v13 = vmul.f32 %v1963_v61, %v2548_v0  ;;  %v1967_v24 = vunpack.c.l.bf16 %v1989_v10  ;;  %v733_v27 = vsel %vm710_vm2, %v731_v55, %v732_v60 }
  0x34   : > { %v617_v56 = vrot.slane %v578_v51, 7  ;;  %v518_v14 = vmul.f32 %v1964_v62, %v2548_v0  ;;  %v821_v28 = vrot.slane %v2703_v52, 2  ;;  %v823_v29 = vrot.slane %v2710_v58, 2 }
  0x35   : > { %2127 = vrot.lane.b32.xlu1 %v2677_v25, %s2449_s20  ;;  %2122 = vrot.lane.b32.xlu0 %v2106_v2, %s2449_s20  ;;  %v2713_v59 = vsel %vm615_vm0, 0.0, %v616_v54  ;;  %v539_v23 = vadd.f32 %v2558_v9, %v517_v13  ;;  %v519_v32 = vmul.f32 %v1967_v24, %v2548_v0  ;;  %v1971_v33 = vunpack.c.l.bf16 %v1990_v20 }
  0x36   : > { %v2724_v1 = vsel %vm615_vm0, %v616_v54, %v617_v56  ;;  %v684_v2 = vsel %vm615_vm0, %v617_v56, 0.0  ;;  %v800_v3 = vrot.slane %v2713_v59, 2  ;;  %v711_v4 = vrot.slane %v2713_v59, 1 }
  0x37   : > { %v801_v5 = vrot.slane %v2724_v1, 2  ;;  %v803_v6 = vrot.slane %v684_v2, 2  ;;  %v712_v7 = vrot.slane %v2724_v1, 1  ;;  %v714_v8 = vrot.slane %v684_v2, 1 }
  0x38   : > { %v540_v30 = vadd.f32 %v2558_v9, %v518_v14  ;;  %v555_v31 = vmax.f32 %v539_v23, 0.0  ;;  %v1972_v35 = vunpack.c.h.bf16 %v1990_v20  ;;  %v1975_v36 = vunpack.c.l.bf16 %v1991_v26 }
  0x39   : > { %2137 = vrot.lane.b32.xlu1 %v2692_v39, %s2450_s25  ;;  %2132 = vrot.lane.b32.xlu0 %v2668_v15, %s2450_s25  ;;  %v802_v16 = vsel %vm799_vm1, %v800_v3, %v801_v5  ;;  %v804_v17 = vsel %vm799_vm1, %v801_v5, %v803_v6  ;;  %v713_v18 = vsel %vm710_vm2, %v711_v4, %v712_v7  ;;  %v1976_v37 = vunpack.c.h.bf16 %v1991_v26 }
  0x3a   : > { %v715_v19 = vsel %vm710_vm2, %v712_v7, %v714_v8  ;;  %v2161_v21 = vpack.i.bf16 %v804_v17, %v802_v16  ;;  %v556_v34 = vmax.f32 %v540_v30, 0.0  ;;  %v631_v40 = vrot.slane %v555_v31, 7 }
  0x3b   : > { %v2151_v22 = vpack.i.bf16 %v715_v19, %v713_v18  ;;  %v541_v46 = vadd.f32 %v2558_v9, %v519_v32  ;;  %v521_v47 = vmul.f32 %v1971_v33, %v2548_v0  ;;  %v522_v53 = vmul.f32 %v1972_v35, %v2548_v0 }
  0x3c   : > { %v632_v51 = vrot.slane %v556_v34, 7  ;;  %v2759_v54 = vmul.f32 %v1975_v36, %v2548_v0  ;;  %v2762_v55 = vmul.f32 %v1976_v37, %v2548_v0  ;;  %v735_v56 = vsel %vm710_vm2, %v732_v60, %v734_v11 }
  0x3d   : > { %2147 = vrot.lane.b32.xlu1 %v2668_v15, %s2447_s18  ;;  %2142 = vrot.lane.b32.xlu0 %v2677_v25, %s2451_s8  ;;  %v1968_v15 = vunpack.c.h.bf16 %v1989_v10  ;;  %v557_v61 = vmax.f32 %v541_v46, 0.0  ;;  %v543_v62 = vadd.f32 %v2558_v9, %v521_v47  ;;  %v2769_v63 = vpack.i.bf16 %v2703_v52, %v2690_v38 }
  0x3e   : > { %v822_v2 = vsel %vm799_vm1, %v820_v12, %v821_v28  ;;  %v824_v3 = vsel %vm799_vm1, %v821_v28, %v823_v29  ;;  %v2778_v60 = vsel %vm615_vm0, %v631_v40, %v632_v51  ;;  %v2781_v4 = vsel %vm615_vm0, 0.0, %v631_v40 }
  0x3f   : > { %v520_v41 = vmul.f32 %v1968_v15, %v2548_v0  ;;  %v2783_v5 = vpack.i.bf16 %v735_v56, %v733_v27  ;;  %v2786_v6 = vsel %vm615_vm0, %v632_v51, 0.0  ;;  %v634_v8 = vrot.slane %v557_v61, 7 }
  0x40   : > { %v2788_v10 = vpack.i.bf16 %v824_v3, %v822_v2  ;;  %v544_v11 = vadd.f32 %v2558_v9, %v522_v53  ;;  %v736_v12 = vrot.slane %v2781_v4, 1  ;;  %v737_v13 = vrot.slane %v2778_v60, 1 }
  0x41   : > { %2162 = vrot.lane.b32.xlu1 %v2161_v21, %s2446_s17  ;;  %2152 = vrot.lane.b32.xlu0 %v2151_v22, %s2447_s18  ;;  %v542_v58 = vadd.f32 %v2558_v9, %v520_v41  ;;  %v2804_v16 = vpack.i.bf16 %v2778_v60, %v2781_v4  ;;  %v739_v17 = vrot.slane %v2786_v6, 1  ;;  %v825_v18 = vrot.slane %v2781_v4, 2  ;;  %v1982_v41 = vld [vmem:[%s444_s14] sm:$0xff]  }
  0x42   : > { %v2809_v19 = vsel %vm615_vm0, 0.0, %v634_v8  ;;  %v826_v23 = vrot.slane %v2778_v60, 2  ;;  %v738_v28 = vsel %vm710_vm2, %v736_v12, %v737_v13  ;;  %v559_v30 = vmax.f32 %v543_v62, 0.0 }
  0x43   : > { %v558_v7 = vmax.f32 %v542_v58, 0.0  ;;  %v741_v22 = vrot.slane %v2809_v19, 1  ;;  %v560_v31 = vmax.f32 %v544_v11, 0.0  ;;  %v828_v15 = vrot.slane %v2786_v6, 2 }
  0x44   : > { %v637_v37 = vrot.slane %v559_v30, 7  ;;  %v740_v46 = vsel %vm710_vm2, %v737_v13, %v739_v17  ;;  %v1983_v62 = vunpack.c.l.bf16 %v1982_v41  ;;  %v545_v11 = vadd.f32 %v2558_v9, %v2759_v54 }
  0x45   : > { %2167 = vrot.lane.b32.xlu1 %v2692_v39, %s2447_s18  ;;  %2157 = vrot.lane.b32.xlu0 %v2707_v57, %s2451_s8  ;;  %v635_v14 = vrot.slane %v558_v7, 7  ;;  %v638_v40 = vrot.slane %v560_v31, 7  ;;  %v592_v31 = vstv %s591_s24 }
  0x46   : > { %v2843_v51 = vsel %vm615_vm0, 0.0, %v637_v37 }
  0x47   : > { %v2812_v20 = vsel %vm615_vm0, %v634_v8, %v635_v14  ;;  %v690_v21 = vsel %vm615_vm0, %v635_v14, 0.0  ;;  %v691_v53 = vsel %vm615_vm0, %v638_v40, 0.0  ;;  %v746_v56 = vrot.slane %v2843_v51, 1 }
  0x48   : > { %v742_v24 = vrot.slane %v2812_v20, 1  ;;  %v744_v26 = vrot.slane %v690_v21, 1  ;;  %v831_v27 = vrot.slane %v2812_v20, 2  ;;  %v833_v29 = vrot.slane %v690_v21, 2 }
  0x49   : > { %2177 = vrot.lane.b32.xlu1 %v2707_v57, %s2446_s17  ;;  %2172 = vrot.lane.b32.xlu0 %v2677_v25, %s2446_s17  ;;  %v830_v25 = vrot.slane %v2809_v19, 2  ;;  %v749_v61 = vrot.slane %v691_v53, 1  ;;  %v835_v2 = vrot.slane %v2843_v51, 2  ;;  %v838_v6 = vrot.slane %v691_v53, 2 }
  0x4a   : > { %v743_v32 = vsel %vm710_vm2, %v741_v22, %v742_v24  ;;  %v745_v33 = vsel %vm710_vm2, %v742_v24, %v744_v26  ;;  %v834_v36 = vsel %vm799_vm1, %v831_v27, %v833_v29  ;;  %v561_v21 = vmax.f32 %v545_v11, 0.0 }
  0x4b   : > { %v832_v34 = vsel %vm799_vm1, %v830_v25, %v831_v27  ;;  %v2833_v35 = vpack.i.bf16 %v745_v33, %v743_v32  ;;  %v1984_v22 = vunpack.c.h.bf16 %v1982_v41  ;;  %v583_v26 = vmul.f32 %v1983_v62, %v2548_v0 }
  0x4c   : > { %v2837_v47 = vpack.i.bf16 %v834_v36, %v832_v34  ;;  %v640_v25 = vrot.slane %v561_v21, 7  ;;  %v2877_v27 = vpack.i.bf16 %v740_v46, %v738_v28  ;;  %v829_v29 = vsel %vm799_vm1, %v826_v23, %v828_v15 }
  0x4d   : > { %2187 = vrot.lane.b32.xlu1 %v2769_v63, %s2444_s19  ;;  %2182 = vrot.lane.b32.xlu0 %v2627_v50, %s2444_s19  ;;  %v2840_v50 = vsel %vm615_vm0, %v637_v37, %v638_v40  ;;  %v584_v30 = vmul.f32 %v1984_v22, %v2548_v0  ;;  %v585_v28 = vadd.f32 %v2558_v9, %v583_v26 }
  0x4e   : > { %v747_v58 = vrot.slane %v2840_v50, 1  ;;  %v836_v3 = vrot.slane %v2840_v50, 2 }
  0x4f   : > { %v586_v40 = vadd.f32 %v2558_v9, %v584_v30  ;;  %v587_v46 = vmax.f32 %v585_v28, 0.0 }
  0x50   : > { %v748_v7 = vsel %vm710_vm2, %v746_v56, %v747_v58  ;;  %v750_v8 = vsel %vm710_vm2, %v747_v58, %v749_v61  ;;  %v837_v13 = vsel %vm799_vm1, %v835_v2, %v836_v3  ;;  %v839_v14 = vsel %vm799_vm1, %v836_v3, %v838_v6 }
  0x51   : > { %2197 = vrot.lane.b32.xlu1 %v2783_v5, %s2448_s9  ;;  %2192 = vrot.lane.b32.xlu0 %v2692_v39, %s2448_s9  ;;  %v546_v39 = vadd.f32 %v2558_v9, %v2762_v55  ;;  %v2864_v12 = vpack.i.bf16 %v750_v8, %v748_v7  ;;  %v2873_v17 = vpack.i.bf16 %v839_v14, %v837_v13  ;;  %v588_v61 = vmax.f32 %v586_v40, 0.0  ;;  %v2403_v9 = vld [vmem:[%s3274_s3 + $0x10] ss:$0 sps:$4 sm:$0x33]  }
  0x52   : > { %v827_v55 = vsel %vm799_vm1, %v825_v18, %v826_v23  ;;  %v682_v18 = vsel %vm615_vm0, 0.0, %v640_v25  ;;  %v593_v2 = vmul.f32 %v592_v31, %v587_v46  ;;  %v1391_v11 = vsel %vm1389_vm3, %v2403_v9, 0  ;;  %2031 = vmatprep.subr.msk.bf16.mxu0 %vm1389_vm3, %v2403_v9  ;;  %2032 = vmatprep.subr.msk.bf16.mxu1 %vm1389_vm3, %v2403_v9 }
  0x53   : > { %v562_v54 = vmax.f32 %v546_v39, 0.0  ;;  %v938_v23 = vrot.slane %v682_v18, 1  ;;  %v991_v34 = vrot.slane %v682_v18, 2  ;;  %v594_v3 = vmul.f32 %v592_v31, %v588_v61  ;;  %2008 = vmatpush3.bf16.msra.mxu0 %v1391_v11  ;;  %2030 = vmatpush3.bf16.msra.mxu1 %v1391_v11 }
  0x54   : > { %v643_v6 = vrot.slane %v593_v2, 7  ;;  %v2241_v7 = vpack.i.bf16 %v829_v29, %v827_v55 }
  0x55   : > { %2207 = vrot.lane.b32.xlu1 %v2788_v10, %s2449_s20  ;;  %2202 = vrot.lane.b32.xlu0 %v2707_v57, %s2449_s20  ;;  %v641_v24 = vrot.slane %v562_v54, 7  ;;  %v644_v8 = vrot.slane %v594_v3, 7 }
  0x56   : > { %v683_v39 = vsel %vm615_vm0, 0.0, %v643_v6 }
  0x57   : > { %v642_v57 = vsel %vm615_vm0, %v640_v25, %v641_v24  ;;  %v692_v32 = vsel %vm615_vm0, %v641_v24, 0.0  ;;  %v645_v13 = vsel %vm615_vm0, %v643_v6, %v644_v8  ;;  %v1094_v14 = vrot.slane %v683_v39, 1 }
  0x58   : > { %v2889_v33 = vpack.i.bf16 %v642_v57, %v682_v18  ;;  %v939_v15 = vrot.slane %v642_v57, 1  ;;  %v941_v0 = vrot.slane %v692_v32, 1  ;;  %v992_v36 = vrot.slane %v642_v57, 2 }
  0x59   : > { %2217 = vrot.lane.b32.xlu1 %v2804_v16, %s2445_s15  ;;  %2212 = vrot.lane.b32.xlu0 %v2769_v63, %s2445_s15  ;;  %v994_v37 = vrot.slane %v692_v32, 2  ;;  %v1147_v21 = vrot.slane %v683_v39, 2  ;;  %v693_v54 = vsel %vm615_vm0, %v644_v8, 0.0  ;;  %v2376_v22 = vpack.i.bf16 %v645_v13, %v683_v39 }
  0x5a   : > { %v940_v63 = vsel %vm710_vm2, %v938_v23, %v939_v15  ;;  %v942_v41 = vsel %vm710_vm2, %v939_v15, %v941_v0  ;;  %v993_v56 = vsel %vm799_vm1, %v991_v34, %v992_v36  ;;  %v1148_v25 = vrot.slane %v645_v13, 2 }
  0x5b   : > { %v2898_v53 = vpack.i.bf16 %v942_v41, %v940_v63  ;;  %v995_v58 = vsel %vm799_vm1, %v992_v36, %v994_v37  ;;  %v1097_v24 = vrot.slane %v693_v54, 1  ;;  %v1150_v55 = vrot.slane %v693_v54, 2 }
  0x5c   : > { %v2905_v62 = vpack.i.bf16 %v995_v58, %v993_v56  ;;  %v1149_v30 = vsel %vm799_vm1, %v1147_v21, %v1148_v25  ;;  %v2266_v32 = vpack.i.bf16 %v2812_v20, %v2809_v19 }
  0x5d   : > { %2227 = vrot.lane.b32.xlu1 %v2877_v27, %s2450_s25  ;;  %2222 = vrot.lane.b32.xlu0 %v2783_v5, %s2450_s25  ;;  %v1151_v57 = vsel %vm799_vm1, %v1148_v25, %v1150_v55 }
  0x5e   : > { %v2396_v18 = vpack.i.bf16 %v1151_v57, %v1149_v30 }
  0x61   : > { %2237 = vrot.lane.b32.xlu1 %v2783_v5, %s2447_s18  ;;  %2232 = vrot.lane.b32.xlu0 %v2788_v10, %s2451_s8  ;;  %v1095_v5 = vrot.slane %v645_v13, 1 }
  0x63   : > { %v1096_v26 = vsel %vm710_vm2, %v1094_v14, %v1095_v5  ;;  %v1098_v29 = vsel %vm710_vm2, %v1095_v5, %v1097_v24 }
  0x64   : > { %v2386_v31 = vpack.i.bf16 %v1098_v29, %v1096_v26 }
  0x65   : > { %2247 = vrot.lane.b32.xlu1 %v2877_v27, %s2447_s18  ;;  %2242 = vrot.lane.b32.xlu0 %v2241_v7, %s2451_s8 }
  0x69   : > { %2257 = vrot.lane.b32.xlu1 %v2241_v7, %s2446_s17  ;;  %2252 = vrot.lane.b32.xlu0 %v2788_v10, %s2446_s17  ;;  %v2296_v10 = vpack.i.bf16 %v2840_v50, %v2843_v51 }
  0x6d   : > { %2267 = vrot.lane.b32.xlu1 %v2266_v32, %s2444_s19  ;;  %2262 = vrot.lane.b32.xlu0 %v2804_v16, %s2444_s19 }
  0x71   : > { %2277 = vrot.lane.b32.xlu1 %v2833_v35, %s2448_s9  ;;  %2272 = vrot.lane.b32.xlu0 %v2877_v27, %s2448_s9 }
  0x75   : > { %2287 = vrot.lane.b32.xlu1 %v2837_v47, %s2449_s20  ;;  %2282 = vrot.lane.b32.xlu0 %v2241_v7, %s2449_s20 }
  0x79   : > { %2297 = vrot.lane.b32.xlu1 %v2296_v10, %s2445_s15  ;;  %2292 = vrot.lane.b32.xlu0 %v2266_v32, %s2445_s15 }
  0x7d   : > { %2307 = vrot.lane.b32.xlu1 %v2864_v12, %s2450_s25  ;;  %2302 = vrot.lane.b32.xlu0 %v2833_v35, %s2450_s25 }
  0x81   : > { %2317 = vrot.lane.b32.xlu1 %v2833_v35, %s2447_s18  ;;  %2312 = vrot.lane.b32.xlu0 %v2837_v47, %s2451_s8 }
  0x85   : > { %2327 = vrot.lane.b32.xlu1 %v2864_v12, %s2447_s18  ;;  %2322 = vrot.lane.b32.xlu0 %v2873_v17, %s2451_s8 }
  0x89   : > { %2337 = vrot.lane.b32.xlu1 %v2873_v17, %s2446_s17  ;;  %2332 = vrot.lane.b32.xlu0 %v2837_v47, %s2446_s17  ;;  %s3185_s17 = scalar_lea.vmem %s3277_s6, %s1866_s13 }
  0x8d   : > { %2347 = vrot.lane.b32.xlu1 %v2889_v33, %s2444_s19  ;;  %2342 = vrot.lane.b32.xlu0 %v2296_v10, %s2444_s19 }
  0x91   : > { %2357 = vrot.lane.b32.xlu1 %v2898_v53, %s2448_s9  ;;  %2352 = vrot.lane.b32.xlu0 %v2864_v12, %s2448_s9  ;;  %s467_s9 = scalar_lea.vmem %s3278_s7, %s1889_s12 }
  0x95   : > { %2367 = vrot.lane.b32.xlu1 %v2905_v62, %s2449_s20  ;;  %2362 = vrot.lane.b32.xlu0 %v2873_v17, %s2449_s20 }
  0x97   : > { %v2088_v16 = vpop.permute.xlu1 %2087  ;;  %v2967_v35 = vpop.permute.xlu0 %2082 }
  0x98   : > { %v2090_v9 = vunpack.i.h.bf16 %v2088_v16  ;;  %v2085_v2 = vunpack.i.h.bf16 %v2967_v35 }
  0x99   : > { %2377 = vrot.lane.b32.xlu1 %v2376_v22, %s2445_s15  ;;  %2372 = vrot.lane.b32.xlu0 %v2889_v33, %s2445_s15 }
  0x9b   : > { %v2972_v47 = vpop.permute.xlu1 %2097  ;;  %v2974_v27 = vpop.permute.xlu0 %2092 }
  0x9c   : > { %v2099_v3 = vunpack.i.l.bf16 %v2972_v47  ;;  %v2095_v24 = vunpack.i.h.bf16 %v2974_v27  ;;  %v2094_v55 = vunpack.i.l.bf16 %v2974_v27 }
  0x9d   : > { %2387 = vrot.lane.b32.xlu1 %v2386_v31, %s2450_s25  ;;  %2382 = vrot.lane.b32.xlu0 %v2898_v53, %s2450_s25 }
  0x9f   : > { %v2108_v12 = vpop.permute.xlu1 %2107  ;;  %v2103_v28 = vpop.permute.xlu0 %2102 }
  0xa0   : > { %v2105_v0 = vunpack.i.h.bf16 %v2103_v28  ;;  %v2104_v34 = vunpack.i.l.bf16 %v2103_v28  ;;  %v2110_v40 = vunpack.i.h.bf16 %v2108_v12  ;;  %v2109_v63 = vunpack.i.l.bf16 %v2108_v12 }
  0xa1   : > { %2397 = vrot.lane.b32.xlu1 %v2396_v18, %s2451_s8  ;;  %2392 = vrot.lane.b32.xlu0 %v2905_v62, %s2451_s8  ;;  %v2089_v62 = vunpack.i.l.bf16 %v2088_v16 }
  0xa2   : > { %v1204_v41 = vsel %vm1200_vm4, %v2604_v44, %v2105_v0  ;;  %v1203_v46 = vsel %vm1200_vm4, %v2607_v45, %v2104_v34  ;;  %v2084_v44 = vunpack.i.l.bf16 %v2967_v35  ;;  %v2100_v45 = vunpack.i.h.bf16 %v2972_v47 }
  0xa3   : > { %v2118_v17 = vpop.permute.xlu1 %2117  ;;  %v2982_v23 = vpop.permute.xlu0 %2112  ;;  %v1221_v58 = vsel %vm1217_vm5, %v1204_v41, %v2110_v40  ;;  %v1220_v61 = vsel %vm1217_vm5, %v1203_v46, %v2109_v63 }
  0xa4   : > { %v2120_v6 = vunpack.i.h.bf16 %v2118_v17  ;;  %v2119_v7 = vunpack.i.l.bf16 %v2118_v17  ;;  %v1237_v8 = vsel %vm1234_vm6, %v1220_v61, %v2089_v62  ;;  %v1238_v11 = vsel %vm1234_vm6, %v1221_v58, %v2090_v9 }
  0xa5   : > { %v2115_v26 = vunpack.i.h.bf16 %v2982_v23  ;;  %v2114_v29 = vunpack.i.l.bf16 %v2982_v23 }
  0xa6   : > { %v1254_v30 = vsel %vm1251_vm7, %v1237_v8, %v2119_v7  ;;  %v1255_v31 = vsel %vm1251_vm7, %v1238_v11, %v2120_v6 }
  0xa7   : > { %v2128_v33 = vpop.permute.xlu1 %2127  ;;  %v2984_v15 = vpop.permute.xlu0 %2122 }
  0xa8   : > { %v2130_v39 = vunpack.i.h.bf16 %v2128_v33  ;;  %v2129_v13 = vunpack.i.l.bf16 %v2128_v33  ;;  %v2125_v32 = vunpack.i.h.bf16 %v2984_v15  ;;  %v2124_v10 = vunpack.i.l.bf16 %v2984_v15 }
  0xaa   : > { %v1271_v12 = vsel %vm1268_vm8, %v1254_v30, %v2129_v13  ;;  %v1272_v28 = vsel %vm1268_vm8, %v1255_v31, %v2130_v39 }
  0xab   : > { %v2986_v36 = vpop.permute.xlu1 %2137  ;;  %v2988_v37 = vpop.permute.xlu0 %2132  ;;  %v1288_v62 = vsel %vm1285_vm9, %v1271_v12, %v2099_v3 }
  0xac   : > { %v2139_v23 = vunpack.i.l.bf16 %v2986_v36  ;;  %v2135_v0 = vunpack.i.h.bf16 %v2988_v37  ;;  %v2134_v34 = vunpack.i.l.bf16 %v2988_v37 }
  0xae   : > { %v1305_v8 = vsel %vm1302_vm10, %v1288_v62, %v2139_v23 }
  0xaf   : > { %v2994_v53 = vpop.permute.xlu1 %2147  ;;  %v2996_v56 = vpop.permute.xlu0 %2142 }
  0xb0   : > { %v2145_v37 = vunpack.i.h.bf16 %v2996_v56  ;;  %v2149_v30 = vunpack.i.l.bf16 %v2994_v53 }
  0xb3   : > { %v2163_v14 = vpop.permute.xlu1 %2162  ;;  %v2153_v21 = vpop.permute.xlu0 %2152 }
  0xb4   : > { %v2165_v54 = vunpack.i.h.bf16 %v2163_v14  ;;  %v2164_v22 = vunpack.i.l.bf16 %v2163_v14  ;;  %v2155_v5 = vunpack.i.h.bf16 %v2153_v21  ;;  %v2154_v25 = vunpack.i.l.bf16 %v2153_v21 }
  0xb6   : > { %v1202_v57 = vsel %vm1200_vm4, %v2724_v1, %v2155_v5  ;;  %v1201_v18 = vsel %vm1200_vm4, %v2713_v59, %v2154_v25  ;;  %v2140_v59 = vunpack.i.h.bf16 %v2986_v36 }
  0xb7   : > { %v1219_v16 = vsel %vm1217_vm5, %v1202_v57, %v2165_v54  ;;  %v1218_v35 = vsel %vm1217_vm5, %v1201_v18, %v2164_v22  ;;  %v2168_v47 = vpop.permute.xlu1 %2167  ;;  %v2158_v27 = vpop.permute.xlu0 %2157 }
  0xb8   : > { %v1236_v17 = vsel %vm1234_vm6, %v1219_v16, %v2085_v2  ;;  %v1235_v1 = vsel %vm1234_vm6, %v1218_v35, %v2084_v44  ;;  %v2160_v41 = vunpack.i.h.bf16 %v2158_v27  ;;  %v2159_v46 = vunpack.i.l.bf16 %v2158_v27 }
  0xb9   : > { %v1252_v33 = vsel %vm1251_vm7, %v1235_v1, %v2114_v29  ;;  %v1253_v15 = vsel %vm1251_vm7, %v1236_v17, %v2115_v26  ;;  %v2144_v2 = vunpack.i.l.bf16 %v2996_v56  ;;  %v1289_v44 = vsel %vm1285_vm9, %v1272_v28, %v2100_v45 }
  0xba   : > { %v1269_v40 = vsel %vm1268_vm8, %v1252_v33, %v2124_v10  ;;  %v1270_v63 = vsel %vm1268_vm8, %v1253_v15, %v2125_v32  ;;  %v1306_v11 = vsel %vm1302_vm10, %v1289_v44, %v2140_v59  ;;  %v1322_v13 = vsel %vm1319_vm11, %v1305_v8, %v2159_v46 }
  0xbb   : > { %v2178_v58 = vpop.permute.xlu1 %2177  ;;  %v2173_v61 = vpop.permute.xlu0 %2172  ;;  %v1286_v9 = vsel %vm1285_vm9, %v1269_v40, %v2094_v55  ;;  %v1287_v36 = vsel %vm1285_vm9, %v1270_v63, %v2095_v24  ;;  %v1323_v3 = vsel %vm1319_vm11, %v1306_v11, %v2160_v41  ;;  %v2170_v55 = vunpack.i.h.bf16 %v2168_v47 }
  0xbc   : > { %v1303_v6 = vsel %vm1302_vm10, %v1286_v9, %v2134_v34  ;;  %v1304_v7 = vsel %vm1302_vm10, %v1287_v36, %v2135_v0  ;;  %v1337_v54 = vpack.c.bf16 %v1323_v3, %v1322_v13  ;;  %v2169_v26 = vunpack.i.l.bf16 %v2168_v47 }
  0xbd   : > { %v1320_v39 = vsel %vm1319_vm11, %v1303_v6, %v2144_v2  ;;  %v1321_v45 = vsel %vm1319_vm11, %v1304_v7, %v2145_v37  ;;  %v2150_v29 = vunpack.i.h.bf16 %v2994_v53  ;;  %v2180_v31 = vunpack.i.h.bf16 %v2178_v58 }
  0xbe   : > { %v1336_v56 = vpack.c.bf16 %v1321_v45, %v1320_v39  ;;  %v2179_v57 = vunpack.i.l.bf16 %v2178_v58  ;;  %v2175_v18 = vunpack.i.h.bf16 %v2173_v61  ;;  %v2174_v32 = vunpack.i.l.bf16 %v2173_v61 }
  0xbf   : > { %v2188_v14 = vpop.permute.xlu1 %2187  ;;  %v2183_v21 = vpop.permute.xlu0 %2182  ;;  %v1208_v12 = vsel %vm1200_vm4, %v2616_v48, %v2170_v55  ;;  %v1207_v28 = vsel %vm1200_vm4, %v2619_v49, %v2169_v26  ;;  %v1206_v1 = vsel %vm1200_vm4, %v2598_v42, %v2150_v29  ;;  %v1205_v53 = vsel %vm1200_vm4, %v2601_v43, %v2149_v30 }
  0xc0   : > { %2009 = vmatprep.mubr.msk.bf16.mxu0 %vm1364_vm12, %v1336_v56  ;;  %v2190_v10 = vunpack.i.h.bf16 %v2188_v14  ;;  %v2189_v16 = vunpack.i.l.bf16 %v2188_v14  ;;  %v2185_v17 = vunpack.i.h.bf16 %v2183_v21  ;;  %v2184_v47 = vunpack.i.l.bf16 %v2183_v21 }
  0xc1   : > { %2010 = vmatmul.mubr.msk.bf16.vlgmr.msra.gmra.mrb[0].mxu0 %vm1364_vm12, %v1337_v54  ;;  %v1224_v59 = vsel %vm1217_vm5, %v1207_v28, %v2179_v57  ;;  %v1225_v23 = vsel %vm1217_vm5, %v1208_v12, %v2180_v31  ;;  %v1223_v33 = vsel %vm1217_vm5, %v1206_v1, %v2175_v18  ;;  %v1222_v15 = vsel %vm1217_vm5, %v1205_v53, %v2174_v32 }
  0xc2   : > { %v1241_v49 = vsel %vm1234_vm6, %v1224_v59, %v2189_v16  ;;  %v1242_v34 = vsel %vm1234_vm6, %v1225_v23, %v2190_v10  ;;  %v1239_v43 = vsel %vm1234_vm6, %v1222_v15, %v2184_v47  ;;  %v1240_v46 = vsel %vm1234_vm6, %v1223_v33, %v2185_v17 }
  0xc3   : > { %v3047_v22 = vpop.permute.xlu1 %2197  ;;  %v2193_v5 = vpop.permute.xlu0 %2192 }
  0xc4   : > { %v2195_v48 = vunpack.i.h.bf16 %v2193_v5  ;;  %v2194_v0 = vunpack.i.l.bf16 %v2193_v5  ;;  %v2200_v9 = vunpack.i.h.bf16 %v3047_v22  ;;  %v2199_v36 = vunpack.i.l.bf16 %v3047_v22 }
  0xc6   : > { %v1256_v44 = vsel %vm1251_vm7, %v1239_v43, %v2194_v0  ;;  %v1257_v37 = vsel %vm1251_vm7, %v1240_v46, %v2195_v48  ;;  %v1258_v55 = vsel %vm1251_vm7, %v1241_v49, %v2199_v36  ;;  %v1259_v26 = vsel %vm1251_vm7, %v1242_v34, %v2200_v9 }
  0xc7   : > { %v3050_v25 = vpop.permute.xlu1 %2207  ;;  %v2203_v24 = vpop.permute.xlu0 %2202 }
  0xc8   : > { %v2205_v40 = vunpack.i.h.bf16 %v2203_v24  ;;  %v2204_v63 = vunpack.i.l.bf16 %v2203_v24  ;;  %v2210_v6 = vunpack.i.h.bf16 %v3050_v25  ;;  %v2209_v7 = vunpack.i.l.bf16 %v3050_v25 }
  0xca   : > { %v1273_v8 = vsel %vm1268_vm8, %v1256_v44, %v2204_v63  ;;  %v1274_v11 = vsel %vm1268_vm8, %v1257_v37, %v2205_v40  ;;  %v1275_v31 = vsel %vm1268_vm8, %v1258_v55, %v2209_v7  ;;  %v1276_v57 = vsel %vm1268_vm8, %v1259_v26, %v2210_v6 }
  0xcb   : > { %v2218_v35 = vpop.permute.xlu1 %2217  ;;  %v2213_v27 = vpop.permute.xlu0 %2212 }
  0xcc   : > { %v2215_v58 = vunpack.i.h.bf16 %v2213_v27  ;;  %v2214_v61 = vunpack.i.l.bf16 %v2213_v27  ;;  %v2220_v39 = vunpack.i.h.bf16 %v2218_v35  ;;  %v2219_v13 = vunpack.i.l.bf16 %v2218_v35 }
  0xce   : > { %v1290_v21 = vsel %vm1285_vm9, %v1273_v8, %v2214_v61  ;;  %v1291_v45 = vsel %vm1285_vm9, %v1274_v11, %v2215_v58  ;;  %v1292_v16 = vsel %vm1285_vm9, %v1275_v31, %v2219_v13  ;;  %v1293_v35 = vsel %vm1285_vm9, %v1276_v57, %v2220_v39 }
  0xcf   : > { %v2228_v42 = vpop.permute.xlu1 %2227  ;;  %v2223_v41 = vpop.permute.xlu0 %2222 }
  0xd0   : > { %v2225_v62 = vunpack.i.h.bf16 %v2223_v41  ;;  %v2224_v2 = vunpack.i.l.bf16 %v2223_v41  ;;  %v2230_v22 = vunpack.i.h.bf16 %v2228_v42  ;;  %v2229_v5 = vunpack.i.l.bf16 %v2228_v42 }
  0xd2   : > { %v1307_v24 = vsel %vm1302_vm10, %v1290_v21, %v2224_v2  ;;  %v1308_v25 = vsel %vm1302_vm10, %v1291_v45, %v2225_v62  ;;  %v1309_v28 = vsel %vm1302_vm10, %v1292_v16, %v2229_v5  ;;  %v1310_v17 = vsel %vm1302_vm10, %v1293_v35, %v2230_v22 }
  0xd3   : > { %v2238_v3 = vpop.permute.xlu1 %2237  ;;  %v2233_v14 = vpop.permute.xlu0 %2232 }
  0xd4   : > { %v2235_v56 = vunpack.i.h.bf16 %v2233_v14  ;;  %v2234_v54 = vunpack.i.l.bf16 %v2233_v14  ;;  %v2240_v42 = vunpack.i.h.bf16 %v2238_v3  ;;  %v2239_v41 = vunpack.i.l.bf16 %v2238_v3 }
  0xd6   : > { %v1324_v29 = vsel %vm1319_vm11, %v1307_v24, %v2234_v54  ;;  %v1325_v30 = vsel %vm1319_vm11, %v1308_v25, %v2235_v56  ;;  %v1210_v8 = vsel %vm1200_vm4, %v2703_v52, %v2240_v42  ;;  %v1209_v11 = vsel %vm1200_vm4, %v2690_v38, %v2239_v41 }
  0xd7   : > { %v1338_v18 = vpack.c.bf16 %v1325_v30, %v1324_v29  ;;  %v2248_v32 = vpop.permute.xlu1 %2247  ;;  %v2243_v10 = vpop.permute.xlu0 %2242 }
  0xd8   : > { %v2245_v27 = vunpack.i.h.bf16 %v2243_v10  ;;  %v2244_v12 = vunpack.i.l.bf16 %v2243_v10  ;;  %v2250_v40 = vunpack.i.h.bf16 %v2248_v32  ;;  %v2249_v63 = vunpack.i.l.bf16 %v2248_v32 }
  0xd9   : > { %2013 = vmatprep.mubr.msk.bf16.mxu0 %vm1364_vm12, %v1338_v18 }
  0xda   : > { %v1327_v47 = vsel %vm1319_vm11, %v1310_v17, %v2245_v27  ;;  %v1326_v1 = vsel %vm1319_vm11, %v1309_v28, %v2244_v12  ;;  %v1212_v44 = vsel %vm1200_vm4, %v2778_v60, %v2250_v40  ;;  %v1211_v37 = vsel %vm1200_vm4, %v2781_v4, %v2249_v63 }
  0xdb   : > { %v1339_v53 = vpack.c.bf16 %v1327_v47, %v1326_v1  ;;  %v2258_v59 = vpop.permute.xlu1 %2257  ;;  %v2253_v23 = vpop.permute.xlu0 %2252 }
  0xdc   : > { %v2260_v43 = vunpack.i.h.bf16 %v2258_v59  ;;  %v2259_v46 = vunpack.i.l.bf16 %v2258_v59  ;;  %v2255_v58 = vunpack.i.h.bf16 %v2253_v23  ;;  %v2254_v61 = vunpack.i.l.bf16 %v2253_v23 }
  0xdd   : > { %2014 = vmatmul.mubr.msk.bf16.gmra.mrb[4].mxu0 %vm1364_vm12, %v1339_v53 }
  0xde   : > { %v1228_v39 = vsel %vm1217_vm5, %v1211_v37, %v2259_v46  ;;  %v1229_v13 = vsel %vm1217_vm5, %v1212_v44, %v2260_v43  ;;  %v1227_v3 = vsel %vm1217_vm5, %v1210_v8, %v2255_v58  ;;  %v1226_v14 = vsel %vm1217_vm5, %v1209_v11, %v2254_v61 }
  0xdf   : > { %v2268_v33 = vpop.permute.xlu1 %2267  ;;  %v2263_v15 = vpop.permute.xlu0 %2262 }
  0xe0   : > { %v2270_v9 = vunpack.i.h.bf16 %v2268_v33  ;;  %v2269_v36 = vunpack.i.l.bf16 %v2268_v33  ;;  %v2265_v6 = vunpack.i.h.bf16 %v2263_v15  ;;  %v2264_v7 = vunpack.i.l.bf16 %v2263_v15 }
  0xe2   : > { %v1245_v4 = vsel %vm1234_vm6, %v1228_v39, %v2269_v36  ;;  %v1246_v45 = vsel %vm1234_vm6, %v1229_v13, %v2270_v9  ;;  %v1243_v38 = vsel %vm1234_vm6, %v1226_v14, %v2264_v7  ;;  %v1244_v5 = vsel %vm1234_vm6, %v1227_v3, %v2265_v6 }
  0xe3   : > { %v3096_v48 = vpop.permute.xlu1 %2277  ;;  %v2273_v0 = vpop.permute.xlu0 %2272 }
  0xe4   : > { %v2275_v60 = vunpack.i.h.bf16 %v2273_v0  ;;  %v2274_v21 = vunpack.i.l.bf16 %v2273_v0  ;;  %v2280_v55 = vunpack.i.h.bf16 %v3096_v48  ;;  %v2279_v26 = vunpack.i.l.bf16 %v3096_v48 }
  0xe6   : > { %v1260_v31 = vsel %vm1251_vm7, %v1243_v38, %v2274_v21  ;;  %v1261_v57 = vsel %vm1251_vm7, %v1244_v5, %v2275_v60  ;;  %v1262_v48 = vsel %vm1251_vm7, %v1245_v4, %v2279_v26  ;;  %v1263_v0 = vsel %vm1251_vm7, %v1246_v45, %v2280_v55 }
  0xe7   : > { %v3098_v49 = vpop.permute.xlu1 %2287  ;;  %v2283_v34 = vpop.permute.xlu0 %2282 }
  0xe8   : > { %v2285_v56 = vunpack.i.h.bf16 %v2283_v34  ;;  %v2284_v54 = vunpack.i.l.bf16 %v2283_v34  ;;  %v2290_v18 = vunpack.i.h.bf16 %v3098_v49  ;;  %v2289_v32 = vunpack.i.l.bf16 %v3098_v49 }
  0xea   : > { %v1277_v10 = vsel %vm1268_vm8, %v1260_v31, %v2284_v54  ;;  %v1278_v16 = vsel %vm1268_vm8, %v1261_v57, %v2285_v56  ;;  %v1279_v40 = vsel %vm1268_vm8, %v1262_v48, %v2289_v32  ;;  %v1280_v63 = vsel %vm1268_vm8, %v1263_v0, %v2290_v18 }
  0xeb   : > { %v2298_v62 = vpop.permute.xlu1 %2297  ;;  %v2293_v2 = vpop.permute.xlu0 %2292 }
  0xec   : > { %v2295_v24 = vunpack.i.h.bf16 %v2293_v2  ;;  %v2294_v25 = vunpack.i.l.bf16 %v2293_v2  ;;  %v2300_v35 = vunpack.i.h.bf16 %v2298_v62  ;;  %v2299_v27 = vunpack.i.l.bf16 %v2298_v62 }
  0xee   : > { %v1294_v17 = vsel %vm1285_vm9, %v1277_v10, %v2294_v25  ;;  %v1295_v47 = vsel %vm1285_vm9, %v1278_v16, %v2295_v24  ;;  %v1296_v46 = vsel %vm1285_vm9, %v1279_v40, %v2299_v27  ;;  %v1297_v58 = vsel %vm1285_vm9, %v1280_v63, %v2300_v35 }
  0xef   : > { %v2308_v52 = vpop.permute.xlu1 %2307  ;;  %v2303_v22 = vpop.permute.xlu0 %2302 }
  0xf0   : > { %v2305_v29 = vunpack.i.h.bf16 %v2303_v22  ;;  %v2304_v30 = vunpack.i.l.bf16 %v2303_v22  ;;  %v2310_v59 = vunpack.i.h.bf16 %v2308_v52  ;;  %v2309_v23 = vunpack.i.l.bf16 %v2308_v52 }
  0xf2   : > { %v1311_v33 = vsel %vm1302_vm10, %v1294_v17, %v2304_v30  ;;  %v1312_v15 = vsel %vm1302_vm10, %v1295_v47, %v2305_v29  ;;  %v1313_v36 = vsel %vm1302_vm10, %v1296_v46, %v2309_v23  ;;  %v1314_v62 = vsel %vm1302_vm10, %v1297_v58, %v2310_v59 }
  0xf3   : > { %v2318_v12 = vpop.permute.xlu1 %2317  ;;  %v2313_v28 = vpop.permute.xlu0 %2312 }
  0xf4   : > { %v2315_v1 = vunpack.i.h.bf16 %v2313_v28  ;;  %v2314_v53 = vunpack.i.l.bf16 %v2313_v28  ;;  %v2320_v3 = vunpack.i.h.bf16 %v2318_v12  ;;  %v2319_v14 = vunpack.i.l.bf16 %v2318_v12 }
  0xf6   : > { %v1328_v49 = vsel %vm1319_vm11, %v1311_v33, %v2314_v53  ;;  %v1329_v34 = vsel %vm1319_vm11, %v1312_v15, %v2315_v1  ;;  %v1214_v55 = vsel %vm1200_vm4, %v2812_v20, %v2320_v3  ;;  %v1213_v26 = vsel %vm1200_vm4, %v2809_v19, %v2319_v14 }
  0xf7   : > { %v2328_v42 = vpop.permute.xlu1 %2327  ;;  %v2323_v41 = vpop.permute.xlu0 %2322  ;;  %v1340_v43 = vpack.c.bf16 %v1329_v34, %v1328_v49 }
  0xf8   : > { %v2325_v61 = vunpack.i.h.bf16 %v2323_v41  ;;  %v2324_v9 = vunpack.i.l.bf16 %v2323_v41  ;;  %v2330_v60 = vunpack.i.h.bf16 %v2328_v42  ;;  %v2329_v21 = vunpack.i.l.bf16 %v2328_v42 }
  0xf9   : > { %2017 = vmatprep.mubr.msk.bf16.mxu1 %vm1364_vm12, %v1340_v43 }
  0xfa   : > { %v1331_v2 = vsel %vm1319_vm11, %v1314_v62, %v2325_v61  ;;  %v1330_v44 = vsel %vm1319_vm11, %v1313_v36, %v2324_v9  ;;  %v1216_v29 = vsel %vm1200_vm4, %v2840_v50, %v2330_v60  ;;  %v1215_v30 = vsel %vm1200_vm4, %v2843_v51, %v2329_v21 }
  0xfb   : > { %v1341_v37 = vpack.c.bf16 %v1331_v2, %v1330_v44  ;;  %v2338_v6 = vpop.permute.xlu1 %2337  ;;  %v2333_v7 = vpop.permute.xlu0 %2332 }
  0xfc   : > { %v2340_v4 = vunpack.i.h.bf16 %v2338_v6  ;;  %v2339_v45 = vunpack.i.l.bf16 %v2338_v6  ;;  %v2335_v56 = vunpack.i.h.bf16 %v2333_v7  ;;  %v2334_v54 = vunpack.i.l.bf16 %v2333_v7 }
  0xfd   : > { %2018 = vmatmul.mubr.msk.bf16.vlgmr.msra.gmra.mrb[0].mxu1 %vm1364_vm12, %v1341_v37 }
  0xfe   : > { %v1232_v31 = vsel %vm1217_vm5, %v1215_v30, %v2339_v45  ;;  %v1233_v57 = vsel %vm1217_vm5, %v1216_v29, %v2340_v4  ;;  %v1231_v18 = vsel %vm1217_vm5, %v1214_v55, %v2335_v56  ;;  %v1230_v32 = vsel %vm1217_vm5, %v1213_v26, %v2334_v54 }
  0xff   : > { %v2348_v8 = vpop.permute.xlu1 %2347  ;;  %v2343_v11 = vpop.permute.xlu0 %2342 }
 0x100   : > { %v2350_v38 = vunpack.i.h.bf16 %v2348_v8  ;;  %v2349_v5 = vunpack.i.l.bf16 %v2348_v8  ;;  %v2345_v24 = vunpack.i.h.bf16 %v2343_v11  ;;  %v2344_v25 = vunpack.i.l.bf16 %v2343_v11 }
 0x102   : > { %v1249_v12 = vsel %vm1234_vm6, %v1232_v31, %v2349_v5  ;;  %v1250_v50 = vsel %vm1234_vm6, %v1233_v57, %v2350_v38  ;;  %v1247_v51 = vsel %vm1234_vm6, %v1230_v32, %v2344_v25  ;;  %v1248_v28 = vsel %vm1234_vm6, %v1231_v18, %v2345_v24 }
 0x103   : > { %v2358_v39 = vpop.permute.xlu1 %2357  ;;  %v2353_v13 = vpop.permute.xlu0 %2352 }
 0x104   : > { %v2360_v20 = vunpack.i.h.bf16 %v2358_v39  ;;  %v2359_v35 = vunpack.i.l.bf16 %v2358_v39  ;;  %v2355_v27 = vunpack.i.h.bf16 %v2353_v13  ;;  %v2354_v19 = vunpack.i.l.bf16 %v2353_v13 }
 0x106   : > { %v1266_v49 = vsel %vm1251_vm7, %v1249_v12, %v2359_v35  ;;  %v1267_v34 = vsel %vm1251_vm7, %v1250_v50, %v2360_v20  ;;  %v1264_v40 = vsel %vm1251_vm7, %v1247_v51, %v2354_v19  ;;  %v1265_v63 = vsel %vm1251_vm7, %v1248_v28, %v2355_v27 }
 0x107   : > { %v2368_v52 = vpop.permute.xlu1 %2367  ;;  %v2363_v22 = vpop.permute.xlu0 %2362 }
 0x108   : > { %v2370_v17 = vunpack.i.h.bf16 %v2368_v52  ;;  %v2369_v47 = vunpack.i.l.bf16 %v2368_v52  ;;  %v2365_v1 = vunpack.i.h.bf16 %v2363_v22  ;;  %v2364_v53 = vunpack.i.l.bf16 %v2363_v22 }
 0x10a   : > { %v1283_v58 = vsel %vm1268_vm8, %v1266_v49, %v2369_v47  ;;  %v1284_v61 = vsel %vm1268_vm8, %v1267_v34, %v2370_v17  ;;  %v1281_v9 = vsel %vm1268_vm8, %v1264_v40, %v2364_v53  ;;  %v1282_v36 = vsel %vm1268_vm8, %v1265_v63, %v2365_v1 }
 0x10b   : > { %v2378_v10 = vpop.permute.xlu1 %2377  ;;  %v2373_v16 = vpop.permute.xlu0 %2372 }
 0x10c   : > { %v2380_v59 = vunpack.i.h.bf16 %v2378_v10  ;;  %v2379_v23 = vunpack.i.l.bf16 %v2378_v10  ;;  %v2375_v33 = vunpack.i.h.bf16 %v2373_v16  ;;  %v2374_v15 = vunpack.i.l.bf16 %v2373_v16 }
 0x10e   : > { %v1300_v62 = vsel %vm1285_vm9, %v1283_v58, %v2379_v23  ;;  %v1301_v2 = vsel %vm1285_vm9, %v1284_v61, %v2380_v59  ;;  %v1298_v44 = vsel %vm1285_vm9, %v1281_v9, %v2374_v15  ;;  %v1299_v37 = vsel %vm1285_vm9, %v1282_v36, %v2375_v33 }
 0x10f   : > { %v2388_v48 = vpop.permute.xlu1 %2387  ;;  %v2383_v0 = vpop.permute.xlu0 %2382 }
 0x110   : > { %v2390_v42 = vunpack.i.h.bf16 %v2388_v48  ;;  %v2389_v41 = vunpack.i.l.bf16 %v2388_v48  ;;  %v2385_v43 = vunpack.i.h.bf16 %v2383_v0  ;;  %v2384_v46 = vunpack.i.l.bf16 %v2383_v0 }
 0x112   : > { %v1317_v3 = vsel %vm1302_vm10, %v1300_v62, %v2389_v41  ;;  %v1318_v14 = vsel %vm1302_vm10, %v1301_v2, %v2390_v42  ;;  %v1315_v60 = vsel %vm1302_vm10, %v1298_v44, %v2384_v46  ;;  %v1316_v21 = vsel %vm1302_vm10, %v1299_v37, %v2385_v43 }
 0x113   : > { %v2398_v6 = vpop.permute.xlu1 %2397  ;;  %v2393_v7 = vpop.permute.xlu0 %2392 }
 0x114   : > { %v2400_v8 = vunpack.i.h.bf16 %v2398_v6  ;;  %v2399_v11 = vunpack.i.l.bf16 %v2398_v6  ;;  %v2395_v39 = vunpack.i.h.bf16 %v2393_v7  ;;  %v2394_v13 = vunpack.i.l.bf16 %v2393_v7 }
 0x116   : > { %v1334_v4 = vsel %vm1319_vm11, %v1317_v3, %v2399_v11  ;;  %v1335_v45 = vsel %vm1319_vm11, %v1318_v14, %v2400_v8  ;;  %v1332_v56 = vsel %vm1319_vm11, %v1315_v60, %v2394_v13  ;;  %v1333_v54 = vsel %vm1319_vm11, %v1316_v21, %v2395_v39 }
 0x117   : > { %v1343_v52 = vpack.c.bf16 %v1335_v45, %v1334_v4  ;;  %v1342_v22 = vpack.c.bf16 %v1333_v54, %v1332_v56 }
 0x119   : > { %2021 = vmatprep.mubr.msk.bf16.mxu1 %vm1364_vm12, %v1342_v22 }
 0x11a   : > { %2022 = vmatmul.mubr.msk.bf16.gmra.mrb[4].mxu1 %vm1364_vm12, %v1343_v52 }
 0x194   : > { %v2011_v38 = vpop.f32.mrb[0].mxu0 }
 0x195   : > { %v1931_v5 = vpack.c.bf16 %v2011_v38, %v2011_v38  ;;  %v1427_v24 = vpop.f32.mrb[1].mxu0  ;;  %v1529_v29 = vmul.f32 %v2011_v38, %v2011_v38  ;;  %v1493_v20 = vsel %vm1200_vm4, %v2011_v38, 0.0 }
 0x196   : > { %v1527_v25 = vmul.f32 %v1427_v24, %v1427_v24  ;;  %v1929_v55 = vpack.c.bf16 %v1427_v24, %v1427_v24  ;;  %v2012_v26 = vpop.f32.mrb[2].mxu0  ;;  %v1490_v57 = vsel %vm1200_vm4, %v1427_v24, 0.0 }
 0x197   : > { %1650 = vst.msk [vmem:[%s3185_s17 + $0x8] sm:$0xf] %vm1647_vm13, %v1931_v5  ;;  %v1932_v30 = vpack.c.bf16 %v2012_v26, %v2012_v26  ;;  %v1430_v31 = vpop.f32.mrb[3].mxu0  ;;  %v1530_v27 = vmul.f32 %v2012_v26, %v2012_v26  ;;  %v1546_v51 = vsel %vm1200_vm4, %v1529_v29, 0.0  ;;  %v1495_v28 = vsel %vm1200_vm4, %v2012_v26, 0.0 }
 0x198   : > { %1648 = vst.msk [vmem:[%s3185_s17] sm:$0xf] %vm1647_vm13, %v1929_v55  ;;  %v1491_v18 = vsel %vm1200_vm4, %v1430_v31, 0.0  ;;  %v1528_v32 = vmul.f32 %v1430_v31, %v1430_v31  ;;  %v1930_v10 = vpack.c.bf16 %v1430_v31, %v1430_v31  ;;  %v1543_v35 = vsel %vm1200_vm4, %v1527_v25, 0.0 }
 0x199   : > { %1651 = vst.msk [vmem:[%s3185_s17 + $0xc] sm:$0xf] %vm1647_vm13, %v1932_v30  ;;  %v1492_v16 = vadd.f32 %v1491_v18, %v1490_v57  ;;  %v1548_v1 = vsel %vm1200_vm4, %v1530_v27, 0.0 }
 0x19a   : > { %v1544_v19 = vsel %vm1200_vm4, %v1528_v32, 0.0  ;;  %1649 = vst.msk [vmem:[%s3185_s17 + $0x4] sm:$0xf] %vm1647_vm13, %v1930_v10 }
 0x19b   : > { %v1494_v12 = vadd.f32 %v1493_v20, %v1492_v16  ;;  %v1545_v50 = vadd.f32 %v1544_v19, %v1543_v35 }
 0x19d   : > { %v1547_v17 = vadd.f32 %v1546_v51, %v1545_v50  ;;  %v1496_v47 = vadd.f32 %v1495_v28, %v1494_v12 }
 0x19f   : > { %v1549_v53 = vadd.f32 %v1548_v1, %v1547_v17 }
 0x1b0   : > { %v2015_v59 = vpop.f32.mrb[4].mxu0 }
 0x1b1   : > { %v1935_v23 = vpack.c.bf16 %v2015_v59, %v2015_v59  ;;  %v1443_v33 = vpop.f32.mrb[5].mxu0  ;;  %v1533_v34 = vmul.f32 %v2015_v59, %v2015_v59  ;;  %v1501_v36 = vsel %vm1200_vm4, %v2015_v59, 0.0 }
 0x1b2   : > { %v1497_v15 = vsel %vm1200_vm4, %v1443_v33, 0.0  ;;  %v1531_v48 = vmul.f32 %v1443_v33, %v1443_v33  ;;  %v1933_v0 = vpack.c.bf16 %v1443_v33, %v1443_v33  ;;  %v2016_v49 = vpop.f32.mrb[6].mxu0 }
 0x1b3   : > { %1654 = vst.msk [vmem:[%s3185_s17 + $0x18] sm:$0xf] %vm1647_vm13, %v1935_v23  ;;  %v1498_v40 = vadd.f32 %v1497_v15, %v1496_v47  ;;  %v1446_v63 = vpop.f32.mrb[7].mxu0  ;;  %v1936_v41 = vpack.c.bf16 %v2016_v49, %v2016_v49  ;;  %v1534_v62 = vmul.f32 %v2016_v49, %v2016_v49  ;;  %v1554_v6 = vsel %vm1200_vm4, %v1533_v34, 0.0 }
 0x1b4   : > { %v1550_v42 = vsel %vm1200_vm4, %v1531_v48, 0.0  ;;  %1652 = vst.msk [vmem:[%s3185_s17 + $0x10] sm:$0xf] %vm1647_vm13, %v1933_v0  ;;  %v1499_v43 = vsel %vm1200_vm4, %v1446_v63, 0.0  ;;  %v1532_v46 = vmul.f32 %v1446_v63, %v1446_v63  ;;  %v1934_v9 = vpack.c.bf16 %v1446_v63, %v1446_v63 }
 0x1b5   : > { %v1551_v58 = vadd.f32 %v1550_v42, %v1549_v53  ;;  %v1500_v61 = vadd.f32 %v1499_v43, %v1498_v40  ;;  %1655 = vst.msk [vmem:[%s3185_s17 + $0x1c] sm:$0xf] %vm1647_vm13, %v1936_v41  ;;  %v1503_v7 = vsel %vm1200_vm4, %v2016_v49, 0.0  ;;  %v1556_v39 = vsel %vm1200_vm4, %v1534_v62, 0.0 }
 0x1b6   : > { %v1552_v2 = vsel %vm1200_vm4, %v1532_v46, 0.0  ;;  %1653 = vst.msk [vmem:[%s3185_s17 + $0x14] sm:$0xf] %vm1647_vm13, %v1934_v9 }
 0x1b7   : > { %v1502_v44 = vadd.f32 %v1501_v36, %v1500_v61  ;;  %v1553_v37 = vadd.f32 %v1552_v2, %v1551_v58 }
 0x1b9   : > { %v1555_v8 = vadd.f32 %v1554_v6, %v1553_v37  ;;  %v1504_v11 = vadd.f32 %v1503_v7, %v1502_v44 }
 0x1bb   : > { %v1557_v13 = vadd.f32 %v1556_v39, %v1555_v8 }
 0x1d0   : > { %v2019_v3 = vpop.f32.mrb[0].mxu1 }
 0x1d1   : > { %v1939_v14 = vpack.c.bf16 %v2019_v3, %v2019_v3  ;;  %v1459_v60 = vpop.f32.mrb[1].mxu1  ;;  %v1537_v54 = vmul.f32 %v2019_v3, %v2019_v3  ;;  %v1509_v30 = vsel %vm1200_vm4, %v2019_v3, 0.0 }
 0x1d2   : > { %v1505_v21 = vsel %vm1200_vm4, %v1459_v60, 0.0  ;;  %v1535_v4 = vmul.f32 %v1459_v60, %v1459_v60  ;;  %v1937_v45 = vpack.c.bf16 %v1459_v60, %v1459_v60  ;;  %v2020_v56 = vpop.f32.mrb[2].mxu1 }
 0x1d3   : > { %1658 = vst.msk [vmem:[%s3185_s17 + $0x28] sm:$0xf] %vm1647_vm13, %v1939_v14  ;;  %v1506_v52 = vadd.f32 %v1505_v21, %v1504_v11  ;;  %v1462_v22 = vpop.f32.mrb[3].mxu1  ;;  %v1940_v5 = vpack.c.bf16 %v2020_v56, %v2020_v56  ;;  %v1538_v31 = vmul.f32 %v2020_v56, %v2020_v56  ;;  %v1562_v10 = vsel %vm1200_vm4, %v1537_v54, 0.0 }
 0x1d4   : > { %v1558_v38 = vsel %vm1200_vm4, %v1535_v4, 0.0  ;;  %1656 = vst.msk [vmem:[%s3185_s17 + $0x20] sm:$0xf] %vm1647_vm13, %v1937_v45  ;;  %v1507_v24 = vsel %vm1200_vm4, %v1462_v22, 0.0  ;;  %v1536_v25 = vmul.f32 %v1462_v22, %v1462_v22  ;;  %v1938_v29 = vpack.c.bf16 %v1462_v22, %v1462_v22 }
 0x1d5   : > { %v1559_v55 = vadd.f32 %v1558_v38, %v1557_v13  ;;  %v1508_v26 = vadd.f32 %v1507_v24, %v1506_v52  ;;  %1659 = vst.msk [vmem:[%s3185_s17 + $0x2c] sm:$0xf] %vm1647_vm13, %v1940_v5  ;;  %v1511_v16 = vsel %vm1200_vm4, %v2020_v56, 0.0  ;;  %v1564_v27 = vsel %vm1200_vm4, %v1538_v31, 0.0 }
 0x1d6   : > { %v1560_v57 = vsel %vm1200_vm4, %v1536_v25, 0.0  ;;  %1657 = vst.msk [vmem:[%s3185_s17 + $0x24] sm:$0xf] %vm1647_vm13, %v1938_v29 }
 0x1d7   : > { %v1510_v18 = vadd.f32 %v1509_v30, %v1508_v26  ;;  %v1561_v32 = vadd.f32 %v1560_v57, %v1559_v55 }
 0x1d9   : > { %v1563_v20 = vadd.f32 %v1562_v10, %v1561_v32  ;;  %v1512_v35 = vadd.f32 %v1511_v16, %v1510_v18 }
 0x1db   : > { %v1565_v19 = vadd.f32 %v1564_v27, %v1563_v20 }
 0x1ed   : > { %v2023_v12 = vpop.f32.mrb[4].mxu1 }
 0x1ee   : > { %v1943_v50 = vpack.c.bf16 %v2023_v12, %v2023_v12  ;;  %v1475_v51 = vpop.f32.mrb[5].mxu1  ;;  %v1541_v53 = vmul.f32 %v2023_v12, %v2023_v12  ;;  %v1517_v63 = vsel %vm1200_vm4, %v2023_v12, 0.0 }
 0x1ef   : > { %v1513_v28 = vsel %vm1200_vm4, %v1475_v51, 0.0  ;;  %v1539_v17 = vmul.f32 %v1475_v51, %v1475_v51  ;;  %v1941_v47 = vpack.c.bf16 %v1475_v51, %v1475_v51  ;;  %v2024_v1 = vpop.f32.mrb[6].mxu1 }
 0x1f0   : > { %1662 = vst.msk [vmem:[%s3185_s17 + $0x38] sm:$0xf] %vm1647_vm13, %v1943_v50  ;;  %v1514_v59 = vadd.f32 %v1513_v28, %v1512_v35  ;;  %v1478_v23 = vpop.f32.mrb[7].mxu1  ;;  %v1944_v15 = vpack.c.bf16 %v2024_v1, %v2024_v1  ;;  %v1542_v42 = vmul.f32 %v2024_v1, %v2024_v1  ;;  %v1570_v58 = vsel %vm1200_vm4, %v1541_v53, 0.0 }
 0x1f1   : > { %v1566_v33 = vsel %vm1200_vm4, %v1539_v17, 0.0  ;;  %1660 = vst.msk [vmem:[%s3185_s17 + $0x30] sm:$0xf] %vm1647_vm13, %v1941_v47  ;;  %v1515_v48 = vsel %vm1200_vm4, %v1478_v23, 0.0  ;;  %v1540_v0 = vmul.f32 %v1478_v23, %v1478_v23  ;;  %v1942_v40 = vpack.c.bf16 %v1478_v23, %v1478_v23 }
 0x1f2   : > { %v1567_v49 = vadd.f32 %v1566_v33, %v1565_v19  ;;  %v1516_v34 = vadd.f32 %v1515_v48, %v1514_v59  ;;  %1663 = vst.msk [vmem:[%s3185_s17 + $0x3c] sm:$0xf] %vm1647_vm13, %v1944_v15  ;;  %v1519_v61 = vsel %vm1200_vm4, %v2024_v1, 0.0  ;;  %v1572_v62 = vsel %vm1200_vm4, %v1542_v42, 0.0 }
 0x1f3   : > { %v1568_v41 = vsel %vm1200_vm4, %v1540_v0, 0.0  ;;  %1661 = vst.msk [vmem:[%s3185_s17 + $0x34] sm:$0xf] %vm1647_vm13, %v1942_v40 }
 0x1f4   : > { %v1518_v43 = vadd.f32 %v1517_v63, %v1516_v34  ;;  %v1569_v46 = vadd.f32 %v1568_v41, %v1567_v49 }
 0x1f6   : > { %v1520_v9 = vadd.f32 %v1519_v61, %v1518_v43  ;;  %v1571_v36 = vadd.f32 %v1570_v58, %v1569_v46 }
 0x1f8   : > { %v1521_v2 = vrot.slane %v1520_v9, 4  ;;  %v1573_v44 = vadd.f32 %v1572_v62, %v1571_v36 }
 0x1fa   : > { %v1522_v37 = vadd.f32 %v1521_v2, %v1520_v9  ;;  %v1574_v6 = vrot.slane %v1573_v44, 4 }
 0x1fc   : > { %v1523_v7 = vrot.slane %v1522_v37, 2  ;;  %v1575_v8 = vadd.f32 %v1574_v6, %v1573_v44 }
 0x1fe   : > { %v1524_v11 = vadd.f32 %v1523_v7, %v1522_v37  ;;  %v1576_v39 = vrot.slane %v1575_v8, 2 }
 0x200   : > { %v1525_v13 = vrot.slane %v1524_v11, 1  ;;  %v1577_v3 = vadd.f32 %v1576_v39, %v1575_v8 }
 0x202   : > { %v1578_v14 = vrot.slane %v1577_v3, 1  ;;  %v1526_v60 = vadd.f32 %v1525_v13, %v1524_v11 }
 0x204   : > { %v1579_v21 = vadd.f32 %v1578_v14, %v1577_v3 }
 0x206   : > { %v1580_v4 = vsel %vm615_vm0, %v1526_v60, %v1579_v21 }
 0x207   : > { %1582 = vst.msk [vmem:[%s467_s9] sm:$0x3] %vm1581_vm14, %v1580_v4 }
 0x208 PF: > { %s18_s28 = sadd.s32 1, %s2442_s28   ;;  %s3280_s24 = smov %s2434_s26 }
 0x209   : > { %p15_p12 = scmp.ge.s32.totalorder %s18_s28, 6   ;;  %s3281_s25 = smov %s2438_s27 }
 0x20a   : > { %s3282_s26 = smov %s3285_s29  ;;  %s3283_s27 = smov %s3289_s30 }
 0x20b   :  { %17 = sbr.rel (!%p15_p12) target bundleno = 3 (0x3), region = 92 }

</bundles_post_ra>
